<compile_context>
chip_gen: v7x
topology: tpu7x:2x2x1
jax: 0.10.0
libtpu: 0.0.40
codegen_flags: <defaults>
</compile_context>

<pallas_src>
import functools

import jax
import jax.numpy as jnp
from jax import lax
from jax.experimental import pallas as pl
from jax.experimental.pallas import tpu as pltpu


def _spatial_attention_kernel(x_ref, p_ref, o_ref, pad_ref, *, H, W, K):
    # x_ref:   (1, C, HW) VMEM block  (C on sublanes, flattened spatial on lanes)
    # p_ref:   (2*K*K + 1,) SMEM      (BN-folded conv weights, then BN bias)
    # o_ref:   (1, C, HW) VMEM block
    # pad_ref: (2, HW + 2*LPAD) VMEM scratch: zero-padded [avg; max] flat maps
    HW = H * W
    R = K // 2                      # conv radius (3 for K=7)
    LPAD = R * W + R                # flat padding covering the full halo

    x = x_ref[0]                                        # (C, HW) f32

    # ---- channel pooling (sublane reductions) ------------------------------
    avg = jnp.mean(x, axis=0, keepdims=True)            # (1, HW)
    mx = jnp.max(x, axis=0, keepdims=True)              # (1, HW)

    # ---- zero-padded flat maps in scratch ----------------------------------
    pad_ref[...] = jnp.zeros(pad_ref.shape, jnp.float32)
    pad_ref[0:1, LPAD:LPAD + HW] = avg
    pad_ref[1:2, LPAD:LPAD + HW] = mx

    # ---- KxK conv (padding=R, no bias) + folded BatchNorm, on the VPU ------
    col = lax.broadcasted_iota(jnp.int32, (1, HW), 1) % W
    col_masks = [((col + dx) >= 0) & ((col + dx) < W) for dx in range(-R, R + 1)]

    acc = jnp.zeros((1, HW), jnp.float32)
    for i in range(K):                 # dy = i - R : row offset
        dy = i - R
        for j in range(K):             # dx = j - R : col offset
            dx = j - R
            start = LPAD + dy * W + dx                  # static slice start
            wa = p_ref[i * K + j]                       # weight on avg map
            wm = p_ref[K * K + i * K + j]               # weight on max map
            term = (wa * pad_ref[0:1, start:start + HW]
                    + wm * pad_ref[1:2, start:start + HW])
            acc = acc + jnp.where(col_masks[j], term, 0.0)

    logits = acc + p_ref[2 * K * K]                     # folded BN bias
    scale = jax.nn.sigmoid(logits)                      # (1, HW)

    # ---- gate (broadcast over channels); lane-dense store ------------------
    o_ref[0] = (x * scale).astype(o_ref.dtype)


def spatial_attention(x_nchw, conv_w, gamma, beta, run_mean, run_var, eps=1e-5):
    """SpatialAttention forward (eval-mode BatchNorm).

    x_nchw : (B, C, H, W)
    conv_w : (1, 2, K, K)   Conv2d(2, 1, K, padding=K//2, bias=False) weight
    gamma, beta, run_mean, run_var : (1,)  BatchNorm2d(1) params / running stats
    """
    B, C, H, W = x_nchw.shape
    K = conv_w.shape[-1]
    HW = H * W
    LPAD = (K // 2) * W + (K // 2)

    # Free layout change (no transpose): NCHW -> (B, C, H*W).
    x = x_nchw.reshape(B, C, HW)

    # Fold eval-mode BN into the bias-free conv:  bn(conv(m)) = conv(m)*s + b.
    s = gamma / jnp.sqrt(run_var + eps)                      # (1,)
    b = beta - run_mean * s                                  # (1,)
    w_eff = (conv_w[0] * s[0]).astype(jnp.float32)           # (2, K, K)
    params = jnp.concatenate([w_eff.reshape(-1), b.reshape(-1)]).astype(jnp.float32)

    kernel = functools.partial(_spatial_attention_kernel, H=H, W=W, K=K)

    out = pl.pallas_call(
        kernel,
        out_shape=jax.ShapeDtypeStruct((B, C, HW), x.dtype),
        grid_spec=pltpu.PrefetchScalarGridSpec(
            num_scalar_prefetch=0,
            grid=(B,),
            in_specs=[
                pl.BlockSpec((1, C, HW), lambda bb: (bb, 0, 0)),
                pl.BlockSpec(memory_space=pltpu.MemorySpace.SMEM),
            ],
            out_specs=pl.BlockSpec((1, C, HW), lambda bb: (bb, 0, 0)),
            scratch_shapes=[pltpu.VMEM((2, HW + 2 * LPAD), jnp.float32)],
        ),
        compiler_params=pltpu.CompilerParams(dimension_semantics=("parallel",)),
    )(x, params)

    return out.reshape(B, C, H, W)


def spatial_attention_ref(x, conv_w, gamma, beta, run_mean, run_var, eps=1e-5):
    # Pure-JAX reference mirroring the PyTorch module (eval-mode BN).
    avg = jnp.mean(x, axis=1, keepdims=True)
    mx = jnp.max(x, axis=1, keepdims=True)
    maps = jnp.concatenate([avg, mx], axis=1)                # (B, 2, H, W)
    pad = conv_w.shape[-1] // 2
    out = lax.conv_general_dilated(
        maps, conv_w, window_strides=(1, 1),
        padding=((pad, pad), (pad, pad)),
        dimension_numbers=("NCHW", "OIHW", "NCHW"))          # (B, 1, H, W)
    g = gamma.reshape(1, -1, 1, 1)
    be = beta.reshape(1, -1, 1, 1)
    mu = run_mean.reshape(1, -1, 1, 1)
    va = run_var.reshape(1, -1, 1, 1)
    out = g * (out - mu) / jnp.sqrt(va + eps) + be
    return x * jax.nn.sigmoid(out)


if __name__ == "__main__":
    B, C, H, W = 2, 32, 16, 16
    K = 7

    key = jax.random.PRNGKey(0)
    kx, kw, kg, kb, km, kv = jax.random.split(key, 6)
    x = jax.random.normal(kx, (B, C, H, W), dtype=jnp.float32)
    conv_w = jax.random.normal(kw, (1, 2, K, K), dtype=jnp.float32) / (2 * K * K) ** 0.5
    gamma = jax.random.uniform(kg, (1,), minval=0.5, maxval=1.5, dtype=jnp.float32)
    beta = jax.random.normal(kb, (1,), dtype=jnp.float32) * 0.1
    run_mean = jax.random.normal(km, (1,), dtype=jnp.float32) * 0.1
    run_var = jax.random.uniform(kv, (1,), minval=0.5, maxval=1.5, dtype=jnp.float32)

    y = spatial_attention(x, conv_w, gamma, beta, run_mean, run_var)
    jax.block_until_ready(y)

    y_ref = spatial_attention_ref(x, conv_w, gamma, beta, run_mean, run_var)
    assert y.shape == x.shape
    max_err = float(jnp.max(jnp.abs(y - y_ref)))
    assert jnp.allclose(y, y_ref, atol=1e-5, rtol=1e-5), max_err

    print("KERNEL_OK")
</pallas_src>

<mosaic_0001>
module attributes {stable_mosaic.version = 11 : i64} {
  func.func @_spatial_attention_kernel(%arg0: i32, %arg1: memref<1x32x256xf32, #tpu.memory_space<vmem>>, %arg2: memref<99xf32, #tpu.memory_space<smem>>, %arg3: memref<1x32x256xf32, #tpu.memory_space<vmem>>, %arg4: memref<2x358xf32, #tpu.memory_space<vmem>>) attributes {dimension_semantics = [#tpu.dimension_semantics<parallel>], iteration_bounds = array<i64: 2>, scalar_prefetch = 0 : i64, scratch_operands = 1 : i64, tpu.core_type = #tpu.core_type<tc>, window_params = [{transform_indices = @transform_0, window_bounds = array<i64: 1, 32, 256>}, {transform_indices = @transform_1, window_bounds = array<i64: 99>}, {transform_indices = @transform_2, window_bounds = array<i64: 1, 32, 256>}]} {
    %c0 = arith.constant 0 : index
    %c0_0 = arith.constant 0 : index
    %c0_1 = arith.constant 0 : index
    %0 = vector.load %arg1[%c0, %c0_0, %c0_1] : memref<1x32x256xf32, #tpu.memory_space<vmem>>, vector<1x32x256xf32>
    %1 = vector.shape_cast %0 : vector<1x32x256xf32> to vector<32x256xf32>
    %cst = arith.constant dense<0.000000e+00> : vector<256xf32>
    %2 = vector.multi_reduction <add>, %1, %cst [0] : vector<32x256xf32> to vector<256xf32>
    %3 = vector.shape_cast %2 : vector<256xf32> to vector<1x256xf32>
    %cst_2 = arith.constant 3.200000e+01 : f32
    %4 = vector.broadcast %cst_2 : f32 to vector<1x256xf32>
    %5 = arith.divf %3, %4 : vector<1x256xf32>
    %cst_3 = arith.constant dense<0xFF800000> : vector<256xf32>
    %6 = vector.multi_reduction <maximumf>, %1, %cst_3 [0] : vector<32x256xf32> to vector<256xf32>
    %7 = vector.shape_cast %6 : vector<256xf32> to vector<1x256xf32>
    %cst_4 = arith.constant 0.000000e+00 : f32
    %8 = vector.broadcast %cst_4 : f32 to vector<2x358xf32>
    %c0_5 = arith.constant 0 : index
    %c0_6 = arith.constant 0 : index
    %9 = vector.load %arg4[%c0_5, %c0_6] : memref<2x358xf32, #tpu.memory_space<vmem>>, vector<2x358xf32>
    tpu.vector_store %arg4[%c0_5, %c0_6], %8 {strides = array<i32>} : memref<2x358xf32, #tpu.memory_space<vmem>>, vector<2x358xf32>,
    %c0_7 = arith.constant 0 : index
    %c51 = arith.constant 51 : index
    %10 = vector.load %arg4[%c0_7, %c51] : memref<2x358xf32, #tpu.memory_space<vmem>>, vector<1x256xf32>
    tpu.vector_store %arg4[%c0_7, %c51], %5 {strides = array<i32>} : memref<2x358xf32, #tpu.memory_space<vmem>>, vector<1x256xf32>,
    %c1 = arith.constant 1 : index
    %c51_8 = arith.constant 51 : index
    %11 = vector.load %arg4[%c1, %c51_8] : memref<2x358xf32, #tpu.memory_space<vmem>>, vector<1x256xf32>
    tpu.vector_store %arg4[%c1, %c51_8], %7 {strides = array<i32>} : memref<2x358xf32, #tpu.memory_space<vmem>>, vector<1x256xf32>,
    %12 = tpu.iota {dimensions = array<i32: 1>} : vector<1x256xi32>
    %c16_i32 = arith.constant 16 : i32
    %c0_i32 = arith.constant 0 : i32
    %13 = arith.cmpi eq, %c16_i32, %c0_i32 : i32
    %c1_i32 = arith.constant 1 : i32
    %14 = arith.select %13, %c1_i32, %c16_i32 : i32
    %15 = vector.broadcast %14 : i32 to vector<1x256xi32>
    %16 = arith.remsi %12, %15 : vector<1x256xi32>
    %c0_i32_9 = arith.constant 0 : i32
    %17 = vector.broadcast %c0_i32_9 : i32 to vector<1x256xi32>
    %18 = arith.cmpi ne, %16, %17 : vector<1x256xi32>
    %c0_i32_10 = arith.constant 0 : i32
    %19 = vector.broadcast %c0_i32_10 : i32 to vector<1x256xi32>
    %20 = arith.cmpi slt, %16, %19 : vector<1x256xi32>
    %c0_i32_11 = arith.constant 0 : i32
    %21 = arith.cmpi slt, %14, %c0_i32_11 : i32
    %22 = vector.broadcast %21 : i1 to vector<1x256xi1>
    %23 = vector.broadcast %22 : vector<1x256xi1> to vector<1x256xi1>
    %24 = arith.xori %20, %23 : vector<1x256xi1>
    %25 = arith.andi %24, %18 : vector<1x256xi1>
    %26 = vector.broadcast %14 : i32 to vector<1x256xi32>
    %27 = arith.addi %16, %26 : vector<1x256xi32>
    %28 = arith.select %25, %27, %16 : vector<1x256xi1>, vector<1x256xi32>
    %c-3_i32 = arith.constant -3 : i32
    %29 = vector.broadcast %c-3_i32 : i32 to vector<1x256xi32>
    %30 = arith.addi %28, %29 : vector<1x256xi32>
    %c0_i32_12 = arith.constant 0 : i32
    %31 = vector.broadcast %c0_i32_12 : i32 to vector<1x256xi32>
    %32 = arith.cmpi sge, %30, %31 : vector<1x256xi32>
    %c-3_i32_13 = arith.constant -3 : i32
    %33 = vector.broadcast %c-3_i32_13 : i32 to vector<1x256xi32>
    %34 = arith.addi %28, %33 : vector<1x256xi32>
    %c16_i32_14 = arith.constant 16 : i32
    %35 = vector.broadcast %c16_i32_14 : i32 to vector<1x256xi32>
    %36 = arith.cmpi slt, %34, %35 : vector<1x256xi32>
    %37 = arith.andi %32, %36 : vector<1x256xi1>
    %c-2_i32 = arith.constant -2 : i32
    %38 = vector.broadcast %c-2_i32 : i32 to vector<1x256xi32>
    %39 = arith.addi %28, %38 : vector<1x256xi32>
    %c0_i32_15 = arith.constant 0 : i32
    %40 = vector.broadcast %c0_i32_15 : i32 to vector<1x256xi32>
    %41 = arith.cmpi sge, %39, %40 : vector<1x256xi32>
    %c-2_i32_16 = arith.constant -2 : i32
    %42 = vector.broadcast %c-2_i32_16 : i32 to vector<1x256xi32>
    %43 = arith.addi %28, %42 : vector<1x256xi32>
    %c16_i32_17 = arith.constant 16 : i32
    %44 = vector.broadcast %c16_i32_17 : i32 to vector<1x256xi32>
    %45 = arith.cmpi slt, %43, %44 : vector<1x256xi32>
    %46 = arith.andi %41, %45 : vector<1x256xi1>
    %c-1_i32 = arith.constant -1 : i32
    %47 = vector.broadcast %c-1_i32 : i32 to vector<1x256xi32>
    %48 = arith.addi %28, %47 : vector<1x256xi32>
    %c0_i32_18 = arith.constant 0 : i32
    %49 = vector.broadcast %c0_i32_18 : i32 to vector<1x256xi32>
    %50 = arith.cmpi sge, %48, %49 : vector<1x256xi32>
    %c-1_i32_19 = arith.constant -1 : i32
    %51 = vector.broadcast %c-1_i32_19 : i32 to vector<1x256xi32>
    %52 = arith.addi %28, %51 : vector<1x256xi32>
    %c16_i32_20 = arith.constant 16 : i32
    %53 = vector.broadcast %c16_i32_20 : i32 to vector<1x256xi32>
    %54 = arith.cmpi slt, %52, %53 : vector<1x256xi32>
    %55 = arith.andi %50, %54 : vector<1x256xi1>
    %c0_i32_21 = arith.constant 0 : i32
    %56 = vector.broadcast %c0_i32_21 : i32 to vector<1x256xi32>
    %57 = arith.addi %28, %56 : vector<1x256xi32>
    %c0_i32_22 = arith.constant 0 : i32
    %58 = vector.broadcast %c0_i32_22 : i32 to vector<1x256xi32>
    %59 = arith.cmpi sge, %57, %58 : vector<1x256xi32>
    %c0_i32_23 = arith.constant 0 : i32
    %60 = vector.broadcast %c0_i32_23 : i32 to vector<1x256xi32>
    %61 = arith.addi %28, %60 : vector<1x256xi32>
    %c16_i32_24 = arith.constant 16 : i32
    %62 = vector.broadcast %c16_i32_24 : i32 to vector<1x256xi32>
    %63 = arith.cmpi slt, %61, %62 : vector<1x256xi32>
    %64 = arith.andi %59, %63 : vector<1x256xi1>
    %c1_i32_25 = arith.constant 1 : i32
    %65 = vector.broadcast %c1_i32_25 : i32 to vector<1x256xi32>
    %66 = arith.addi %28, %65 : vector<1x256xi32>
    %c0_i32_26 = arith.constant 0 : i32
    %67 = vector.broadcast %c0_i32_26 : i32 to vector<1x256xi32>
    %68 = arith.cmpi sge, %66, %67 : vector<1x256xi32>
    %c1_i32_27 = arith.constant 1 : i32
    %69 = vector.broadcast %c1_i32_27 : i32 to vector<1x256xi32>
    %70 = arith.addi %28, %69 : vector<1x256xi32>
    %c16_i32_28 = arith.constant 16 : i32
    %71 = vector.broadcast %c16_i32_28 : i32 to vector<1x256xi32>
    %72 = arith.cmpi slt, %70, %71 : vector<1x256xi32>
    %73 = arith.andi %68, %72 : vector<1x256xi1>
    %c2_i32 = arith.constant 2 : i32
    %74 = vector.broadcast %c2_i32 : i32 to vector<1x256xi32>
    %75 = arith.addi %28, %74 : vector<1x256xi32>
    %c0_i32_29 = arith.constant 0 : i32
    %76 = vector.broadcast %c0_i32_29 : i32 to vector<1x256xi32>
    %77 = arith.cmpi sge, %75, %76 : vector<1x256xi32>
    %c2_i32_30 = arith.constant 2 : i32
    %78 = vector.broadcast %c2_i32_30 : i32 to vector<1x256xi32>
    %79 = arith.addi %28, %78 : vector<1x256xi32>
    %c16_i32_31 = arith.constant 16 : i32
    %80 = vector.broadcast %c16_i32_31 : i32 to vector<1x256xi32>
    %81 = arith.cmpi slt, %79, %80 : vector<1x256xi32>
    %82 = arith.andi %77, %81 : vector<1x256xi1>
    %c3_i32 = arith.constant 3 : i32
    %83 = vector.broadcast %c3_i32 : i32 to vector<1x256xi32>
    %84 = arith.addi %28, %83 : vector<1x256xi32>
    %c0_i32_32 = arith.constant 0 : i32
    %85 = vector.broadcast %c0_i32_32 : i32 to vector<1x256xi32>
    %86 = arith.cmpi sge, %84, %85 : vector<1x256xi32>
    %c3_i32_33 = arith.constant 3 : i32
    %87 = vector.broadcast %c3_i32_33 : i32 to vector<1x256xi32>
    %88 = arith.addi %28, %87 : vector<1x256xi32>
    %c16_i32_34 = arith.constant 16 : i32
    %89 = vector.broadcast %c16_i32_34 : i32 to vector<1x256xi32>
    %90 = arith.cmpi slt, %88, %89 : vector<1x256xi32>
    %91 = arith.andi %86, %90 : vector<1x256xi1>
    %cst_35 = arith.constant 0.000000e+00 : f32
    %92 = vector.broadcast %cst_35 : f32 to vector<1x256xf32>
    %c0_36 = arith.constant 0 : index
    %93 = memref.load %arg2[%c0_36] : memref<99xf32, #tpu.memory_space<smem>>
    %c49 = arith.constant 49 : index
    %94 = memref.load %arg2[%c49] : memref<99xf32, #tpu.memory_space<smem>>
    %c0_37 = arith.constant 0 : index
    %c0_38 = arith.constant 0 : index
    %95 = vector.load %arg4[%c0_37, %c0_38] : memref<2x358xf32, #tpu.memory_space<vmem>>, vector<1x256xf32>
    %96 = vector.broadcast %93 : f32 to vector<1x256xf32>
    %97 = arith.mulf %96, %95 : vector<1x256xf32>
    %c1_39 = arith.constant 1 : index
    %c0_40 = arith.constant 0 : index
    %98 = vector.load %arg4[%c1_39, %c0_40] : memref<2x358xf32, #tpu.memory_space<vmem>>, vector<1x256xf32>
    %99 = vector.broadcast %94 : f32 to vector<1x256xf32>
    %100 = arith.mulf %99, %98 : vector<1x256xf32>
    %101 = arith.addf %97, %100 : vector<1x256xf32>
    %cst_41 = arith.constant 0.000000e+00 : f32
    %102 = vector.broadcast %cst_41 : f32 to vector<1x256xf32>
    %103 = arith.select %37, %101, %102 : vector<1x256xi1>, vector<1x256xf32>
    %104 = arith.addf %92, %103 : vector<1x256xf32>
    %c1_42 = arith.constant 1 : index
    %105 = memref.load %arg2[%c1_42] : memref<99xf32, #tpu.memory_space<smem>>
    %c50 = arith.constant 50 : index
    %106 = memref.load %arg2[%c50] : memref<99xf32, #tpu.memory_space<smem>>
    %c0_43 = arith.constant 0 : index
    %c1_44 = arith.constant 1 : index
    %107 = vector.load %arg4[%c0_43, %c1_44] : memref<2x358xf32, #tpu.memory_space<vmem>>, vector<1x256xf32>
    %108 = vector.broadcast %105 : f32 to vector<1x256xf32>
    %109 = arith.mulf %108, %107 : vector<1x256xf32>
    %c1_45 = arith.constant 1 : index
    %c1_46 = arith.constant 1 : index
    %110 = vector.load %arg4[%c1_45, %c1_46] : memref<2x358xf32, #tpu.memory_space<vmem>>, vector<1x256xf32>
    %111 = vector.broadcast %106 : f32 to vector<1x256xf32>
    %112 = arith.mulf %111, %110 : vector<1x256xf32>
    %113 = arith.addf %109, %112 : vector<1x256xf32>
    %cst_47 = arith.constant 0.000000e+00 : f32
    %114 = vector.broadcast %cst_47 : f32 to vector<1x256xf32>
    %115 = arith.select %46, %113, %114 : vector<1x256xi1>, vector<1x256xf32>
    %116 = arith.addf %104, %115 : vector<1x256xf32>
    %c2 = arith.constant 2 : index
    %117 = memref.load %arg2[%c2] : memref<99xf32, #tpu.memory_space<smem>>
    %c51_48 = arith.constant 51 : index
    %118 = memref.load %arg2[%c51_48] : memref<99xf32, #tpu.memory_space<smem>>
    %c0_49 = arith.constant 0 : index
    %c2_50 = arith.constant 2 : index
    %119 = vector.load %arg4[%c0_49, %c2_50] : memref<2x358xf32, #tpu.memory_space<vmem>>, vector<1x256xf32>
    %120 = vector.broadcast %117 : f32 to vector<1x256xf32>
    %121 = arith.mulf %120, %119 : vector<1x256xf32>
    %c1_51 = arith.constant 1 : index
    %c2_52 = arith.constant 2 : index
    %122 = vector.load %arg4[%c1_51, %c2_52] : memref<2x358xf32, #tpu.memory_space<vmem>>, vector<1x256xf32>
    %123 = vector.broadcast %118 : f32 to vector<1x256xf32>
    %124 = arith.mulf %123, %122 : vector<1x256xf32>
    %125 = arith.addf %121, %124 : vector<1x256xf32>
    %cst_53 = arith.constant 0.000000e+00 : f32
    %126 = vector.broadcast %cst_53 : f32 to vector<1x256xf32>
    %127 = arith.select %55, %125, %126 : vector<1x256xi1>, vector<1x256xf32>
    %128 = arith.addf %116, %127 : vector<1x256xf32>
    %c3 = arith.constant 3 : index
    %129 = memref.load %arg2[%c3] : memref<99xf32, #tpu.memory_space<smem>>
    %c52 = arith.constant 52 : index
    %130 = memref.load %arg2[%c52] : memref<99xf32, #tpu.memory_space<smem>>
    %c0_54 = arith.constant 0 : index
    %c3_55 = arith.constant 3 : index
    %131 = vector.load %arg4[%c0_54, %c3_55] : memref<2x358xf32, #tpu.memory_space<vmem>>, vector<1x256xf32>
    %132 = vector.broadcast %129 : f32 to vector<1x256xf32>
    %133 = arith.mulf %132, %131 : vector<1x256xf32>
    %c1_56 = arith.constant 1 : index
    %c3_57 = arith.constant 3 : index
    %134 = vector.load %arg4[%c1_56, %c3_57] : memref<2x358xf32, #tpu.memory_space<vmem>>, vector<1x256xf32>
    %135 = vector.broadcast %130 : f32 to vector<1x256xf32>
    %136 = arith.mulf %135, %134 : vector<1x256xf32>
    %137 = arith.addf %133, %136 : vector<1x256xf32>
    %cst_58 = arith.constant 0.000000e+00 : f32
    %138 = vector.broadcast %cst_58 : f32 to vector<1x256xf32>
    %139 = arith.select %64, %137, %138 : vector<1x256xi1>, vector<1x256xf32>
    %140 = arith.addf %128, %139 : vector<1x256xf32>
    %c4 = arith.constant 4 : index
    %141 = memref.load %arg2[%c4] : memref<99xf32, #tpu.memory_space<smem>>
    %c53 = arith.constant 53 : index
    %142 = memref.load %arg2[%c53] : memref<99xf32, #tpu.memory_space<smem>>
    %c0_59 = arith.constant 0 : index
    %c4_60 = arith.constant 4 : index
    %143 = vector.load %arg4[%c0_59, %c4_60] : memref<2x358xf32, #tpu.memory_space<vmem>>, vector<1x256xf32>
    %144 = vector.broadcast %141 : f32 to vector<1x256xf32>
    %145 = arith.mulf %144, %143 : vector<1x256xf32>
    %c1_61 = arith.constant 1 : index
    %c4_62 = arith.constant 4 : index
    %146 = vector.load %arg4[%c1_61, %c4_62] : memref<2x358xf32, #tpu.memory_space<vmem>>, vector<1x256xf32>
    %147 = vector.broadcast %142 : f32 to vector<1x256xf32>
    %148 = arith.mulf %147, %146 : vector<1x256xf32>
    %149 = arith.addf %145, %148 : vector<1x256xf32>
    %cst_63 = arith.constant 0.000000e+00 : f32
    %150 = vector.broadcast %cst_63 : f32 to vector<1x256xf32>
    %151 = arith.select %73, %149, %150 : vector<1x256xi1>, vector<1x256xf32>
    %152 = arith.addf %140, %151 : vector<1x256xf32>
    %c5 = arith.constant 5 : index
    %153 = memref.load %arg2[%c5] : memref<99xf32, #tpu.memory_space<smem>>
    %c54 = arith.constant 54 : index
    %154 = memref.load %arg2[%c54] : memref<99xf32, #tpu.memory_space<smem>>
    %c0_64 = arith.constant 0 : index
    %c5_65 = arith.constant 5 : index
    %155 = vector.load %arg4[%c0_64, %c5_65] : memref<2x358xf32, #tpu.memory_space<vmem>>, vector<1x256xf32>
    %156 = vector.broadcast %153 : f32 to vector<1x256xf32>
    %157 = arith.mulf %156, %155 : vector<1x256xf32>
    %c1_66 = arith.constant 1 : index
    %c5_67 = arith.constant 5 : index
    %158 = vector.load %arg4[%c1_66, %c5_67] : memref<2x358xf32, #tpu.memory_space<vmem>>, vector<1x256xf32>
    %159 = vector.broadcast %154 : f32 to vector<1x256xf32>
    %160 = arith.mulf %159, %158 : vector<1x256xf32>
    %161 = arith.addf %157, %160 : vector<1x256xf32>
    %cst_68 = arith.constant 0.000000e+00 : f32
    %162 = vector.broadcast %cst_68 : f32 to vector<1x256xf32>
    %163 = arith.select %82, %161, %162 : vector<1x256xi1>, vector<1x256xf32>
    %164 = arith.addf %152, %163 : vector<1x256xf32>
    %c6 = arith.constant 6 : index
    %165 = memref.load %arg2[%c6] : memref<99xf32, #tpu.memory_space<smem>>
    %c55 = arith.constant 55 : index
    %166 = memref.load %arg2[%c55] : memref<99xf32, #tpu.memory_space<smem>>
    %c0_69 = arith.constant 0 : index
    %c6_70 = arith.constant 6 : index
    %167 = vector.load %arg4[%c0_69, %c6_70] : memref<2x358xf32, #tpu.memory_space<vmem>>, vector<1x256xf32>
    %168 = vector.broadcast %165 : f32 to vector<1x256xf32>
    %169 = arith.mulf %168, %167 : vector<1x256xf32>
    %c1_71 = arith.constant 1 : index
    %c6_72 = arith.constant 6 : index
    %170 = vector.load %arg4[%c1_71, %c6_72] : memref<2x358xf32, #tpu.memory_space<vmem>>, vector<1x256xf32>
    %171 = vector.broadcast %166 : f32 to vector<1x256xf32>
    %172 = arith.mulf %171, %170 : vector<1x256xf32>
    %173 = arith.addf %169, %172 : vector<1x256xf32>
    %cst_73 = arith.constant 0.000000e+00 : f32
    %174 = vector.broadcast %cst_73 : f32 to vector<1x256xf32>
    %175 = arith.select %91, %173, %174 : vector<1x256xi1>, vector<1x256xf32>
    %176 = arith.addf %164, %175 : vector<1x256xf32>
    %c7 = arith.constant 7 : index
    %177 = memref.load %arg2[%c7] : memref<99xf32, #tpu.memory_space<smem>>
    %c56 = arith.constant 56 : index
    %178 = memref.load %arg2[%c56] : memref<99xf32, #tpu.memory_space<smem>>
    %c0_74 = arith.constant 0 : index
    %c16 = arith.constant 16 : index
    %179 = vector.load %arg4[%c0_74, %c16] : memref<2x358xf32, #tpu.memory_space<vmem>>, vector<1x256xf32>
    %180 = vector.broadcast %177 : f32 to vector<1x256xf32>
    %181 = arith.mulf %180, %179 : vector<1x256xf32>
    %c1_75 = arith.constant 1 : index
    %c16_76 = arith.constant 16 : index
    %182 = vector.load %arg4[%c1_75, %c16_76] : memref<2x358xf32, #tpu.memory_space<vmem>>, vector<1x256xf32>
    %183 = vector.broadcast %178 : f32 to vector<1x256xf32>
    %184 = arith.mulf %183, %182 : vector<1x256xf32>
    %185 = arith.addf %181, %184 : vector<1x256xf32>
    %cst_77 = arith.constant 0.000000e+00 : f32
    %186 = vector.broadcast %cst_77 : f32 to vector<1x256xf32>
    %187 = arith.select %37, %185, %186 : vector<1x256xi1>, vector<1x256xf32>
    %188 = arith.addf %176, %187 : vector<1x256xf32>
    %c8 = arith.constant 8 : index
    %189 = memref.load %arg2[%c8] : memref<99xf32, #tpu.memory_space<smem>>
    %c57 = arith.constant 57 : index
    %190 = memref.load %arg2[%c57] : memref<99xf32, #tpu.memory_space<smem>>
    %c0_78 = arith.constant 0 : index
    %c17 = arith.constant 17 : index
    %191 = vector.load %arg4[%c0_78, %c17] : memref<2x358xf32, #tpu.memory_space<vmem>>, vector<1x256xf32>
    %192 = vector.broadcast %189 : f32 to vector<1x256xf32>
    %193 = arith.mulf %192, %191 : vector<1x256xf32>
    %c1_79 = arith.constant 1 : index
    %c17_80 = arith.constant 17 : index
    %194 = vector.load %arg4[%c1_79, %c17_80] : memref<2x358xf32, #tpu.memory_space<vmem>>, vector<1x256xf32>
    %195 = vector.broadcast %190 : f32 to vector<1x256xf32>
    %196 = arith.mulf %195, %194 : vector<1x256xf32>
    %197 = arith.addf %193, %196 : vector<1x256xf32>
    %cst_81 = arith.constant 0.000000e+00 : f32
    %198 = vector.broadcast %cst_81 : f32 to vector<1x256xf32>
    %199 = arith.select %46, %197, %198 : vector<1x256xi1>, vector<1x256xf32>
    %200 = arith.addf %188, %199 : vector<1x256xf32>
    %c9 = arith.constant 9 : index
    %201 = memref.load %arg2[%c9] : memref<99xf32, #tpu.memory_space<smem>>
    %c58 = arith.constant 58 : index
    %202 = memref.load %arg2[%c58] : memref<99xf32, #tpu.memory_space<smem>>
    %c0_82 = arith.constant 0 : index
    %c18 = arith.constant 18 : index
    %203 = vector.load %arg4[%c0_82, %c18] : memref<2x358xf32, #tpu.memory_space<vmem>>, vector<1x256xf32>
    %204 = vector.broadcast %201 : f32 to vector<1x256xf32>
    %205 = arith.mulf %204, %203 : vector<1x256xf32>
    %c1_83 = arith.constant 1 : index
    %c18_84 = arith.constant 18 : index
    %206 = vector.load %arg4[%c1_83, %c18_84] : memref<2x358xf32, #tpu.memory_space<vmem>>, vector<1x256xf32>
    %207 = vector.broadcast %202 : f32 to vector<1x256xf32>
    %208 = arith.mulf %207, %206 : vector<1x256xf32>
    %209 = arith.addf %205, %208 : vector<1x256xf32>
    %cst_85 = arith.constant 0.000000e+00 : f32
    %210 = vector.broadcast %cst_85 : f32 to vector<1x256xf32>
    %211 = arith.select %55, %209, %210 : vector<1x256xi1>, vector<1x256xf32>
    %212 = arith.addf %200, %211 : vector<1x256xf32>
    %c10 = arith.constant 10 : index
    %213 = memref.load %arg2[%c10] : memref<99xf32, #tpu.memory_space<smem>>
    %c59 = arith.constant 59 : index
    %214 = memref.load %arg2[%c59] : memref<99xf32, #tpu.memory_space<smem>>
    %c0_86 = arith.constant 0 : index
    %c19 = arith.constant 19 : index
    %215 = vector.load %arg4[%c0_86, %c19] : memref<2x358xf32, #tpu.memory_space<vmem>>, vector<1x256xf32>
    %216 = vector.broadcast %213 : f32 to vector<1x256xf32>
    %217 = arith.mulf %216, %215 : vector<1x256xf32>
    %c1_87 = arith.constant 1 : index
    %c19_88 = arith.constant 19 : index
    %218 = vector.load %arg4[%c1_87, %c19_88] : memref<2x358xf32, #tpu.memory_space<vmem>>, vector<1x256xf32>
    %219 = vector.broadcast %214 : f32 to vector<1x256xf32>
    %220 = arith.mulf %219, %218 : vector<1x256xf32>
    %221 = arith.addf %217, %220 : vector<1x256xf32>
    %cst_89 = arith.constant 0.000000e+00 : f32
    %222 = vector.broadcast %cst_89 : f32 to vector<1x256xf32>
    %223 = arith.select %64, %221, %222 : vector<1x256xi1>, vector<1x256xf32>
    %224 = arith.addf %212, %223 : vector<1x256xf32>
    %c11 = arith.constant 11 : index
    %225 = memref.load %arg2[%c11] : memref<99xf32, #tpu.memory_space<smem>>
    %c60 = arith.constant 60 : index
    %226 = memref.load %arg2[%c60] : memref<99xf32, #tpu.memory_space<smem>>
    %c0_90 = arith.constant 0 : index
    %c20 = arith.constant 20 : index
    %227 = vector.load %arg4[%c0_90, %c20] : memref<2x358xf32, #tpu.memory_space<vmem>>, vector<1x256xf32>
    %228 = vector.broadcast %225 : f32 to vector<1x256xf32>
    %229 = arith.mulf %228, %227 : vector<1x256xf32>
    %c1_91 = arith.constant 1 : index
    %c20_92 = arith.constant 20 : index
    %230 = vector.load %arg4[%c1_91, %c20_92] : memref<2x358xf32, #tpu.memory_space<vmem>>, vector<1x256xf32>
    %231 = vector.broadcast %226 : f32 to vector<1x256xf32>
    %232 = arith.mulf %231, %230 : vector<1x256xf32>
    %233 = arith.addf %229, %232 : vector<1x256xf32>
    %cst_93 = arith.constant 0.000000e+00 : f32
    %234 = vector.broadcast %cst_93 : f32 to vector<1x256xf32>
    %235 = arith.select %73, %233, %234 : vector<1x256xi1>, vector<1x256xf32>
    %236 = arith.addf %224, %235 : vector<1x256xf32>
    %c12 = arith.constant 12 : index
    %237 = memref.load %arg2[%c12] : memref<99xf32, #tpu.memory_space<smem>>
    %c61 = arith.constant 61 : index
    %238 = memref.load %arg2[%c61] : memref<99xf32, #tpu.memory_space<smem>>
    %c0_94 = arith.constant 0 : index
    %c21 = arith.constant 21 : index
    %239 = vector.load %arg4[%c0_94, %c21] : memref<2x358xf32, #tpu.memory_space<vmem>>, vector<1x256xf32>
    %240 = vector.broadcast %237 : f32 to vector<1x256xf32>
    %241 = arith.mulf %240, %239 : vector<1x256xf32>
    %c1_95 = arith.constant 1 : index
    %c21_96 = arith.constant 21 : index
    %242 = vector.load %arg4[%c1_95, %c21_96] : memref<2x358xf32, #tpu.memory_space<vmem>>, vector<1x256xf32>
    %243 = vector.broadcast %238 : f32 to vector<1x256xf32>
    %244 = arith.mulf %243, %242 : vector<1x256xf32>
    %245 = arith.addf %241, %244 : vector<1x256xf32>
    %cst_97 = arith.constant 0.000000e+00 : f32
    %246 = vector.broadcast %cst_97 : f32 to vector<1x256xf32>
    %247 = arith.select %82, %245, %246 : vector<1x256xi1>, vector<1x256xf32>
    %248 = arith.addf %236, %247 : vector<1x256xf32>
    %c13 = arith.constant 13 : index
    %249 = memref.load %arg2[%c13] : memref<99xf32, #tpu.memory_space<smem>>
    %c62 = arith.constant 62 : index
    %250 = memref.load %arg2[%c62] : memref<99xf32, #tpu.memory_space<smem>>
    %c0_98 = arith.constant 0 : index
    %c22 = arith.constant 22 : index
    %251 = vector.load %arg4[%c0_98, %c22] : memref<2x358xf32, #tpu.memory_space<vmem>>, vector<1x256xf32>
    %252 = vector.broadcast %249 : f32 to vector<1x256xf32>
    %253 = arith.mulf %252, %251 : vector<1x256xf32>
    %c1_99 = arith.constant 1 : index
    %c22_100 = arith.constant 22 : index
    %254 = vector.load %arg4[%c1_99, %c22_100] : memref<2x358xf32, #tpu.memory_space<vmem>>, vector<1x256xf32>
    %255 = vector.broadcast %250 : f32 to vector<1x256xf32>
    %256 = arith.mulf %255, %254 : vector<1x256xf32>
    %257 = arith.addf %253, %256 : vector<1x256xf32>
    %cst_101 = arith.constant 0.000000e+00 : f32
    %258 = vector.broadcast %cst_101 : f32 to vector<1x256xf32>
    %259 = arith.select %91, %257, %258 : vector<1x256xi1>, vector<1x256xf32>
    %260 = arith.addf %248, %259 : vector<1x256xf32>
    %c14 = arith.constant 14 : index
    %261 = memref.load %arg2[%c14] : memref<99xf32, #tpu.memory_space<smem>>
    %c63 = arith.constant 63 : index
    %262 = memref.load %arg2[%c63] : memref<99xf32, #tpu.memory_space<smem>>
    %c0_102 = arith.constant 0 : index
    %c32 = arith.constant 32 : index
    %263 = vector.load %arg4[%c0_102, %c32] : memref<2x358xf32, #tpu.memory_space<vmem>>, vector<1x256xf32>
    %264 = vector.broadcast %261 : f32 to vector<1x256xf32>
    %265 = arith.mulf %264, %263 : vector<1x256xf32>
    %c1_103 = arith.constant 1 : index
    %c32_104 = arith.constant 32 : index
    %266 = vector.load %arg4[%c1_103, %c32_104] : memref<2x358xf32, #tpu.memory_space<vmem>>, vector<1x256xf32>
    %267 = vector.broadcast %262 : f32 to vector<1x256xf32>
    %268 = arith.mulf %267, %266 : vector<1x256xf32>
    %269 = arith.addf %265, %268 : vector<1x256xf32>
    %cst_105 = arith.constant 0.000000e+00 : f32
    %270 = vector.broadcast %cst_105 : f32 to vector<1x256xf32>
    %271 = arith.select %37, %269, %270 : vector<1x256xi1>, vector<1x256xf32>
    %272 = arith.addf %260, %271 : vector<1x256xf32>
    %c15 = arith.constant 15 : index
    %273 = memref.load %arg2[%c15] : memref<99xf32, #tpu.memory_space<smem>>
    %c64 = arith.constant 64 : index
    %274 = memref.load %arg2[%c64] : memref<99xf32, #tpu.memory_space<smem>>
    %c0_106 = arith.constant 0 : index
    %c33 = arith.constant 33 : index
    %275 = vector.load %arg4[%c0_106, %c33] : memref<2x358xf32, #tpu.memory_space<vmem>>, vector<1x256xf32>
    %276 = vector.broadcast %273 : f32 to vector<1x256xf32>
    %277 = arith.mulf %276, %275 : vector<1x256xf32>
    %c1_107 = arith.constant 1 : index
    %c33_108 = arith.constant 33 : index
    %278 = vector.load %arg4[%c1_107, %c33_108] : memref<2x358xf32, #tpu.memory_space<vmem>>, vector<1x256xf32>
    %279 = vector.broadcast %274 : f32 to vector<1x256xf32>
    %280 = arith.mulf %279, %278 : vector<1x256xf32>
    %281 = arith.addf %277, %280 : vector<1x256xf32>
    %cst_109 = arith.constant 0.000000e+00 : f32
    %282 = vector.broadcast %cst_109 : f32 to vector<1x256xf32>
    %283 = arith.select %46, %281, %282 : vector<1x256xi1>, vector<1x256xf32>
    %284 = arith.addf %272, %283 : vector<1x256xf32>
    %c16_110 = arith.constant 16 : index
    %285 = memref.load %arg2[%c16_110] : memref<99xf32, #tpu.memory_space<smem>>
    %c65 = arith.constant 65 : index
    %286 = memref.load %arg2[%c65] : memref<99xf32, #tpu.memory_space<smem>>
    %c0_111 = arith.constant 0 : index
    %c34 = arith.constant 34 : index
    %287 = vector.load %arg4[%c0_111, %c34] : memref<2x358xf32, #tpu.memory_space<vmem>>, vector<1x256xf32>
    %288 = vector.broadcast %285 : f32 to vector<1x256xf32>
    %289 = arith.mulf %288, %287 : vector<1x256xf32>
    %c1_112 = arith.constant 1 : index
    %c34_113 = arith.constant 34 : index
    %290 = vector.load %arg4[%c1_112, %c34_113] : memref<2x358xf32, #tpu.memory_space<vmem>>, vector<1x256xf32>
    %291 = vector.broadcast %286 : f32 to vector<1x256xf32>
    %292 = arith.mulf %291, %290 : vector<1x256xf32>
    %293 = arith.addf %289, %292 : vector<1x256xf32>
    %cst_114 = arith.constant 0.000000e+00 : f32
    %294 = vector.broadcast %cst_114 : f32 to vector<1x256xf32>
    %295 = arith.select %55, %293, %294 : vector<1x256xi1>, vector<1x256xf32>
    %296 = arith.addf %284, %295 : vector<1x256xf32>
    %c17_115 = arith.constant 17 : index
    %297 = memref.load %arg2[%c17_115] : memref<99xf32, #tpu.memory_space<smem>>
    %c66 = arith.constant 66 : index
    %298 = memref.load %arg2[%c66] : memref<99xf32, #tpu.memory_space<smem>>
    %c0_116 = arith.constant 0 : index
    %c35 = arith.constant 35 : index
    %299 = vector.load %arg4[%c0_116, %c35] : memref<2x358xf32, #tpu.memory_space<vmem>>, vector<1x256xf32>
    %300 = vector.broadcast %297 : f32 to vector<1x256xf32>
    %301 = arith.mulf %300, %299 : vector<1x256xf32>
    %c1_117 = arith.constant 1 : index
    %c35_118 = arith.constant 35 : index
    %302 = vector.load %arg4[%c1_117, %c35_118] : memref<2x358xf32, #tpu.memory_space<vmem>>, vector<1x256xf32>
    %303 = vector.broadcast %298 : f32 to vector<1x256xf32>
    %304 = arith.mulf %303, %302 : vector<1x256xf32>
    %305 = arith.addf %301, %304 : vector<1x256xf32>
    %cst_119 = arith.constant 0.000000e+00 : f32
    %306 = vector.broadcast %cst_119 : f32 to vector<1x256xf32>
    %307 = arith.select %64, %305, %306 : vector<1x256xi1>, vector<1x256xf32>
    %308 = arith.addf %296, %307 : vector<1x256xf32>
    %c18_120 = arith.constant 18 : index
    %309 = memref.load %arg2[%c18_120] : memref<99xf32, #tpu.memory_space<smem>>
    %c67 = arith.constant 67 : index
    %310 = memref.load %arg2[%c67] : memref<99xf32, #tpu.memory_space<smem>>
    %c0_121 = arith.constant 0 : index
    %c36 = arith.constant 36 : index
    %311 = vector.load %arg4[%c0_121, %c36] : memref<2x358xf32, #tpu.memory_space<vmem>>, vector<1x256xf32>
    %312 = vector.broadcast %309 : f32 to vector<1x256xf32>
    %313 = arith.mulf %312, %311 : vector<1x256xf32>
    %c1_122 = arith.constant 1 : index
    %c36_123 = arith.constant 36 : index
    %314 = vector.load %arg4[%c1_122, %c36_123] : memref<2x358xf32, #tpu.memory_space<vmem>>, vector<1x256xf32>
    %315 = vector.broadcast %310 : f32 to vector<1x256xf32>
    %316 = arith.mulf %315, %314 : vector<1x256xf32>
    %317 = arith.addf %313, %316 : vector<1x256xf32>
    %cst_124 = arith.constant 0.000000e+00 : f32
    %318 = vector.broadcast %cst_124 : f32 to vector<1x256xf32>
    %319 = arith.select %73, %317, %318 : vector<1x256xi1>, vector<1x256xf32>
    %320 = arith.addf %308, %319 : vector<1x256xf32>
    %c19_125 = arith.constant 19 : index
    %321 = memref.load %arg2[%c19_125] : memref<99xf32, #tpu.memory_space<smem>>
    %c68 = arith.constant 68 : index
    %322 = memref.load %arg2[%c68] : memref<99xf32, #tpu.memory_space<smem>>
    %c0_126 = arith.constant 0 : index
    %c37 = arith.constant 37 : index
    %323 = vector.load %arg4[%c0_126, %c37] : memref<2x358xf32, #tpu.memory_space<vmem>>, vector<1x256xf32>
    %324 = vector.broadcast %321 : f32 to vector<1x256xf32>
    %325 = arith.mulf %324, %323 : vector<1x256xf32>
    %c1_127 = arith.constant 1 : index
    %c37_128 = arith.constant 37 : index
    %326 = vector.load %arg4[%c1_127, %c37_128] : memref<2x358xf32, #tpu.memory_space<vmem>>, vector<1x256xf32>
    %327 = vector.broadcast %322 : f32 to vector<1x256xf32>
    %328 = arith.mulf %327, %326 : vector<1x256xf32>
    %329 = arith.addf %325, %328 : vector<1x256xf32>
    %cst_129 = arith.constant 0.000000e+00 : f32
    %330 = vector.broadcast %cst_129 : f32 to vector<1x256xf32>
    %331 = arith.select %82, %329, %330 : vector<1x256xi1>, vector<1x256xf32>
    %332 = arith.addf %320, %331 : vector<1x256xf32>
    %c20_130 = arith.constant 20 : index
    %333 = memref.load %arg2[%c20_130] : memref<99xf32, #tpu.memory_space<smem>>
    %c69 = arith.constant 69 : index
    %334 = memref.load %arg2[%c69] : memref<99xf32, #tpu.memory_space<smem>>
    %c0_131 = arith.constant 0 : index
    %c38 = arith.constant 38 : index
    %335 = vector.load %arg4[%c0_131, %c38] : memref<2x358xf32, #tpu.memory_space<vmem>>, vector<1x256xf32>
    %336 = vector.broadcast %333 : f32 to vector<1x256xf32>
    %337 = arith.mulf %336, %335 : vector<1x256xf32>
    %c1_132 = arith.constant 1 : index
    %c38_133 = arith.constant 38 : index
    %338 = vector.load %arg4[%c1_132, %c38_133] : memref<2x358xf32, #tpu.memory_space<vmem>>, vector<1x256xf32>
    %339 = vector.broadcast %334 : f32 to vector<1x256xf32>
    %340 = arith.mulf %339, %338 : vector<1x256xf32>
    %341 = arith.addf %337, %340 : vector<1x256xf32>
    %cst_134 = arith.constant 0.000000e+00 : f32
    %342 = vector.broadcast %cst_134 : f32 to vector<1x256xf32>
    %343 = arith.select %91, %341, %342 : vector<1x256xi1>, vector<1x256xf32>
    %344 = arith.addf %332, %343 : vector<1x256xf32>
    %c21_135 = arith.constant 21 : index
    %345 = memref.load %arg2[%c21_135] : memref<99xf32, #tpu.memory_space<smem>>
    %c70 = arith.constant 70 : index
    %346 = memref.load %arg2[%c70] : memref<99xf32, #tpu.memory_space<smem>>
    %c0_136 = arith.constant 0 : index
    %c48 = arith.constant 48 : index
    %347 = vector.load %arg4[%c0_136, %c48] : memref<2x358xf32, #tpu.memory_space<vmem>>, vector<1x256xf32>
    %348 = vector.broadcast %345 : f32 to vector<1x256xf32>
    %349 = arith.mulf %348, %347 : vector<1x256xf32>
    %c1_137 = arith.constant 1 : index
    %c48_138 = arith.constant 48 : index
    %350 = vector.load %arg4[%c1_137, %c48_138] : memref<2x358xf32, #tpu.memory_space<vmem>>, vector<1x256xf32>
    %351 = vector.broadcast %346 : f32 to vector<1x256xf32>
    %352 = arith.mulf %351, %350 : vector<1x256xf32>
    %353 = arith.addf %349, %352 : vector<1x256xf32>
    %cst_139 = arith.constant 0.000000e+00 : f32
    %354 = vector.broadcast %cst_139 : f32 to vector<1x256xf32>
    %355 = arith.select %37, %353, %354 : vector<1x256xi1>, vector<1x256xf32>
    %356 = arith.addf %344, %355 : vector<1x256xf32>
    %c22_140 = arith.constant 22 : index
    %357 = memref.load %arg2[%c22_140] : memref<99xf32, #tpu.memory_space<smem>>
    %c71 = arith.constant 71 : index
    %358 = memref.load %arg2[%c71] : memref<99xf32, #tpu.memory_space<smem>>
    %c0_141 = arith.constant 0 : index
    %c49_142 = arith.constant 49 : index
    %359 = vector.load %arg4[%c0_141, %c49_142] : memref<2x358xf32, #tpu.memory_space<vmem>>, vector<1x256xf32>
    %360 = vector.broadcast %357 : f32 to vector<1x256xf32>
    %361 = arith.mulf %360, %359 : vector<1x256xf32>
    %c1_143 = arith.constant 1 : index
    %c49_144 = arith.constant 49 : index
    %362 = vector.load %arg4[%c1_143, %c49_144] : memref<2x358xf32, #tpu.memory_space<vmem>>, vector<1x256xf32>
    %363 = vector.broadcast %358 : f32 to vector<1x256xf32>
    %364 = arith.mulf %363, %362 : vector<1x256xf32>
    %365 = arith.addf %361, %364 : vector<1x256xf32>
    %cst_145 = arith.constant 0.000000e+00 : f32
    %366 = vector.broadcast %cst_145 : f32 to vector<1x256xf32>
    %367 = arith.select %46, %365, %366 : vector<1x256xi1>, vector<1x256xf32>
    %368 = arith.addf %356, %367 : vector<1x256xf32>
    %c23 = arith.constant 23 : index
    %369 = memref.load %arg2[%c23] : memref<99xf32, #tpu.memory_space<smem>>
    %c72 = arith.constant 72 : index
    %370 = memref.load %arg2[%c72] : memref<99xf32, #tpu.memory_space<smem>>
    %c0_146 = arith.constant 0 : index
    %c50_147 = arith.constant 50 : index
    %371 = vector.load %arg4[%c0_146, %c50_147] : memref<2x358xf32, #tpu.memory_space<vmem>>, vector<1x256xf32>
    %372 = vector.broadcast %369 : f32 to vector<1x256xf32>
    %373 = arith.mulf %372, %371 : vector<1x256xf32>
    %c1_148 = arith.constant 1 : index
    %c50_149 = arith.constant 50 : index
    %374 = vector.load %arg4[%c1_148, %c50_149] : memref<2x358xf32, #tpu.memory_space<vmem>>, vector<1x256xf32>
    %375 = vector.broadcast %370 : f32 to vector<1x256xf32>
    %376 = arith.mulf %375, %374 : vector<1x256xf32>
    %377 = arith.addf %373, %376 : vector<1x256xf32>
    %cst_150 = arith.constant 0.000000e+00 : f32
    %378 = vector.broadcast %cst_150 : f32 to vector<1x256xf32>
    %379 = arith.select %55, %377, %378 : vector<1x256xi1>, vector<1x256xf32>
    %380 = arith.addf %368, %379 : vector<1x256xf32>
    %c24 = arith.constant 24 : index
    %381 = memref.load %arg2[%c24] : memref<99xf32, #tpu.memory_space<smem>>
    %c73 = arith.constant 73 : index
    %382 = memref.load %arg2[%c73] : memref<99xf32, #tpu.memory_space<smem>>
    %c0_151 = arith.constant 0 : index
    %c51_152 = arith.constant 51 : index
    %383 = vector.load %arg4[%c0_151, %c51_152] : memref<2x358xf32, #tpu.memory_space<vmem>>, vector<1x256xf32>
    %384 = vector.broadcast %381 : f32 to vector<1x256xf32>
    %385 = arith.mulf %384, %383 : vector<1x256xf32>
    %c1_153 = arith.constant 1 : index
    %c51_154 = arith.constant 51 : index
    %386 = vector.load %arg4[%c1_153, %c51_154] : memref<2x358xf32, #tpu.memory_space<vmem>>, vector<1x256xf32>
    %387 = vector.broadcast %382 : f32 to vector<1x256xf32>
    %388 = arith.mulf %387, %386 : vector<1x256xf32>
    %389 = arith.addf %385, %388 : vector<1x256xf32>
    %cst_155 = arith.constant 0.000000e+00 : f32
    %390 = vector.broadcast %cst_155 : f32 to vector<1x256xf32>
    %391 = arith.select %64, %389, %390 : vector<1x256xi1>, vector<1x256xf32>
    %392 = arith.addf %380, %391 : vector<1x256xf32>
    %c25 = arith.constant 25 : index
    %393 = memref.load %arg2[%c25] : memref<99xf32, #tpu.memory_space<smem>>
    %c74 = arith.constant 74 : index
    %394 = memref.load %arg2[%c74] : memref<99xf32, #tpu.memory_space<smem>>
    %c0_156 = arith.constant 0 : index
    %c52_157 = arith.constant 52 : index
    %395 = vector.load %arg4[%c0_156, %c52_157] : memref<2x358xf32, #tpu.memory_space<vmem>>, vector<1x256xf32>
    %396 = vector.broadcast %393 : f32 to vector<1x256xf32>
    %397 = arith.mulf %396, %395 : vector<1x256xf32>
    %c1_158 = arith.constant 1 : index
    %c52_159 = arith.constant 52 : index
    %398 = vector.load %arg4[%c1_158, %c52_159] : memref<2x358xf32, #tpu.memory_space<vmem>>, vector<1x256xf32>
    %399 = vector.broadcast %394 : f32 to vector<1x256xf32>
    %400 = arith.mulf %399, %398 : vector<1x256xf32>
    %401 = arith.addf %397, %400 : vector<1x256xf32>
    %cst_160 = arith.constant 0.000000e+00 : f32
    %402 = vector.broadcast %cst_160 : f32 to vector<1x256xf32>
    %403 = arith.select %73, %401, %402 : vector<1x256xi1>, vector<1x256xf32>
    %404 = arith.addf %392, %403 : vector<1x256xf32>
    %c26 = arith.constant 26 : index
    %405 = memref.load %arg2[%c26] : memref<99xf32, #tpu.memory_space<smem>>
    %c75 = arith.constant 75 : index
    %406 = memref.load %arg2[%c75] : memref<99xf32, #tpu.memory_space<smem>>
    %c0_161 = arith.constant 0 : index
    %c53_162 = arith.constant 53 : index
    %407 = vector.load %arg4[%c0_161, %c53_162] : memref<2x358xf32, #tpu.memory_space<vmem>>, vector<1x256xf32>
    %408 = vector.broadcast %405 : f32 to vector<1x256xf32>
    %409 = arith.mulf %408, %407 : vector<1x256xf32>
    %c1_163 = arith.constant 1 : index
    %c53_164 = arith.constant 53 : index
    %410 = vector.load %arg4[%c1_163, %c53_164] : memref<2x358xf32, #tpu.memory_space<vmem>>, vector<1x256xf32>
    %411 = vector.broadcast %406 : f32 to vector<1x256xf32>
    %412 = arith.mulf %411, %410 : vector<1x256xf32>
    %413 = arith.addf %409, %412 : vector<1x256xf32>
    %cst_165 = arith.constant 0.000000e+00 : f32
    %414 = vector.broadcast %cst_165 : f32 to vector<1x256xf32>
    %415 = arith.select %82, %413, %414 : vector<1x256xi1>, vector<1x256xf32>
    %416 = arith.addf %404, %415 : vector<1x256xf32>
    %c27 = arith.constant 27 : index
    %417 = memref.load %arg2[%c27] : memref<99xf32, #tpu.memory_space<smem>>
    %c76 = arith.constant 76 : index
    %418 = memref.load %arg2[%c76] : memref<99xf32, #tpu.memory_space<smem>>
    %c0_166 = arith.constant 0 : index
    %c54_167 = arith.constant 54 : index
    %419 = vector.load %arg4[%c0_166, %c54_167] : memref<2x358xf32, #tpu.memory_space<vmem>>, vector<1x256xf32>
    %420 = vector.broadcast %417 : f32 to vector<1x256xf32>
    %421 = arith.mulf %420, %419 : vector<1x256xf32>
    %c1_168 = arith.constant 1 : index
    %c54_169 = arith.constant 54 : index
    %422 = vector.load %arg4[%c1_168, %c54_169] : memref<2x358xf32, #tpu.memory_space<vmem>>, vector<1x256xf32>
    %423 = vector.broadcast %418 : f32 to vector<1x256xf32>
    %424 = arith.mulf %423, %422 : vector<1x256xf32>
    %425 = arith.addf %421, %424 : vector<1x256xf32>
    %cst_170 = arith.constant 0.000000e+00 : f32
    %426 = vector.broadcast %cst_170 : f32 to vector<1x256xf32>
    %427 = arith.select %91, %425, %426 : vector<1x256xi1>, vector<1x256xf32>
    %428 = arith.addf %416, %427 : vector<1x256xf32>
    %c28 = arith.constant 28 : index
    %429 = memref.load %arg2[%c28] : memref<99xf32, #tpu.memory_space<smem>>
    %c77 = arith.constant 77 : index
    %430 = memref.load %arg2[%c77] : memref<99xf32, #tpu.memory_space<smem>>
    %c0_171 = arith.constant 0 : index
    %c64_172 = arith.constant 64 : index
    %431 = vector.load %arg4[%c0_171, %c64_172] : memref<2x358xf32, #tpu.memory_space<vmem>>, vector<1x256xf32>
    %432 = vector.broadcast %429 : f32 to vector<1x256xf32>
    %433 = arith.mulf %432, %431 : vector<1x256xf32>
    %c1_173 = arith.constant 1 : index
    %c64_174 = arith.constant 64 : index
    %434 = vector.load %arg4[%c1_173, %c64_174] : memref<2x358xf32, #tpu.memory_space<vmem>>, vector<1x256xf32>
    %435 = vector.broadcast %430 : f32 to vector<1x256xf32>
    %436 = arith.mulf %435, %434 : vector<1x256xf32>
    %437 = arith.addf %433, %436 : vector<1x256xf32>
    %cst_175 = arith.constant 0.000000e+00 : f32
    %438 = vector.broadcast %cst_175 : f32 to vector<1x256xf32>
    %439 = arith.select %37, %437, %438 : vector<1x256xi1>, vector<1x256xf32>
    %440 = arith.addf %428, %439 : vector<1x256xf32>
    %c29 = arith.constant 29 : index
    %441 = memref.load %arg2[%c29] : memref<99xf32, #tpu.memory_space<smem>>
    %c78 = arith.constant 78 : index
    %442 = memref.load %arg2[%c78] : memref<99xf32, #tpu.memory_space<smem>>
    %c0_176 = arith.constant 0 : index
    %c65_177 = arith.constant 65 : index
    %443 = vector.load %arg4[%c0_176, %c65_177] : memref<2x358xf32, #tpu.memory_space<vmem>>, vector<1x256xf32>
    %444 = vector.broadcast %441 : f32 to vector<1x256xf32>
    %445 = arith.mulf %444, %443 : vector<1x256xf32>
    %c1_178 = arith.constant 1 : index
    %c65_179 = arith.constant 65 : index
    %446 = vector.load %arg4[%c1_178, %c65_179] : memref<2x358xf32, #tpu.memory_space<vmem>>, vector<1x256xf32>
    %447 = vector.broadcast %442 : f32 to vector<1x256xf32>
    %448 = arith.mulf %447, %446 : vector<1x256xf32>
    %449 = arith.addf %445, %448 : vector<1x256xf32>
    %cst_180 = arith.constant 0.000000e+00 : f32
    %450 = vector.broadcast %cst_180 : f32 to vector<1x256xf32>
    %451 = arith.select %46, %449, %450 : vector<1x256xi1>, vector<1x256xf32>
    %452 = arith.addf %440, %451 : vector<1x256xf32>
    %c30 = arith.constant 30 : index
    %453 = memref.load %arg2[%c30] : memref<99xf32, #tpu.memory_space<smem>>
    %c79 = arith.constant 79 : index
    %454 = memref.load %arg2[%c79] : memref<99xf32, #tpu.memory_space<smem>>
    %c0_181 = arith.constant 0 : index
    %c66_182 = arith.constant 66 : index
    %455 = vector.load %arg4[%c0_181, %c66_182] : memref<2x358xf32, #tpu.memory_space<vmem>>, vector<1x256xf32>
    %456 = vector.broadcast %453 : f32 to vector<1x256xf32>
    %457 = arith.mulf %456, %455 : vector<1x256xf32>
    %c1_183 = arith.constant 1 : index
    %c66_184 = arith.constant 66 : index
    %458 = vector.load %arg4[%c1_183, %c66_184] : memref<2x358xf32, #tpu.memory_space<vmem>>, vector<1x256xf32>
    %459 = vector.broadcast %454 : f32 to vector<1x256xf32>
    %460 = arith.mulf %459, %458 : vector<1x256xf32>
    %461 = arith.addf %457, %460 : vector<1x256xf32>
    %cst_185 = arith.constant 0.000000e+00 : f32
    %462 = vector.broadcast %cst_185 : f32 to vector<1x256xf32>
    %463 = arith.select %55, %461, %462 : vector<1x256xi1>, vector<1x256xf32>
    %464 = arith.addf %452, %463 : vector<1x256xf32>
    %c31 = arith.constant 31 : index
    %465 = memref.load %arg2[%c31] : memref<99xf32, #tpu.memory_space<smem>>
    %c80 = arith.constant 80 : index
    %466 = memref.load %arg2[%c80] : memref<99xf32, #tpu.memory_space<smem>>
    %c0_186 = arith.constant 0 : index
    %c67_187 = arith.constant 67 : index
    %467 = vector.load %arg4[%c0_186, %c67_187] : memref<2x358xf32, #tpu.memory_space<vmem>>, vector<1x256xf32>
    %468 = vector.broadcast %465 : f32 to vector<1x256xf32>
    %469 = arith.mulf %468, %467 : vector<1x256xf32>
    %c1_188 = arith.constant 1 : index
    %c67_189 = arith.constant 67 : index
    %470 = vector.load %arg4[%c1_188, %c67_189] : memref<2x358xf32, #tpu.memory_space<vmem>>, vector<1x256xf32>
    %471 = vector.broadcast %466 : f32 to vector<1x256xf32>
    %472 = arith.mulf %471, %470 : vector<1x256xf32>
    %473 = arith.addf %469, %472 : vector<1x256xf32>
    %cst_190 = arith.constant 0.000000e+00 : f32
    %474 = vector.broadcast %cst_190 : f32 to vector<1x256xf32>
    %475 = arith.select %64, %473, %474 : vector<1x256xi1>, vector<1x256xf32>
    %476 = arith.addf %464, %475 : vector<1x256xf32>
    %c32_191 = arith.constant 32 : index
    %477 = memref.load %arg2[%c32_191] : memref<99xf32, #tpu.memory_space<smem>>
    %c81 = arith.constant 81 : index
    %478 = memref.load %arg2[%c81] : memref<99xf32, #tpu.memory_space<smem>>
    %c0_192 = arith.constant 0 : index
    %c68_193 = arith.constant 68 : index
    %479 = vector.load %arg4[%c0_192, %c68_193] : memref<2x358xf32, #tpu.memory_space<vmem>>, vector<1x256xf32>
    %480 = vector.broadcast %477 : f32 to vector<1x256xf32>
    %481 = arith.mulf %480, %479 : vector<1x256xf32>
    %c1_194 = arith.constant 1 : index
    %c68_195 = arith.constant 68 : index
    %482 = vector.load %arg4[%c1_194, %c68_195] : memref<2x358xf32, #tpu.memory_space<vmem>>, vector<1x256xf32>
    %483 = vector.broadcast %478 : f32 to vector<1x256xf32>
    %484 = arith.mulf %483, %482 : vector<1x256xf32>
    %485 = arith.addf %481, %484 : vector<1x256xf32>
    %cst_196 = arith.constant 0.000000e+00 : f32
    %486 = vector.broadcast %cst_196 : f32 to vector<1x256xf32>
    %487 = arith.select %73, %485, %486 : vector<1x256xi1>, vector<1x256xf32>
    %488 = arith.addf %476, %487 : vector<1x256xf32>
    %c33_197 = arith.constant 33 : index
    %489 = memref.load %arg2[%c33_197] : memref<99xf32, #tpu.memory_space<smem>>
    %c82 = arith.constant 82 : index
    %490 = memref.load %arg2[%c82] : memref<99xf32, #tpu.memory_space<smem>>
    %c0_198 = arith.constant 0 : index
    %c69_199 = arith.constant 69 : index
    %491 = vector.load %arg4[%c0_198, %c69_199] : memref<2x358xf32, #tpu.memory_space<vmem>>, vector<1x256xf32>
    %492 = vector.broadcast %489 : f32 to vector<1x256xf32>
    %493 = arith.mulf %492, %491 : vector<1x256xf32>
    %c1_200 = arith.constant 1 : index
    %c69_201 = arith.constant 69 : index
    %494 = vector.load %arg4[%c1_200, %c69_201] : memref<2x358xf32, #tpu.memory_space<vmem>>, vector<1x256xf32>
    %495 = vector.broadcast %490 : f32 to vector<1x256xf32>
    %496 = arith.mulf %495, %494 : vector<1x256xf32>
    %497 = arith.addf %493, %496 : vector<1x256xf32>
    %cst_202 = arith.constant 0.000000e+00 : f32
    %498 = vector.broadcast %cst_202 : f32 to vector<1x256xf32>
    %499 = arith.select %82, %497, %498 : vector<1x256xi1>, vector<1x256xf32>
    %500 = arith.addf %488, %499 : vector<1x256xf32>
    %c34_203 = arith.constant 34 : index
    %501 = memref.load %arg2[%c34_203] : memref<99xf32, #tpu.memory_space<smem>>
    %c83 = arith.constant 83 : index
    %502 = memref.load %arg2[%c83] : memref<99xf32, #tpu.memory_space<smem>>
    %c0_204 = arith.constant 0 : index
    %c70_205 = arith.constant 70 : index
    %503 = vector.load %arg4[%c0_204, %c70_205] : memref<2x358xf32, #tpu.memory_space<vmem>>, vector<1x256xf32>
    %504 = vector.broadcast %501 : f32 to vector<1x256xf32>
    %505 = arith.mulf %504, %503 : vector<1x256xf32>
    %c1_206 = arith.constant 1 : index
    %c70_207 = arith.constant 70 : index
    %506 = vector.load %arg4[%c1_206, %c70_207] : memref<2x358xf32, #tpu.memory_space<vmem>>, vector<1x256xf32>
    %507 = vector.broadcast %502 : f32 to vector<1x256xf32>
    %508 = arith.mulf %507, %506 : vector<1x256xf32>
    %509 = arith.addf %505, %508 : vector<1x256xf32>
    %cst_208 = arith.constant 0.000000e+00 : f32
    %510 = vector.broadcast %cst_208 : f32 to vector<1x256xf32>
    %511 = arith.select %91, %509, %510 : vector<1x256xi1>, vector<1x256xf32>
    %512 = arith.addf %500, %511 : vector<1x256xf32>
    %c35_209 = arith.constant 35 : index
    %513 = memref.load %arg2[%c35_209] : memref<99xf32, #tpu.memory_space<smem>>
    %c84 = arith.constant 84 : index
    %514 = memref.load %arg2[%c84] : memref<99xf32, #tpu.memory_space<smem>>
    %c0_210 = arith.constant 0 : index
    %c80_211 = arith.constant 80 : index
    %515 = vector.load %arg4[%c0_210, %c80_211] : memref<2x358xf32, #tpu.memory_space<vmem>>, vector<1x256xf32>
    %516 = vector.broadcast %513 : f32 to vector<1x256xf32>
    %517 = arith.mulf %516, %515 : vector<1x256xf32>
    %c1_212 = arith.constant 1 : index
    %c80_213 = arith.constant 80 : index
    %518 = vector.load %arg4[%c1_212, %c80_213] : memref<2x358xf32, #tpu.memory_space<vmem>>, vector<1x256xf32>
    %519 = vector.broadcast %514 : f32 to vector<1x256xf32>
    %520 = arith.mulf %519, %518 : vector<1x256xf32>
    %521 = arith.addf %517, %520 : vector<1x256xf32>
    %cst_214 = arith.constant 0.000000e+00 : f32
    %522 = vector.broadcast %cst_214 : f32 to vector<1x256xf32>
    %523 = arith.select %37, %521, %522 : vector<1x256xi1>, vector<1x256xf32>
    %524 = arith.addf %512, %523 : vector<1x256xf32>
    %c36_215 = arith.constant 36 : index
    %525 = memref.load %arg2[%c36_215] : memref<99xf32, #tpu.memory_space<smem>>
    %c85 = arith.constant 85 : index
    %526 = memref.load %arg2[%c85] : memref<99xf32, #tpu.memory_space<smem>>
    %c0_216 = arith.constant 0 : index
    %c81_217 = arith.constant 81 : index
    %527 = vector.load %arg4[%c0_216, %c81_217] : memref<2x358xf32, #tpu.memory_space<vmem>>, vector<1x256xf32>
    %528 = vector.broadcast %525 : f32 to vector<1x256xf32>
    %529 = arith.mulf %528, %527 : vector<1x256xf32>
    %c1_218 = arith.constant 1 : index
    %c81_219 = arith.constant 81 : index
    %530 = vector.load %arg4[%c1_218, %c81_219] : memref<2x358xf32, #tpu.memory_space<vmem>>, vector<1x256xf32>
    %531 = vector.broadcast %526 : f32 to vector<1x256xf32>
    %532 = arith.mulf %531, %530 : vector<1x256xf32>
    %533 = arith.addf %529, %532 : vector<1x256xf32>
    %cst_220 = arith.constant 0.000000e+00 : f32
    %534 = vector.broadcast %cst_220 : f32 to vector<1x256xf32>
    %535 = arith.select %46, %533, %534 : vector<1x256xi1>, vector<1x256xf32>
    %536 = arith.addf %524, %535 : vector<1x256xf32>
    %c37_221 = arith.constant 37 : index
    %537 = memref.load %arg2[%c37_221] : memref<99xf32, #tpu.memory_space<smem>>
    %c86 = arith.constant 86 : index
    %538 = memref.load %arg2[%c86] : memref<99xf32, #tpu.memory_space<smem>>
    %c0_222 = arith.constant 0 : index
    %c82_223 = arith.constant 82 : index
    %539 = vector.load %arg4[%c0_222, %c82_223] : memref<2x358xf32, #tpu.memory_space<vmem>>, vector<1x256xf32>
    %540 = vector.broadcast %537 : f32 to vector<1x256xf32>
    %541 = arith.mulf %540, %539 : vector<1x256xf32>
    %c1_224 = arith.constant 1 : index
    %c82_225 = arith.constant 82 : index
    %542 = vector.load %arg4[%c1_224, %c82_225] : memref<2x358xf32, #tpu.memory_space<vmem>>, vector<1x256xf32>
    %543 = vector.broadcast %538 : f32 to vector<1x256xf32>
    %544 = arith.mulf %543, %542 : vector<1x256xf32>
    %545 = arith.addf %541, %544 : vector<1x256xf32>
    %cst_226 = arith.constant 0.000000e+00 : f32
    %546 = vector.broadcast %cst_226 : f32 to vector<1x256xf32>
    %547 = arith.select %55, %545, %546 : vector<1x256xi1>, vector<1x256xf32>
    %548 = arith.addf %536, %547 : vector<1x256xf32>
    %c38_227 = arith.constant 38 : index
    %549 = memref.load %arg2[%c38_227] : memref<99xf32, #tpu.memory_space<smem>>
    %c87 = arith.constant 87 : index
    %550 = memref.load %arg2[%c87] : memref<99xf32, #tpu.memory_space<smem>>
    %c0_228 = arith.constant 0 : index
    %c83_229 = arith.constant 83 : index
    %551 = vector.load %arg4[%c0_228, %c83_229] : memref<2x358xf32, #tpu.memory_space<vmem>>, vector<1x256xf32>
    %552 = vector.broadcast %549 : f32 to vector<1x256xf32>
    %553 = arith.mulf %552, %551 : vector<1x256xf32>
    %c1_230 = arith.constant 1 : index
    %c83_231 = arith.constant 83 : index
    %554 = vector.load %arg4[%c1_230, %c83_231] : memref<2x358xf32, #tpu.memory_space<vmem>>, vector<1x256xf32>
    %555 = vector.broadcast %550 : f32 to vector<1x256xf32>
    %556 = arith.mulf %555, %554 : vector<1x256xf32>
    %557 = arith.addf %553, %556 : vector<1x256xf32>
    %cst_232 = arith.constant 0.000000e+00 : f32
    %558 = vector.broadcast %cst_232 : f32 to vector<1x256xf32>
    %559 = arith.select %64, %557, %558 : vector<1x256xi1>, vector<1x256xf32>
    %560 = arith.addf %548, %559 : vector<1x256xf32>
    %c39 = arith.constant 39 : index
    %561 = memref.load %arg2[%c39] : memref<99xf32, #tpu.memory_space<smem>>
    %c88 = arith.constant 88 : index
    %562 = memref.load %arg2[%c88] : memref<99xf32, #tpu.memory_space<smem>>
    %c0_233 = arith.constant 0 : index
    %c84_234 = arith.constant 84 : index
    %563 = vector.load %arg4[%c0_233, %c84_234] : memref<2x358xf32, #tpu.memory_space<vmem>>, vector<1x256xf32>
    %564 = vector.broadcast %561 : f32 to vector<1x256xf32>
    %565 = arith.mulf %564, %563 : vector<1x256xf32>
    %c1_235 = arith.constant 1 : index
    %c84_236 = arith.constant 84 : index
    %566 = vector.load %arg4[%c1_235, %c84_236] : memref<2x358xf32, #tpu.memory_space<vmem>>, vector<1x256xf32>
    %567 = vector.broadcast %562 : f32 to vector<1x256xf32>
    %568 = arith.mulf %567, %566 : vector<1x256xf32>
    %569 = arith.addf %565, %568 : vector<1x256xf32>
    %cst_237 = arith.constant 0.000000e+00 : f32
    %570 = vector.broadcast %cst_237 : f32 to vector<1x256xf32>
    %571 = arith.select %73, %569, %570 : vector<1x256xi1>, vector<1x256xf32>
    %572 = arith.addf %560, %571 : vector<1x256xf32>
    %c40 = arith.constant 40 : index
    %573 = memref.load %arg2[%c40] : memref<99xf32, #tpu.memory_space<smem>>
    %c89 = arith.constant 89 : index
    %574 = memref.load %arg2[%c89] : memref<99xf32, #tpu.memory_space<smem>>
    %c0_238 = arith.constant 0 : index
    %c85_239 = arith.constant 85 : index
    %575 = vector.load %arg4[%c0_238, %c85_239] : memref<2x358xf32, #tpu.memory_space<vmem>>, vector<1x256xf32>
    %576 = vector.broadcast %573 : f32 to vector<1x256xf32>
    %577 = arith.mulf %576, %575 : vector<1x256xf32>
    %c1_240 = arith.constant 1 : index
    %c85_241 = arith.constant 85 : index
    %578 = vector.load %arg4[%c1_240, %c85_241] : memref<2x358xf32, #tpu.memory_space<vmem>>, vector<1x256xf32>
    %579 = vector.broadcast %574 : f32 to vector<1x256xf32>
    %580 = arith.mulf %579, %578 : vector<1x256xf32>
    %581 = arith.addf %577, %580 : vector<1x256xf32>
    %cst_242 = arith.constant 0.000000e+00 : f32
    %582 = vector.broadcast %cst_242 : f32 to vector<1x256xf32>
    %583 = arith.select %82, %581, %582 : vector<1x256xi1>, vector<1x256xf32>
    %584 = arith.addf %572, %583 : vector<1x256xf32>
    %c41 = arith.constant 41 : index
    %585 = memref.load %arg2[%c41] : memref<99xf32, #tpu.memory_space<smem>>
    %c90 = arith.constant 90 : index
    %586 = memref.load %arg2[%c90] : memref<99xf32, #tpu.memory_space<smem>>
    %c0_243 = arith.constant 0 : index
    %c86_244 = arith.constant 86 : index
    %587 = vector.load %arg4[%c0_243, %c86_244] : memref<2x358xf32, #tpu.memory_space<vmem>>, vector<1x256xf32>
    %588 = vector.broadcast %585 : f32 to vector<1x256xf32>
    %589 = arith.mulf %588, %587 : vector<1x256xf32>
    %c1_245 = arith.constant 1 : index
    %c86_246 = arith.constant 86 : index
    %590 = vector.load %arg4[%c1_245, %c86_246] : memref<2x358xf32, #tpu.memory_space<vmem>>, vector<1x256xf32>
    %591 = vector.broadcast %586 : f32 to vector<1x256xf32>
    %592 = arith.mulf %591, %590 : vector<1x256xf32>
    %593 = arith.addf %589, %592 : vector<1x256xf32>
    %cst_247 = arith.constant 0.000000e+00 : f32
    %594 = vector.broadcast %cst_247 : f32 to vector<1x256xf32>
    %595 = arith.select %91, %593, %594 : vector<1x256xi1>, vector<1x256xf32>
    %596 = arith.addf %584, %595 : vector<1x256xf32>
    %c42 = arith.constant 42 : index
    %597 = memref.load %arg2[%c42] : memref<99xf32, #tpu.memory_space<smem>>
    %c91 = arith.constant 91 : index
    %598 = memref.load %arg2[%c91] : memref<99xf32, #tpu.memory_space<smem>>
    %c0_248 = arith.constant 0 : index
    %c96 = arith.constant 96 : index
    %599 = vector.load %arg4[%c0_248, %c96] : memref<2x358xf32, #tpu.memory_space<vmem>>, vector<1x256xf32>
    %600 = vector.broadcast %597 : f32 to vector<1x256xf32>
    %601 = arith.mulf %600, %599 : vector<1x256xf32>
    %c1_249 = arith.constant 1 : index
    %c96_250 = arith.constant 96 : index
    %602 = vector.load %arg4[%c1_249, %c96_250] : memref<2x358xf32, #tpu.memory_space<vmem>>, vector<1x256xf32>
    %603 = vector.broadcast %598 : f32 to vector<1x256xf32>
    %604 = arith.mulf %603, %602 : vector<1x256xf32>
    %605 = arith.addf %601, %604 : vector<1x256xf32>
    %cst_251 = arith.constant 0.000000e+00 : f32
    %606 = vector.broadcast %cst_251 : f32 to vector<1x256xf32>
    %607 = arith.select %37, %605, %606 : vector<1x256xi1>, vector<1x256xf32>
    %608 = arith.addf %596, %607 : vector<1x256xf32>
    %c43 = arith.constant 43 : index
    %609 = memref.load %arg2[%c43] : memref<99xf32, #tpu.memory_space<smem>>
    %c92 = arith.constant 92 : index
    %610 = memref.load %arg2[%c92] : memref<99xf32, #tpu.memory_space<smem>>
    %c0_252 = arith.constant 0 : index
    %c97 = arith.constant 97 : index
    %611 = vector.load %arg4[%c0_252, %c97] : memref<2x358xf32, #tpu.memory_space<vmem>>, vector<1x256xf32>
    %612 = vector.broadcast %609 : f32 to vector<1x256xf32>
    %613 = arith.mulf %612, %611 : vector<1x256xf32>
    %c1_253 = arith.constant 1 : index
    %c97_254 = arith.constant 97 : index
    %614 = vector.load %arg4[%c1_253, %c97_254] : memref<2x358xf32, #tpu.memory_space<vmem>>, vector<1x256xf32>
    %615 = vector.broadcast %610 : f32 to vector<1x256xf32>
    %616 = arith.mulf %615, %614 : vector<1x256xf32>
    %617 = arith.addf %613, %616 : vector<1x256xf32>
    %cst_255 = arith.constant 0.000000e+00 : f32
    %618 = vector.broadcast %cst_255 : f32 to vector<1x256xf32>
    %619 = arith.select %46, %617, %618 : vector<1x256xi1>, vector<1x256xf32>
    %620 = arith.addf %608, %619 : vector<1x256xf32>
    %c44 = arith.constant 44 : index
    %621 = memref.load %arg2[%c44] : memref<99xf32, #tpu.memory_space<smem>>
    %c93 = arith.constant 93 : index
    %622 = memref.load %arg2[%c93] : memref<99xf32, #tpu.memory_space<smem>>
    %c0_256 = arith.constant 0 : index
    %c98 = arith.constant 98 : index
    %623 = vector.load %arg4[%c0_256, %c98] : memref<2x358xf32, #tpu.memory_space<vmem>>, vector<1x256xf32>
    %624 = vector.broadcast %621 : f32 to vector<1x256xf32>
    %625 = arith.mulf %624, %623 : vector<1x256xf32>
    %c1_257 = arith.constant 1 : index
    %c98_258 = arith.constant 98 : index
    %626 = vector.load %arg4[%c1_257, %c98_258] : memref<2x358xf32, #tpu.memory_space<vmem>>, vector<1x256xf32>
    %627 = vector.broadcast %622 : f32 to vector<1x256xf32>
    %628 = arith.mulf %627, %626 : vector<1x256xf32>
    %629 = arith.addf %625, %628 : vector<1x256xf32>
    %cst_259 = arith.constant 0.000000e+00 : f32
    %630 = vector.broadcast %cst_259 : f32 to vector<1x256xf32>
    %631 = arith.select %55, %629, %630 : vector<1x256xi1>, vector<1x256xf32>
    %632 = arith.addf %620, %631 : vector<1x256xf32>
    %c45 = arith.constant 45 : index
    %633 = memref.load %arg2[%c45] : memref<99xf32, #tpu.memory_space<smem>>
    %c94 = arith.constant 94 : index
    %634 = memref.load %arg2[%c94] : memref<99xf32, #tpu.memory_space<smem>>
    %c0_260 = arith.constant 0 : index
    %c99 = arith.constant 99 : index
    %635 = vector.load %arg4[%c0_260, %c99] : memref<2x358xf32, #tpu.memory_space<vmem>>, vector<1x256xf32>
    %636 = vector.broadcast %633 : f32 to vector<1x256xf32>
    %637 = arith.mulf %636, %635 : vector<1x256xf32>
    %c1_261 = arith.constant 1 : index
    %c99_262 = arith.constant 99 : index
    %638 = vector.load %arg4[%c1_261, %c99_262] : memref<2x358xf32, #tpu.memory_space<vmem>>, vector<1x256xf32>
    %639 = vector.broadcast %634 : f32 to vector<1x256xf32>
    %640 = arith.mulf %639, %638 : vector<1x256xf32>
    %641 = arith.addf %637, %640 : vector<1x256xf32>
    %cst_263 = arith.constant 0.000000e+00 : f32
    %642 = vector.broadcast %cst_263 : f32 to vector<1x256xf32>
    %643 = arith.select %64, %641, %642 : vector<1x256xi1>, vector<1x256xf32>
    %644 = arith.addf %632, %643 : vector<1x256xf32>
    %c46 = arith.constant 46 : index
    %645 = memref.load %arg2[%c46] : memref<99xf32, #tpu.memory_space<smem>>
    %c95 = arith.constant 95 : index
    %646 = memref.load %arg2[%c95] : memref<99xf32, #tpu.memory_space<smem>>
    %c0_264 = arith.constant 0 : index
    %c100 = arith.constant 100 : index
    %647 = vector.load %arg4[%c0_264, %c100] : memref<2x358xf32, #tpu.memory_space<vmem>>, vector<1x256xf32>
    %648 = vector.broadcast %645 : f32 to vector<1x256xf32>
    %649 = arith.mulf %648, %647 : vector<1x256xf32>
    %c1_265 = arith.constant 1 : index
    %c100_266 = arith.constant 100 : index
    %650 = vector.load %arg4[%c1_265, %c100_266] : memref<2x358xf32, #tpu.memory_space<vmem>>, vector<1x256xf32>
    %651 = vector.broadcast %646 : f32 to vector<1x256xf32>
    %652 = arith.mulf %651, %650 : vector<1x256xf32>
    %653 = arith.addf %649, %652 : vector<1x256xf32>
    %cst_267 = arith.constant 0.000000e+00 : f32
    %654 = vector.broadcast %cst_267 : f32 to vector<1x256xf32>
    %655 = arith.select %73, %653, %654 : vector<1x256xi1>, vector<1x256xf32>
    %656 = arith.addf %644, %655 : vector<1x256xf32>
    %c47 = arith.constant 47 : index
    %657 = memref.load %arg2[%c47] : memref<99xf32, #tpu.memory_space<smem>>
    %c96_268 = arith.constant 96 : index
    %658 = memref.load %arg2[%c96_268] : memref<99xf32, #tpu.memory_space<smem>>
    %c0_269 = arith.constant 0 : index
    %c101 = arith.constant 101 : index
    %659 = vector.load %arg4[%c0_269, %c101] : memref<2x358xf32, #tpu.memory_space<vmem>>, vector<1x256xf32>
    %660 = vector.broadcast %657 : f32 to vector<1x256xf32>
    %661 = arith.mulf %660, %659 : vector<1x256xf32>
    %c1_270 = arith.constant 1 : index
    %c101_271 = arith.constant 101 : index
    %662 = vector.load %arg4[%c1_270, %c101_271] : memref<2x358xf32, #tpu.memory_space<vmem>>, vector<1x256xf32>
    %663 = vector.broadcast %658 : f32 to vector<1x256xf32>
    %664 = arith.mulf %663, %662 : vector<1x256xf32>
    %665 = arith.addf %661, %664 : vector<1x256xf32>
    %cst_272 = arith.constant 0.000000e+00 : f32
    %666 = vector.broadcast %cst_272 : f32 to vector<1x256xf32>
    %667 = arith.select %82, %665, %666 : vector<1x256xi1>, vector<1x256xf32>
    %668 = arith.addf %656, %667 : vector<1x256xf32>
    %c48_273 = arith.constant 48 : index
    %669 = memref.load %arg2[%c48_273] : memref<99xf32, #tpu.memory_space<smem>>
    %c97_274 = arith.constant 97 : index
    %670 = memref.load %arg2[%c97_274] : memref<99xf32, #tpu.memory_space<smem>>
    %c0_275 = arith.constant 0 : index
    %c102 = arith.constant 102 : index
    %671 = vector.load %arg4[%c0_275, %c102] : memref<2x358xf32, #tpu.memory_space<vmem>>, vector<1x256xf32>
    %672 = vector.broadcast %669 : f32 to vector<1x256xf32>
    %673 = arith.mulf %672, %671 : vector<1x256xf32>
    %c1_276 = arith.constant 1 : index
    %c102_277 = arith.constant 102 : index
    %674 = vector.load %arg4[%c1_276, %c102_277] : memref<2x358xf32, #tpu.memory_space<vmem>>, vector<1x256xf32>
    %675 = vector.broadcast %670 : f32 to vector<1x256xf32>
    %676 = arith.mulf %675, %674 : vector<1x256xf32>
    %677 = arith.addf %673, %676 : vector<1x256xf32>
    %cst_278 = arith.constant 0.000000e+00 : f32
    %678 = vector.broadcast %cst_278 : f32 to vector<1x256xf32>
    %679 = arith.select %91, %677, %678 : vector<1x256xi1>, vector<1x256xf32>
    %680 = arith.addf %668, %679 : vector<1x256xf32>
    %c98_279 = arith.constant 98 : index
    %681 = memref.load %arg2[%c98_279] : memref<99xf32, #tpu.memory_space<smem>>
    %682 = vector.broadcast %681 : f32 to vector<1x256xf32>
    %683 = arith.addf %680, %682 : vector<1x256xf32>
    %684 = arith.negf %683 : vector<1x256xf32>
    %685 = math.exp %684 : vector<1x256xf32>
    %cst_280 = arith.constant 1.000000e+00 : f32
    %686 = vector.broadcast %cst_280 : f32 to vector<1x256xf32>
    %687 = arith.addf %686, %685 : vector<1x256xf32>
    %688 = arith.divf %686, %687 : vector<1x256xf32>
    %689 = vector.broadcast %688 : vector<1x256xf32> to vector<32x256xf32>
    %690 = arith.mulf %1, %689 : vector<32x256xf32>
    %c0_281 = arith.constant 0 : index
    %c0_282 = arith.constant 0 : index
    %c0_283 = arith.constant 0 : index
    %691 = vector.load %arg3[%c0_281, %c0_282, %c0_283] : memref<1x32x256xf32, #tpu.memory_space<vmem>>, vector<1x32x256xf32>
    %692 = vector.shape_cast %691 : vector<1x32x256xf32> to vector<32x256xf32>
    %693 = vector.shape_cast %690 : vector<32x256xf32> to vector<1x32x256xf32>
    tpu.vector_store %arg3[%c0_281, %c0_282, %c0_283], %693 {strides = array<i32>} : memref<1x32x256xf32, #tpu.memory_space<vmem>>, vector<1x32x256xf32>,
    return
  }
  func.func @transform_0(%arg0: i32) -> (i32, i32, i32) {
    %c0_i32 = arith.constant 0 : i32
    %c0_i32_0 = arith.constant 0 : i32
    %c0_i32_1 = arith.constant 0 : i32
    return %arg0, %c0_i32, %c0_i32_0 : i32, i32, i32
  }
  func.func @transform_1(%arg0: i32) -> i32 {
    %c0_i32 = arith.constant 0 : i32
    %c0_i32_0 = arith.constant 0 : i32
    return %c0_i32 : i32
  }
  func.func @transform_2(%arg0: i32) -> (i32, i32, i32) {
    %c0_i32 = arith.constant 0 : i32
    %c0_i32_0 = arith.constant 0 : i32
    %c0_i32_1 = arith.constant 0 : i32
    return %arg0, %c0_i32, %c0_i32_0 : i32, i32, i32
  }
}

</mosaic_0001>

<bundles_post_ra>
// kernel: tpu_custom_call.1
= control target key start
LH: loop header
LB: loop body
LE: loop exit
PB: predicated region body
PF: predicated region fallthrough
CT: control target
= control target key end

     0   :  { %s3881_s0 = inlined_call_operand.hbm [shape: f32[2,32,256], index: 0, kind: input, shape index: {}]   ;;  %s3882_s1 = inlined_call_operand.vmem [shape: f32[99], index: 1, kind: input, shape index: {}]   ;;  %s3883_s2 = inlined_call_operand.hbm [shape: f32[2,32,256], index: 2, kind: output, shape index: {}]  }
   0x1   :  { %3892 = sst [smem:[#allocation14_spill]] %s3881_s0 }
   0x2   :  { %7 = vsyncpa [#allocation4], 0 }
   0x3   :  { %9 = vsyncpa [#allocation4 + $0x1], 0 }
   0x4   :  { %10 = vsyncpa [#allocation6], 0 }
   0x5   :  { %11 = vsyncpa [#allocation5], 0 }
   0x6   :  { %13 = vsyncpa [#allocation5 + $0x1], 0  ;;  %s2645_s9 = smov 0   ;;  %s2647_s10 = smov 0  }
   0x7   :  { %s2649_s11 = smov 0   ;;  %s2651_s12 = smov 0  }
   0x8 LB: > { %s2666_s13 = sadd.s32 4294967295, %s2570_s12   ;;  %s2207_s14 = sadd.s32 4294967294, %s2570_s12   ;;  %s2570_s12 = sphi %s2651_s12, %s3943_s12   ;;  %s2566_s11 = sphi %s2649_s11, %s3942_s11   ;;  %s2562_s10 = sphi %s2647_s10, %s3941_s10   ;;  %s2558_s9 = sphi %s2645_s9, %s3940_s9  }
   0x9   : > { %s2670_s15 = sadd.s32 1, %s2570_s12   ;;  %s26_s16 = sadd.s32 1, %s2566_s11 }
   0xa   : > { %s23_s17 = ssub.s32 %s2570_s12, %s2670_s15  ;;  %p33_p0 = scmp.ne.s32.totalorder %s2566_s11, %s2562_s10 }
   0xb   : > { %p24_p1 = scmp.eq.s32.totalorder %s23_s17, 0  ;;  %p34_p2 = scmp.eq.s32.totalorder %s2570_s12, 0 }
   0xc   : > { %p39_p3 = scmp.ne.s32.totalorder %s2562_s10, %s2558_s9  ;;  %p3885_p4 = scmp.eq.s32.totalorder %s2666_s13, 0 }
   0xd   : > { %s2682_s18 = scalar_select %p24_p1, %s2566_s11, %s26_s16  }
   0xe   : > { %p2684_p5 = por %p34_p2, %p33_p0  ;;  %p2690_p6 = por %p3885_p4, %p39_p3 }
   0xf   : > { %p84_p7 = scmp.eq.s32.totalorder %s2666_s13, 1  ;;  %p90_p8 = scmp.eq.s32.totalorder %s2207_s14, 1 }
  0x10   : > { %s3894_s20 = scalar_select %p2690_p6, 1, 0 }
  0x11   : > { %p2208_p9 = scmp.ge.s32.totalorder %s2570_s12, 1  ;;  %p97_p10 = scmp.lt.s32.totalorder %s2570_s12, 3 }
  0x12   : > { %p2697_p11 = por %p84_p7, %p33_p0  ;;  %p2701_p12 = por %p90_p8, %p39_p3 }
  0x13   : > { %p2705_p13 = pnand %p2208_p9, %p97_p10  ;;  %s110_s26 = sshll.u32 %s3882_s1, 4  ;;  %s111_s26 = int_to_ptr.vmem [resolvable:$true] %s110_s26 }
  0x14   : > { %s3895_s21 = scalar_select %p2697_p11, 1, 0 }
  0x15   : > { %s3896_s22 = scalar_select %p2701_p12, 1, 0 }
  0x16   : > { %p2333_p1 = pneg %p2705_p13  ;;  %p2346_p2 = scmp.lt.s32.totalorder %s2570_s12, 2 }
  0x17   : > { %s121_s28 = sand.u32 1, %s2566_s11   ;;  %s2455_s3 = scalar_lea.vmem %s111_s26, 16 }
  0x18   : > { %p2718_p7 = pnand %p2333_p1, %p3885_p4  ;;  %p2725_p3 = pnand %p2346_p2, %p2684_p5 }
  0x19   : > { %s2211_s30 = sshll.u32 %s121_s28, 6  ;;  %p2456_p8 = scmp.ne.s32.totalorder %s111_s26, %s2455_s3 }
  0x1a   : > { %p2457_p9 = pneg %p2718_p7  ;;  %p2463_p12 = scmp.lt.s32.totalorder %s111_s26, %s111_s26 }
  0x1b   : > { %p2464_p11 = scmp.lt.s32.totalorder %s2455_s3, %s2455_s3 }
  0x1c   : > { %p2458_p10 = pnand %p2457_p9, %p2456_p8 }
  0x1d   : > { %p2465_p1 = por %p2464_p11, %p2463_p12 }
  0x1e   : > { %p2459_p0 = pneg %p2458_p10 }
  0x20   : > { %p2466_p4 = pnand %p2465_p1, %p2459_p0 }
  0x22   : > { %2469 = shalt.err (!%p2466_p4)
}
  0x23   : > { %s2572_s4 = smov [#allocation7]   ;;  %s2323_s5 = sshll.u32 %s2570_s12, 10 }
  0x24   : > { %2336 = dma.vmem_to_smem (!%p2718_p7), %s111_s26, 16, %s2572_s4, [#allocation6]  }
  0x25   : > { %s125_s6 = scalar_lea.vmem [#allocation3], %s2211_s30  ;;  %s3900_s0 = sld [smem:[#allocation14_spill]] }
  0x26   : > { %s132_s7 = sshll.u32 %s125_s6, 4  ;;  %s2741_s17 = scalar_lea.sflag [#allocation4], %s121_s28  ;;  %s2739_s7 = int_to_ptr.vmem [resolvable:$true] %s132_s7 }
  0x27   : > { %p2472_p5 = pneg %p2725_p3 }
  0x2b   : > { %s2737_s16 = scalar_lea.hbm %s3900_s0, %s2323_s5  ;;  %s2475_s26 = scalar_lea.hbm %s3900_s0, 2048 }
  0x2c   : > { %s2470_s19 = scalar_lea.hbm %s2737_s16, 1024  ;;  %p2476_p0 = scmp.lt.u32.totalorder %s2737_s16, %s3900_s0 }
  0x2d   : > { %p2471_p4 = scmp.ne.s32.totalorder %s2737_s16, %s2470_s19  ;;  %p2477_p2 = scmp.lt.u32.totalorder %s2475_s26, %s2470_s19 }
  0x2e   : > { %p2479_p8 = scmp.lt.u32.totalorder %s2470_s19, %s2737_s16 }
  0x2f   : > { %p2473_p11 = pnand %p2472_p5, %p2471_p4  ;;  %p2478_p7 = por %p2477_p2, %p2476_p0 }
  0x31   : > { %p2474_p12 = pneg %p2473_p11  ;;  %p2480_p9 = por %p2479_p8, %p2478_p7 }
  0x33   : > { %p2481_p10 = pnand %p2480_p9, %p2474_p12 }
  0x35   : > { %2484 = shalt.err (!%p2481_p10)
}
  0x36   : > { %s2485_s28 = scalar_lea.vmem %s2739_s7, 1024  ;;  %s2573_s3 = smov [#allocation3]  }
  0x37   : > { %p2486_p1 = scmp.ne.s32.totalorder %s2739_s7, %s2485_s28  ;;  %s2490_s4 = sshll.u32 %s2573_s3, 4  ;;  %s2491_s4 = int_to_ptr.vmem [resolvable:$false] %s2490_s4 }
  0x38   : > { %s2492_s5 = scalar_lea.vmem %s2491_s4, 2048  ;;  %p2493_p6 = scmp.lt.s32.totalorder %s2739_s7, %s2491_s4 }
  0x39   : > { %p2488_p4 = pnand %p2486_p1, %p2472_p5  ;;  %p2494_p0 = scmp.lt.s32.totalorder %s2492_s5, %s2485_s28 }
  0x3b   : > { %p2489_p11 = pneg %p2488_p4  ;;  %p2495_p2 = por %p2494_p0, %p2493_p6 }
  0x3d   : > { %p2496_p7 = pnand %p2495_p2, %p2489_p11 }
  0x3f   : > { %2499 = shalt.err (!%p2496_p7)
}
  0x40   : > { %s2574_s6 = smov 256   ;;  %s2575_s8 = smov 16  }
  0x41   : > { %2340 = dma.hbm_to_vmem [thread:$0]  (!%p2725_p3), %s2737_s16, 1024, %s2739_s7, %s2741_s17, %s2574_s6, %s2574_s6, %s2575_s8  }
  0x42   : > { %144 = sbr.rel (%p2705_p13) target bundleno = 699 (0x2bb), region = 28 }
  0x49   : > { %s2772_s14 = sand.u32 1, %s2562_s10   ;;  %p3901_p6 = scmp.ne.s32.totalorder %s3894_s20, 0 }
  0x4a   : > { %s3887_s19 = sshll.u32 %s2772_s14, 6  ;;  %s147_s24 = scalar_lea.sflag [#allocation4], %s2772_s14 }
  0x4b   : > { %s2778_s25 = scalar_lea.vmem [#allocation3], %s3887_s19 }
  0x4c   : > { %2545 = dma.done.wait (%p3901_p6), %s147_s24, 1024  }
  0x4d   : > { %2547 = vsyncadd (%p3901_p6), %s147_s24, 4294966272  ;;  %p3902_p3 = scmp.eq.s32.totalorder %s2666_s13, 0 }
  0x4f   : > { %2549 = dma.done.wait (%p3902_p3), [#allocation6], 16   ;;  %p3903_p13 = pmov %p3902_p3 }
  0x51   : > { %2551 = vsyncadd (%p3903_p13), [#allocation6], 4294967280 }
  0x52   : > { %159 = sfence }
  0x53   : > { %v176_v0 = vld [vmem:[%s2778_s25] sm:$0xff]  ;;  %v177_v1 = vld [vmem:[%s2778_s25 + $0x8] sm:$0xff]  ;;  %v178_v2 = vld [vmem:[%s2778_s25 + $0x10] sm:$0xff]  ;;  %vm223_vm0 = vcmask 1041408   ;;  %vm224_vm1 = vcmask 1043458   ;;  %vm226_vm3 = vcmask 832516   ;;  %v235_v23 = vlaneseq }
  0x54   : > { %v179_v3 = vld [vmem:[%s2778_s25 + $0x18] sm:$0xff]  ;;  %v180_v4 = vld [vmem:[%s2778_s25 + $0x20] sm:$0xff]  ;;  %v181_v5 = vld [vmem:[%s2778_s25 + $0x28] sm:$0xff]  ;;  %v184_v6 = vadd.f32 %v178_v2, %v176_v0  ;;  %v2576_v25 = vmov 0.0   ;;  %v2577_v28 = vmov 1966171168  }
  0x55   : > { %v182_v7 = vld [vmem:[%s2778_s25 + $0x30] sm:$0xff]  ;;  %v183_v8 = vld [vmem:[%s2778_s25 + $0x38] sm:$0xff]  ;;  %v193_v9 = vadd.f32 %v179_v3, %v177_v1  ;;  %v205_v10 = vmax.f32 %v176_v0, %v180_v4  ;;  %v214_v11 = vmax.f32 %v177_v1, %v181_v5  ;;  %vm225_vm2 = vmor %vm224_vm1, %vm223_vm0  ;;  %v233_v29 = vunpack.c.l.s4 %v2577_v28  ;;  %s2578_s20 = smov 51   ;;  %s2220_s23 = sld [smem:[#allocation7 + $0x32]] }
  0x56   : > { %v206_v12 = vmax.f32 %v178_v2, %v182_v7  ;;  %v215_v13 = vmax.f32 %v179_v3, %v183_v8  ;;  %v185_v14 = vadd.f32 %v184_v6, %v180_v4  ;;  %vm227_vm4 = vmor %vm226_vm3, %vm225_vm2  ;;  %v236_v35 = vshrl.u32 %v235_v23, 7  ;;  %s2219_s29 = sld [smem:[#allocation7 + $0x1]]  ;;  %s2221_s7 = sld [smem:[#allocation7 + $0x2]] }
  0x57   : > { %v194_v15 = vadd.f32 %v193_v9, %v181_v5  ;;  %228 = vst.msk [vmem:[#allocation2] sm:$0x3f] %vm227_vm4, %v2576_v25  ;;  %v234_v39 = vunpack.c.0.s8 %v233_v29  ;;  %vm2798_vm5 = vcmp.ge.s32.totalorder %v235_v23, 51  ;;  %vm254_vm6 = vcmp.lt.s32.totalorder %v235_v23, 307  ;;  %s2222_s16 = sld [smem:[#allocation7 + $0x33]]  ;;  %s2224_s26 = sld [smem:[#allocation7 + $0x34]] }
  0x58   : > { %v207_v16 = vmax.f32 %v205_v10, %v206_v12  ;;  %v216_v17 = vmax.f32 %v214_v11, %v215_v13  ;;  %v186_v18 = vadd.f32 %v185_v14, %v182_v7  ;;  %vm249_vm7 = vcmask 416768   ;;  %vm255_vm8 = vmand %vm2798_vm5, %vm254_vm6  ;;  %s2223_s17 = sld [smem:[#allocation7 + $0x3]]  ;;  %s2225_s27 = sld [smem:[#allocation7 + $0x4]] }
  0x59   : > { %v195_v19 = vadd.f32 %v194_v15, %v183_v8  ;;  %v237_v48 = vsub.s32 %v234_v39, %v236_v35  ;;  %v2807_v6 = vsub.s32 0, %v236_v35  ;;  %v2811_v9 = vsub.s32 2, %v236_v35  ;;  %s2226_s30 = sld [smem:[#allocation7 + $0x35]]  ;;  %s2579_s3 = smov 127  }
  0x5a   : > { %v208_v20 = vrot.slane %v207_v16, 4  ;;  %v217_v21 = vrot.slane %v216_v17, 4  ;;  %v187_v22 = vrot.slane %v186_v18, 4  ;;  %s2227_s28 = sld [smem:[#allocation7 + $0x5]]  ;;  %s2228_s4 = sld [smem:[#allocation7 + $0x36]]  ;;  %vm414_vm13 = vcmask 1039360  }
  0x5b   : > { %v196_v24 = vrot.slane %v195_v19, 4  ;;  %v392_v4 = vstv %s2220_s23  ;;  %s2580_s5 = smov 126   ;;  %s2229_s6 = sld [smem:[#allocation7 + $0x6]]  ;;  %vm449_vm15 = vcmask 1031168   ;;  %vm484_vm1 = vcmask 1022976  }
  0x5c   : > { %v209_v26 = vmax.f32 %v207_v16, %v208_v20  ;;  %v218_v27 = vmax.f32 %v216_v17, %v217_v21  ;;  %v188_v30 = vadd.f32 %v187_v22, %v186_v18  ;;  %v389_v3 = vstv %s2219_s29  ;;  %s2581_s8 = smov 125   ;;  %s2230_s24 = sld [smem:[#allocation7 + $0x37]] }
  0x5d   : > { %v197_v31 = vadd.f32 %v196_v24, %v195_v19  ;;  %v425_v5 = vstv %s2221_s7  ;;  %v427_v8 = vstv %s2222_s16  ;;  %v2817_v16 = vsub.s32 1, %v236_v35  ;;  %s2232_s23 = sld [smem:[#allocation7 + $0x38]]  ;;  %s2582_s29 = smov 124  }
  0x5e   : > { %v210_v32 = vrot.slane %v209_v26, 2  ;;  %v219_v33 = vrot.slane %v218_v27, 2  ;;  %v189_v34 = vrot.slane %v188_v30, 2  ;;  %v460_v13 = vstv %s2223_s17  ;;  %s2233_s7 = sld [smem:[#allocation7 + $0x8]]  ;;  %s2583_s16 = smov 123  }
  0x5f   : > { %v198_v36 = vrot.slane %v197_v31, 2  ;;  %v462_v17 = vstv %s2224_s26  ;;  %v497_v28 = vstv %s2226_s30  ;;  %s2234_s17 = sld [smem:[#allocation7 + $0x39]]  ;;  %s2584_s30 = smov 122   ;;  %vm519_vm2 = vcmask 1014784  }
  0x60   : > { %v211_v37 = vmax.f32 %v209_v26, %v210_v32  ;;  %v220_v38 = vmax.f32 %v218_v27, %v219_v33  ;;  %v190_v40 = vadd.f32 %v189_v34, %v188_v30  ;;  %v495_v27 = vstv %s2225_s27  ;;  %s2235_s26 = sld [smem:[#allocation7 + $0x9]]  ;;  %s2236_s27 = sld [smem:[#allocation7 + $0x3a]] }
  0x61   : > { %v199_v41 = vadd.f32 %v198_v36, %v197_v31  ;;  %v530_v32 = vstv %s2227_s28  ;;  %v532_v34 = vstv %s2228_s4  ;;  %s2237_s28 = sld [smem:[#allocation7 + $0xa]]  ;;  %s2238_s4 = sld [smem:[#allocation7 + $0x3b]]  ;;  %vm554_vm5 = vcmask 1006592  }
  0x62   : > { %v212_v42 = vrot.slane %v211_v37, 1  ;;  %v221_v43 = vrot.slane %v220_v38, 1  ;;  %v191_v44 = vrot.slane %v190_v40, 1  ;;  %s2606_s19 = smov 64   ;;  %s3103_s0 = sld [smem:[#allocation7 + $0x24]]  ;;  %vm589_vm6 = vcmask 998400  }
  0x63   : > { %v200_v45 = vrot.slane %v199_v41, 1  ;;  %p3937_p12 = scmp.ne.s32.totalorder %s3895_s21, 0 }
  0x64   : > { %v213_v46 = vmax.f32 %v211_v37, %v212_v42  ;;  %v222_v47 = vmax.f32 %v220_v38, %v221_v43  ;;  %v192_v49 = vadd.f32 %v191_v44, %v190_v40  ;;  %v565_v43 = vstv %s2229_s6  ;;  %s2240_s6 = sld [smem:[#allocation7 + $0x3c]] }
  0x65   : > { %v201_v50 = vadd.f32 %v200_v45, %v199_v41  ;;  %v567_v44 = vstv %s2230_s24  ;;  %v635_v59 = vstv %s2233_s7  ;;  %s2241_s24 = sld [smem:[#allocation7 + $0xc]]  ;;  %s2244_s7 = sld [smem:[#allocation7 + $0x3e]] }
  0x66   : > { %v259_v51 = vcombine.low %v213_v46, %v222_v47  ;;  %v203_v52 = vmul.f32 0.03125, %v192_v49 }
  0x67   : > { %v204_v53 = vmul.f32 0.03125, %v201_v50  ;;  %v602_v50 = vstv %s2232_s23  ;;  %s2242_s23 = sld [smem:[#allocation7 + $0x3d]] }
  0x68   : > { %v266_v54 = vrot.slane %v259_v51, %v237_v48 }
  0x69   : > { %v231_v55 = vcombine.low %v203_v52, %v204_v53 }
  0x6a   : > { %v273_v56 = vrot.slane %v266_v54, %v237_v48 }
  0x6b   : > { %v238_v57 = vrot.slane %v231_v55, %v237_v48 }
  0x6c   : > { %274 = vrot.lane.b32.xlu0 %v273_v56, %s2578_s20 }
  0x6d   : > { %v245_v58 = vrot.slane %v238_v57, %v237_v48 }
  0x70   : > { %246 = vrot.lane.b32.xlu0 %v245_v58, %s2578_s20  ;;  %s2231_s20 = sld [smem:[#allocation7 + $0x7]] }
  0x76   : > { %v600_v48 = vstv %s2231_s20  ;;  %s2587_s20 = smov 110  }
  0xde   : > { %v275_v60 = vpop.permute.xlu0 %274 }
  0xdf   : > { %v276_v61 = vrot.slane %v275_v60, 7 }
  0xe1   : > { %v277_v62 = vsel %vm249_vm7, %v276_v61, %v275_v60  ;;  %v637_v60 = vstv %s2234_s17  ;;  %s2245_s17 = sld [smem:[#allocation7 + $0xe]] }
  0xe2   : > { %280 = vst.msk [vmem:[#allocation2 + $0x1] ss:$2 sm:$0x7] %vm255_vm8, %v277_v62  ;;  %v247_v63 = vpop.permute.xlu0 %246 }
  0xe3   : > { %v248_v0 = vrot.slane %v247_v63, 7 }
  0xe5   : > { %v250_v1 = vsel %vm249_vm7, %v248_v0, %v247_v63  ;;  %v670_v0 = vstv %s2235_s26  ;;  %s2589_s26 = smov 108  }
  0xe6   : > { %256 = vst.msk [vmem:[#allocation2] ss:$2 sm:$0x7] %vm255_vm8, %v250_v1 }
  0xe9   : > { %v2805_v2 = vld [vmem:[#allocation2 + $0x1] ss:$2 sm:$0x7] }
  0xea   : > { %v393_v11 = vmul.f32 %v392_v4, %v2805_v2  ;;  %v428_v15 = vmul.f32 %v427_v8, %v2805_v2  ;;  %v463_v22 = vmul.f32 %v462_v17, %v2805_v2  ;;  %v498_v33 = vmul.f32 %v497_v28, %v2805_v2 }
  0xeb   : > { %v533_v39 = vmul.f32 %v532_v34, %v2805_v2  ;;  %v568_v49 = vmul.f32 %v567_v44, %v2805_v2  ;;  %v603_v55 = vmul.f32 %v602_v50, %v2805_v2  ;;  %v638_v1 = vmul.f32 %v637_v60, %v2805_v2 }
  0xec   : > { %v707_v17 = vstv %s2238_s4  ;;  %v777_v34 = vstv %s2242_s23  ;;  %s2249_s4 = sld [smem:[#allocation7 + $0x10]]  ;;  %s2253_s23 = sld [smem:[#allocation7 + $0x12]] }
  0xed   : > { %v2809_v7 = vld [vmem:[#allocation2] ss:$2 sm:$0x7] }
  0xee   : > { %v390_v10 = vmul.f32 %v389_v3, %v2809_v7  ;;  %v426_v12 = vmul.f32 %v425_v5, %v2809_v7  ;;  %v461_v21 = vmul.f32 %v460_v13, %v2809_v7  ;;  %v496_v31 = vmul.f32 %v495_v27, %v2809_v7 }
  0xef   : > { %v531_v38 = vmul.f32 %v530_v32, %v2809_v7  ;;  %v566_v47 = vmul.f32 %v565_v43, %v2809_v7  ;;  %v601_v54 = vmul.f32 %v600_v48, %v2809_v7  ;;  %v636_v63 = vmul.f32 %v635_v59, %v2809_v7 }
  0xf0   : > { %v394_v14 = vadd.f32 %v393_v11, %v390_v10  ;;  %v429_v20 = vadd.f32 %v428_v15, %v426_v12  ;;  %v464_v26 = vadd.f32 %v463_v22, %v461_v21  ;;  %v499_v37 = vadd.f32 %v498_v33, %v496_v31 }
  0xf1   : > { %v534_v42 = vadd.f32 %v533_v39, %v531_v38  ;;  %v569_v53 = vadd.f32 %v568_v49, %v566_v47  ;;  %v604_v58 = vadd.f32 %v603_v55, %v601_v54  ;;  %v672_v3 = vstv %s2236_s27  ;;  %s2246_s27 = sld [smem:[#allocation7 + $0x3f]] }
  0xf2   : > { %v407_v18 = vrot.slane %v394_v14, %v2811_v9  ;;  %v399_v19 = vrot.slane %v394_v14, %v2807_v6  ;;  %v438_v24 = vrot.slane %v429_v20, %v2817_v16  ;;  %v403_v25 = vrot.slane %v394_v14, %v2817_v16 }
  0xf3   : > { %v469_v29 = vrot.slane %v464_v26, %v2807_v6  ;;  %v434_v30 = vrot.slane %v429_v20, %v2807_v6  ;;  %v477_v35 = vrot.slane %v464_v26, %v2811_v9  ;;  %v442_v36 = vrot.slane %v429_v20, %v2811_v9 }
  0xf4   : > { %412 = vrot.lane.b32.xlu0 %v407_v18, %s2579_s3  ;;  %408 = vrot.lane.b32.xlu1 %v399_v19, %s2579_s3  ;;  %v508_v40 = vrot.slane %v499_v37, %v2817_v16  ;;  %v473_v41 = vrot.slane %v464_v26, %v2817_v16  ;;  %v539_v45 = vrot.slane %v534_v42, %v2807_v6  ;;  %v705_v15 = vstv %s2237_s28  ;;  %s2248_s28 = sld [smem:[#allocation7 + $0x40]] }
  0xf5   : > { %v504_v46 = vrot.slane %v499_v37, %v2807_v6  ;;  %v547_v51 = vrot.slane %v534_v42, %v2811_v9  ;;  %v512_v52 = vrot.slane %v499_v37, %v2811_v9  ;;  %v578_v56 = vrot.slane %v569_v53, %v2817_v16 }
  0xf6   : > { %v543_v57 = vrot.slane %v534_v42, %v2817_v16  ;;  %v609_v61 = vrot.slane %v604_v58, %v2807_v6  ;;  %v574_v62 = vrot.slane %v569_v53, %v2807_v6  ;;  %v617_v4 = vrot.slane %v604_v58, %v2811_v9 }
  0xf7   : > { %v582_v5 = vrot.slane %v569_v53, %v2811_v9  ;;  %v639_v8 = vadd.f32 %v638_v1, %v636_v63  ;;  %v671_v10 = vmul.f32 %v670_v0, %v2809_v7  ;;  %v673_v11 = vmul.f32 %v672_v3, %v2805_v2 }
  0xf8   : > { %445 = vrot.lane.b32.xlu0 %v438_v24, %s2580_s5  ;;  %410 = vrot.lane.b32.xlu1 %v403_v25, %s2579_s3  ;;  %s2585_s3 = smov 112   ;;  %v613_v13 = vrot.slane %v604_v58, %v2817_v16  ;;  %v706_v20 = vmul.f32 %v705_v15, %v2809_v7  ;;  %v708_v22 = vmul.f32 %v707_v17, %v2805_v2  ;;  %v742_v24 = vstv %s2240_s6  ;;  %s2250_s6 = sld [smem:[#allocation7 + $0x41]] }
  0xf9   : > { %v648_v12 = vrot.slane %v639_v8, %v2817_v16  ;;  %v674_v14 = vadd.f32 %v673_v11, %v671_v10  ;;  %v644_v19 = vrot.slane %v639_v8, %v2807_v6  ;;  %v652_v26 = vrot.slane %v639_v8, %v2811_v9 }
  0xfa   : > { %v709_v27 = vadd.f32 %v708_v22, %v706_v20  ;;  %v775_v33 = vstv %s2241_s24  ;;  %v778_v39 = vmul.f32 %v777_v34, %v2805_v2  ;;  %v845_v49 = vstv %s2245_s17  ;;  %s2252_s24 = sld [smem:[#allocation7 + $0x42]]  ;;  %s2256_s17 = sld [smem:[#allocation7 + $0x44]] }
  0xfb   : > { %v679_v18 = vrot.slane %v674_v14, %v2807_v6  ;;  %v687_v25 = vrot.slane %v674_v14, %v2811_v9  ;;  %v683_v31 = vrot.slane %v674_v14, %v2817_v16  ;;  %v776_v37 = vmul.f32 %v775_v33, %v2809_v7 }
  0xfc   : > { %478 = vrot.lane.b32.xlu0 %v469_v29, %s2581_s8  ;;  %443 = vrot.lane.b32.xlu1 %v434_v30, %s2580_s5  ;;  %v743_v29 = vmul.f32 %v742_v24, %v2805_v2  ;;  %v718_v30 = vrot.slane %v709_v27, %v2817_v16  ;;  %v722_v42 = vrot.slane %v709_v27, %v2811_v9  ;;  %v847_v50 = vstv %s2246_s27  ;;  %s2257_s27 = sld [smem:[#allocation7 + $0x14]] }
  0xfd   : > { %v779_v43 = vadd.f32 %v778_v39, %v776_v37  ;;  %v846_v53 = vmul.f32 %v845_v49, %v2809_v7  ;;  %v848_v55 = vmul.f32 %v847_v50, %v2805_v2  ;;  %v915_v1 = vstv %s2249_s4  ;;  %s2260_s4 = sld [smem:[#allocation7 + $0x46]] }
  0xfe   : > { %v917_v3 = vstv %s2250_s6  ;;  %v916_v8 = vmul.f32 %v915_v1, %v2809_v7  ;;  %v985_v22 = vstv %s2253_s23  ;;  %s2261_s6 = sld [smem:[#allocation7 + $0x16]]  ;;  %s2915_s23 = sld [smem:[#allocation7 + $0x48]] }
  0xff   : > { %v792_v58 = vrot.slane %v779_v43, %v2811_v9  ;;  %v849_v59 = vadd.f32 %v848_v55, %v846_v53  ;;  %v918_v11 = vmul.f32 %v917_v3, %v2805_v2 }
 0x100   : > { %482 = vrot.lane.b32.xlu0 %v477_v35, %s2581_s8  ;;  %447 = vrot.lane.b32.xlu1 %v442_v36, %s2580_s5  ;;  %s2239_s5 = sld [smem:[#allocation7 + $0xb]]  ;;  %v714_v36 = vrot.slane %v709_v27, %v2807_v6  ;;  %v986_v27 = vmul.f32 %v985_v22, %v2809_v7 }
 0x101   : > { %v862_v14 = vrot.slane %v849_v59, %v2811_v9  ;;  %v919_v15 = vadd.f32 %v918_v11, %v916_v8 }
 0x102   : > { %v1055_v39 = vstv %s2257_s27  ;;  %s2943_s27 = sld [smem:[#allocation7 + $0x4a]] }
 0x104   : > { %515 = vrot.lane.b32.xlu0 %v508_v40, %s2582_s29  ;;  %480 = vrot.lane.b32.xlu1 %v473_v41, %s2581_s8  ;;  %s2586_s8 = smov 111   ;;  %v812_v40 = vstv %s2244_s7  ;;  %s2254_s7 = sld [smem:[#allocation7 + $0x43]]  ;;  %v1125_v55 = vstv %s2261_s6 }
 0x105   : > { %s2977_s6 = sld [smem:[#allocation7 + $0x4c]] }
 0x106   : > { %v740_v21 = vstv %s2239_s5  ;;  %s2591_s5 = smov 106  }
 0x107   : > { %v741_v28 = vmul.f32 %v740_v21, %v2809_v7 }
 0x108   : > { %548 = vrot.lane.b32.xlu0 %v539_v45, %s2583_s16  ;;  %513 = vrot.lane.b32.xlu1 %v504_v46, %s2582_s29  ;;  %v813_v45 = vmul.f32 %v812_v40, %v2805_v2  ;;  %v788_v46 = vrot.slane %v779_v43, %v2817_v16 }
 0x109   : > { %v744_v32 = vadd.f32 %v743_v29, %v741_v28 }
 0x10a   : > { %v987_v24 = vstv %s2254_s7  ;;  %s2927_s7 = sld [smem:[#allocation7 + $0x18]] }
 0x10b   : > { %v749_v35 = vrot.slane %v744_v32, %v2807_v6  ;;  %v757_v41 = vrot.slane %v744_v32, %v2811_v9  ;;  %v753_v47 = vrot.slane %v744_v32, %v2817_v16  ;;  %v988_v29 = vmul.f32 %v987_v24, %v2805_v2 }
 0x10c   : > { %552 = vrot.lane.b32.xlu0 %v547_v51, %s2583_s16  ;;  %517 = vrot.lane.b32.xlu1 %v512_v52, %s2582_s29  ;;  %s2243_s29 = sld [smem:[#allocation7 + $0xd]]  ;;  %v784_v52 = vrot.slane %v779_v43, %v2807_v6  ;;  %v932_v32 = vrot.slane %v919_v15, %v2811_v9  ;;  %v1056_v43 = vmul.f32 %v1055_v39, %v2809_v7 }
 0x10d   : > { %v989_v33 = vadd.f32 %v988_v29, %v986_v27 }
 0x110   : > { %585 = vrot.lane.b32.xlu0 %v578_v56, %s2584_s30  ;;  %550 = vrot.lane.b32.xlu1 %v543_v57, %s2583_s16  ;;  %s2588_s16 = smov 109   ;;  %v882_v56 = vstv %s2248_s28  ;;  %s2258_s28 = sld [smem:[#allocation7 + $0x45]] }
 0x112   : > { %v810_v38 = vstv %s2243_s29  ;;  %s2593_s29 = smov 95  }
 0x113   : > { %v811_v44 = vmul.f32 %v810_v38, %v2809_v7 }
 0x114   : > { %618 = vrot.lane.b32.xlu0 %v609_v61, %s2585_s3  ;;  %583 = vrot.lane.b32.xlu1 %v574_v62, %s2584_s30  ;;  %v883_v61 = vmul.f32 %v882_v56, %v2805_v2  ;;  %v858_v62 = vrot.slane %v849_v59, %v2817_v16 }
 0x115   : > { %v814_v48 = vadd.f32 %v813_v45, %v811_v44 }
 0x116   : > { %v1057_v40 = vstv %s2258_s28  ;;  %s2961_s28 = sld [smem:[#allocation7 + $0x1a]] }
 0x117   : > { %v819_v51 = vrot.slane %v814_v48, %v2807_v6  ;;  %v827_v57 = vrot.slane %v814_v48, %v2811_v9  ;;  %v823_v63 = vrot.slane %v814_v48, %v2817_v16  ;;  %v1058_v45 = vmul.f32 %v1057_v40, %v2805_v2 }
 0x118   : > { %622 = vrot.lane.b32.xlu0 %v617_v4, %s2585_s3  ;;  %587 = vrot.lane.b32.xlu1 %v582_v5, %s2584_s30  ;;  %s2247_s30 = sld [smem:[#allocation7 + $0xf]]  ;;  %v854_v5 = vrot.slane %v849_v59, %v2807_v6  ;;  %v1002_v48 = vrot.slane %v989_v33, %v2811_v9 }
 0x119   : > { %v1059_v49 = vadd.f32 %v1058_v45, %v1056_v43 }
 0x11c   : > { %655 = vrot.lane.b32.xlu0 %v648_v12, %s2586_s8  ;;  %620 = vrot.lane.b32.xlu1 %v613_v13, %s2585_s3  ;;  %s2590_s3 = smov 107   ;;  %v952_v12 = vstv %s2252_s24  ;;  %s2262_s24 = sld [smem:[#allocation7 + $0x47]] }
 0x11e   : > { %v880_v54 = vstv %s2247_s30  ;;  %s2595_s30 = smov 93  }
 0x11f   : > { %v881_v60 = vmul.f32 %v880_v54, %v2809_v7 }
 0x120   : > { %688 = vrot.lane.b32.xlu0 %v679_v18, %s2587_s20  ;;  %653 = vrot.lane.b32.xlu1 %v644_v19, %s2586_s8  ;;  %v953_v18 = vmul.f32 %v952_v12, %v2805_v2  ;;  %v928_v19 = vrot.slane %v919_v15, %v2817_v16 }
 0x121   : > { %v884_v0 = vadd.f32 %v883_v61, %v881_v60  ;;  %v1064_v60 = vrot.slane %v1059_v49, %v2807_v6  ;;  %v1126_v61 = vmul.f32 %v1125_v55, %v2809_v7 }
 0x122   : > { %v1127_v56 = vstv %s2262_s24  ;;  %s2995_s24 = sld [smem:[#allocation7 + $0x1c]] }
 0x123   : > { %v889_v4 = vrot.slane %v884_v0, %v2807_v6  ;;  %v897_v13 = vrot.slane %v884_v0, %v2811_v9  ;;  %v893_v20 = vrot.slane %v884_v0, %v2817_v16  ;;  %v1162_v0 = vstv %s2915_s23  ;;  %s2999_s23 = sld [smem:[#allocation7 + $0x4d]] }
 0x124   : > { %692 = vrot.lane.b32.xlu0 %v687_v25, %s2587_s20  ;;  %657 = vrot.lane.b32.xlu1 %v652_v26, %s2586_s8  ;;  %s2251_s8 = sld [smem:[#allocation7 + $0x11]]  ;;  %v924_v26 = vrot.slane %v919_v15, %v2807_v6  ;;  %v1163_v11 = vmul.f32 %v1162_v0, %v2805_v2 }
 0x128   : > { %725 = vrot.lane.b32.xlu0 %v718_v30, %s2588_s16  ;;  %690 = vrot.lane.b32.xlu1 %v683_v31, %s2587_s20  ;;  %s2592_s20 = smov 96   ;;  %v1022_v30 = vstv %s2256_s17  ;;  %s2931_s17 = sld [smem:[#allocation7 + $0x49]] }
 0x12a   : > { %v950_v10 = vstv %s2251_s8  ;;  %s2597_s8 = smov 91  }
 0x12b   : > { %v951_v17 = vmul.f32 %v950_v10, %v2809_v7 }
 0x12c   : > { %758 = vrot.lane.b32.xlu0 %v749_v35, %s2589_s26  ;;  %723 = vrot.lane.b32.xlu1 %v714_v36, %s2588_s16  ;;  %v1023_v35 = vmul.f32 %v1022_v30, %v2805_v2  ;;  %v998_v36 = vrot.slane %v989_v33, %v2817_v16 }
 0x12d   : > { %v954_v21 = vadd.f32 %v953_v18, %v951_v17  ;;  %v1195_v18 = vstv %s2927_s7  ;;  %s3011_s7 = sld [smem:[#allocation7 + $0x4e]] }
 0x12f   : > { %v959_v25 = vrot.slane %v954_v21, %v2807_v6  ;;  %v967_v31 = vrot.slane %v954_v21, %v2811_v9  ;;  %v963_v37 = vrot.slane %v954_v21, %v2817_v16 }
 0x130   : > { %762 = vrot.lane.b32.xlu0 %v757_v41, %s2589_s26  ;;  %727 = vrot.lane.b32.xlu1 %v722_v42, %s2588_s16  ;;  %s2255_s16 = sld [smem:[#allocation7 + $0x13]]  ;;  %v994_v42 = vrot.slane %v989_v33, %v2807_v6 }
 0x134   : > { %795 = vrot.lane.b32.xlu0 %v788_v46, %s2590_s3  ;;  %760 = vrot.lane.b32.xlu1 %v753_v47, %s2589_s26  ;;  %s2594_s26 = smov 94   ;;  %v1092_v46 = vstv %s2260_s4  ;;  %s2965_s4 = sld [smem:[#allocation7 + $0x4b]] }
 0x136   : > { %v1020_v28 = vstv %s2255_s16  ;;  %s2599_s16 = smov 80  }
 0x137   : > { %v1021_v34 = vmul.f32 %v1020_v28, %v2809_v7  ;;  %v1232_v28 = vstv %s2943_s27  ;;  %s3035_s27 = sld [smem:[#allocation7 + $0x31]] }
 0x138   : > { %828 = vrot.lane.b32.xlu0 %v819_v51, %s2591_s5  ;;  %793 = vrot.lane.b32.xlu1 %v784_v52, %s2590_s3  ;;  %v1093_v51 = vmul.f32 %v1092_v46, %v2805_v2  ;;  %v1068_v52 = vrot.slane %v1059_v49, %v2817_v16 }
 0x139   : > { %v1024_v38 = vadd.f32 %v1023_v35, %v1021_v34  ;;  %v1233_v35 = vmul.f32 %v1232_v28, %v2805_v2 }
 0x13b   : > { %v1029_v41 = vrot.slane %v1024_v38, %v2807_v6  ;;  %v1037_v47 = vrot.slane %v1024_v38, %v2811_v9  ;;  %v1033_v53 = vrot.slane %v1024_v38, %v2817_v16 }
 0x13c   : > { %832 = vrot.lane.b32.xlu0 %v827_v57, %s2591_s5  ;;  %797 = vrot.lane.b32.xlu1 %v792_v58, %s2590_s3  ;;  %s2259_s3 = sld [smem:[#allocation7 + $0x15]] }
 0x140   : > { %865 = vrot.lane.b32.xlu0 %v858_v62, %s2592_s20  ;;  %830 = vrot.lane.b32.xlu1 %v823_v63, %s2591_s5  ;;  %s2596_s5 = smov 92   ;;  %v1128_v63 = vmul.f32 %v1127_v56, %v2805_v2 }
 0x142   : > { %v1090_v44 = vstv %s2259_s3  ;;  %v1129_v8 = vadd.f32 %v1128_v63, %v1126_v61  ;;  %s2601_s3 = smov 78  }
 0x143   : > { %v1091_v50 = vmul.f32 %v1090_v44, %v2809_v7 }
 0x144   : > { %898 = vrot.lane.b32.xlu0 %v889_v4, %s2593_s29  ;;  %863 = vrot.lane.b32.xlu1 %v854_v5, %s2592_s20  ;;  %v1072_v5 = vrot.slane %v1059_v49, %v2811_v9  ;;  %v1134_v24 = vrot.slane %v1129_v8, %v2807_v6 }
 0x145   : > { %v1094_v54 = vadd.f32 %v1093_v51, %v1091_v50  ;;  %v1302_v50 = vstv %s2977_s6  ;;  %s3060_s6 = sld [smem:[#allocation7 + $0x53]] }
 0x147   : > { %v1099_v59 = vrot.slane %v1094_v54, %v2807_v6  ;;  %v1107_v4 = vrot.slane %v1094_v54, %v2811_v9  ;;  %v1103_v15 = vrot.slane %v1094_v54, %v2817_v16 }
 0x148   : > { %902 = vrot.lane.b32.xlu0 %v897_v13, %s2593_s29  ;;  %867 = vrot.lane.b32.xlu1 %v862_v14, %s2592_s20  ;;  %s2912_s20 = sld [smem:[#allocation7 + $0x17]]  ;;  %v1138_v14 = vrot.slane %v1129_v8, %v2817_v16 }
 0x14c   : > { %935 = vrot.lane.b32.xlu0 %v928_v19, %s2594_s26  ;;  %900 = vrot.lane.b32.xlu1 %v893_v20, %s2593_s29  ;;  %s2598_s29 = smov 90   ;;  %v1197_v19 = vstv %s2931_s17  ;;  %s3022_s17 = sld [smem:[#allocation7]] }
 0x14d   : > { %v1198_v27 = vmul.f32 %v1197_v19, %v2805_v2 }
 0x14e   : > { %v1160_v62 = vstv %s2912_s20  ;;  %s2603_s20 = smov 76  }
 0x14f   : > { %v1161_v10 = vmul.f32 %v1160_v62, %v2809_v7 }
 0x150   : > { %968 = vrot.lane.b32.xlu0 %v959_v25, %s2595_s30  ;;  %933 = vrot.lane.b32.xlu1 %v924_v26, %s2594_s26  ;;  %v1196_v25 = vmul.f32 %v1195_v18, %v2809_v7 }
 0x151   : > { %v1164_v17 = vadd.f32 %v1163_v11, %v1161_v10 }
 0x152   : > { %v1199_v33 = vadd.f32 %v1198_v27, %v1196_v25 }
 0x153   : > { %v1169_v22 = vrot.slane %v1164_v17, %v2807_v6  ;;  %v1173_v39 = vrot.slane %v1164_v17, %v2817_v16 }
 0x154   : > { %972 = vrot.lane.b32.xlu0 %v967_v31, %s2595_s30  ;;  %937 = vrot.lane.b32.xlu1 %v932_v32, %s2594_s26  ;;  %s2940_s26 = sld [smem:[#allocation7 + $0x19]]  ;;  %v1177_v31 = vrot.slane %v1164_v17, %v2811_v9  ;;  %v1142_v32 = vrot.slane %v1129_v8, %v2811_v9  ;;  %v1208_v38 = vrot.slane %v1199_v33, %v2817_v16  ;;  %v1337_v8 = vstv %s2999_s23  ;;  %s3073_s23 = sld [smem:[#allocation7 + $0x22]] }
 0x155   : > { %v1204_v46 = vrot.slane %v1199_v33, %v2807_v6  ;;  %v1212_v54 = vrot.slane %v1199_v33, %v2811_v9  ;;  %v1338_v19 = vmul.f32 %v1337_v8, %v2805_v2 }
 0x158   : > { %1005 = vrot.lane.b32.xlu0 %v998_v36, %s2596_s5  ;;  %970 = vrot.lane.b32.xlu1 %v963_v37, %s2595_s30  ;;  %s2600_s30 = smov 79  }
 0x15a   : > { %v1230_v26 = vstv %s2940_s26  ;;  %s3033_s26 = sld [smem:[#allocation7 + $0x1e]] }
 0x15b   : > { %v1231_v34 = vmul.f32 %v1230_v26, %v2809_v7 }
 0x15c   : > { %1038 = vrot.lane.b32.xlu0 %v1029_v41, %s2597_s8  ;;  %1003 = vrot.lane.b32.xlu1 %v994_v42, %s2596_s5  ;;  %v1265_v41 = vstv %s2961_s28  ;;  %v1267_v42 = vstv %s2965_s4  ;;  %s3040_s28 = sld [smem:[#allocation7 + $0x4f]]  ;;  %s3047_s4 = sld [smem:[#allocation7 + $0x51]] }
 0x15d   : > { %v1234_v40 = vadd.f32 %v1233_v35, %v1231_v34  ;;  %v1268_v49 = vmul.f32 %v1267_v42, %v2805_v2  ;;  %v365_v35 = vstv %s3022_s17  ;;  %s3095_s17 = sld [smem:[#allocation7 + $0x56]] }
 0x15f   : > { %v1239_v45 = vrot.slane %v1234_v40, %v2807_v6  ;;  %v1243_v63 = vrot.slane %v1234_v40, %v2817_v16 }
 0x160   : > { %1042 = vrot.lane.b32.xlu0 %v1037_v47, %s2597_s8  ;;  %1007 = vrot.lane.b32.xlu1 %v1002_v48, %s2596_s5  ;;  %s2974_s5 = sld [smem:[#allocation7 + $0x1b]]  ;;  %v1266_v47 = vmul.f32 %v1265_v41, %v2809_v7 }
 0x162   : > { %v1269_v55 = vadd.f32 %v1268_v49, %v1266_v47  ;;  %v1405_v47 = vstv %s3033_s26  ;;  %v367_v49 = vld [vmem:[#allocation2 + $0x1] ss:$2 sm:$0x3]  ;;  %s3106_s26 = sld [smem:[#allocation7 + $0x25]]  ;;  %v1477_v8 = vstv %s3047_s4  ;;  %s2612_s4 = smov 58  }
 0x164   : > { %1075 = vrot.lane.b32.xlu0 %v1068_v52, %s2598_s29  ;;  %1040 = vrot.lane.b32.xlu1 %v1033_v53, %s2597_s8  ;;  %s2602_s8 = smov 77   ;;  %v1247_v53 = vrot.slane %v1234_v40, %v2811_v9  ;;  %v1278_v62 = vrot.slane %v1269_v55, %v2817_v16  ;;  %v1282_v28 = vrot.slane %v1269_v55, %v2811_v9 }
 0x166   : > { %v2919_v57 = vpop.permute.xlu0 %412  ;;  %v2921_v58 = vpop.permute.xlu1 %408  ;;  %v1300_v48 = vstv %s2974_s5  ;;  %s3058_s5 = sld [smem:[#allocation7 + $0x52]] }
 0x167   : > { %v1301_v56 = vmul.f32 %v1300_v48, %v2809_v7 }
 0x168   : > { %1108 = vrot.lane.b32.xlu0 %v1099_v59, %s2599_s16  ;;  %1073 = vrot.lane.b32.xlu1 %v1064_v60, %s2598_s29  ;;  %v1303_v59 = vmul.f32 %v1302_v50, %v2805_v2  ;;  %v368_v50 = vstv %s3035_s27  ;;  %s2607_s27 = smov 63  }
 0x16a   : > { %v2933_v1 = vpop.permute.xlu0 %445  ;;  %v2935_v3 = vpop.permute.xlu1 %410  ;;  %v1304_v0 = vadd.f32 %v1303_v59, %v1301_v56 }
 0x16c   : > { %1112 = vrot.lane.b32.xlu0 %v1107_v4, %s2599_s16  ;;  %1077 = vrot.lane.b32.xlu1 %v1072_v5, %s2598_s29  ;;  %s3008_s29 = sld [smem:[#allocation7 + $0x1d]]  ;;  %v1335_v4 = vstv %s2995_s24  ;;  %v282_v5 = vand.u32 127, %v235_v23  ;;  %v1317_v27 = vrot.slane %v1304_v0, %v2811_v9  ;;  %s3064_s24 = sld [smem:[#allocation7 + $0x20]] }
 0x16d   : > { %v1336_v17 = vmul.f32 %v1335_v4, %v2809_v7  ;;  %v369_v4 = vmul.f32 %v368_v50, %v367_v49 }
 0x16e   : > { %v2945_v12 = vpop.permute.xlu0 %478  ;;  %v2947_v13 = vpop.permute.xlu1 %443  ;;  %v283_v23 = vadd.s32 128, %v282_v5 }
 0x170   : > { %1145 = vrot.lane.b32.xlu0 %v1138_v14, %s2600_s30  ;;  %1110 = vrot.lane.b32.xlu1 %v1103_v15, %s2599_s16  ;;  %s2604_s16 = smov 75   ;;  %v1309_v14 = vrot.slane %v1304_v0, %v2807_v6  ;;  %v1274_v15 = vrot.slane %v1269_v55, %v2807_v6  ;;  %v3066_v33 = vand.u32 15, %v283_v23 }
 0x172   : > { %v2953_v20 = vpop.permute.xlu0 %482  ;;  %v2955_v21 = vpop.permute.xlu1 %447  ;;  %v1370_v18 = vstv %s3008_s29  ;;  %s3076_s29 = sld [smem:[#allocation7 + $0x54]]  ;;  %v3098_v48 = vadd.s32 4294967293, %v3066_v33 }
 0x174   : > { %1178 = vrot.lane.b32.xlu0 %v1169_v22, %s2601_s3  ;;  %1143 = vrot.lane.b32.xlu1 %v1134_v24, %s2600_s30  ;;  %v3042_v22 = vand.u32 15, %v282_v5  ;;  %v1372_v24 = vstv %s3011_s7  ;;  %s3090_s7 = sld [smem:[#allocation7 + $0x55]]  ;;  %vm3889_vm10 = vcmp.ge.s32.totalorder %v3098_v48, 0 }
 0x175   : > { %v1373_v34 = vmul.f32 %v1372_v24, %v2805_v2 }
 0x176   : > { %v2967_v29 = vpop.permute.xlu0 %515  ;;  %v2969_v30 = vpop.permute.xlu1 %480 }
 0x178   : > { %1182 = vrot.lane.b32.xlu0 %v1177_v31, %s2601_s3  ;;  %1147 = vrot.lane.b32.xlu1 %v1142_v32, %s2600_s30  ;;  %s2605_s30 = smov 74   ;;  %v3055_v31 = vadd.f32 %v1338_v19, %v1336_v17  ;;  %v1371_v32 = vmul.f32 %v1370_v18, %v2809_v7  ;;  %v1475_v17 = vstv %s3064_s24  ;;  %v3219_v18 = vadd.s32 3, %v3066_v33  ;;  %s3459_s24 = sld [smem:[#allocation7 + $0x58]] }
 0x17a   : > { %v2979_v36 = vpop.permute.xlu0 %548  ;;  %v2981_v37 = vpop.permute.xlu1 %513  ;;  %v1348_v42 = vrot.slane %v3055_v31, %v2817_v16 }
 0x17c   : > { %1215 = vrot.lane.b32.xlu0 %v1208_v38, %s2602_s8  ;;  %1180 = vrot.lane.b32.xlu1 %v1173_v39, %s2601_s3  ;;  %s3045_s3 = sld [smem:[#allocation7 + $0x50]]  ;;  %v3079_v38 = vadd.s32 4294967293, %v3042_v22  ;;  %v364_v39 = vld [vmem:[#allocation2] ss:$2 sm:$0x3] }
 0x17e   : > { %v2987_v43 = vpop.permute.xlu0 %552  ;;  %v2989_v44 = vpop.permute.xlu1 %517  ;;  %vm310_vm9 = vcmp.ge.s32.totalorder %v3079_v38, 0 }
 0x180   : > { %1248 = vrot.lane.b32.xlu0 %v1239_v45, %s2603_s20  ;;  %1213 = vrot.lane.b32.xlu1 %v1204_v46, %s2602_s8  ;;  %v1313_v45 = vrot.slane %v1304_v0, %v2817_v16  ;;  %v3088_v46 = vadd.f32 %v1373_v34, %v1371_v32 }
 0x182   : > { %v3001_v51 = vpop.permute.xlu0 %585  ;;  %v3003_v52 = vpop.permute.xlu1 %550  ;;  %v1379_v59 = vrot.slane %v3088_v46, %v2807_v6  ;;  %v1442_v0 = vstv %s3045_s3  ;;  %v1387_v34 = vrot.slane %v3088_v46, %v2811_v9  ;;  %s2611_s3 = smov 59  }
 0x184   : > { %1252 = vrot.lane.b32.xlu0 %v1247_v53, %s2603_s20  ;;  %1217 = vrot.lane.b32.xlu1 %v1212_v54, %s2602_s8  ;;  %s3062_s8 = sld [smem:[#allocation7 + $0x1f]]  ;;  %v366_v53 = vmul.f32 %v365_v35, %v364_v39  ;;  %v1407_v54 = vstv %s3040_s28  ;;  %v1352_v35 = vrot.slane %v3055_v31, %v2811_v9  ;;  %s2610_s28 = smov 60  }
 0x186   : > { %v3013_v60 = vpop.permute.xlu0 %618  ;;  %v3015_v61 = vpop.permute.xlu1 %583  ;;  %v370_v23 = vadd.f32 %v369_v4, %v366_v53  ;;  %v3151_v53 = vadd.s32 4294967295, %v3042_v22 }
 0x188   : > { %1285 = vrot.lane.b32.xlu0 %v1278_v62, %s2604_s16  ;;  %1250 = vrot.lane.b32.xlu1 %v1243_v63, %s2603_s20  ;;  %s3071_s20 = sld [smem:[#allocation7 + $0x21]]  ;;  %v1344_v62 = vrot.slane %v3055_v31, %v2807_v6  ;;  %v1406_v63 = vmul.f32 %v1405_v47, %v2809_v7  ;;  %v3146_v47 = vadd.s32 4294967294, %v3066_v33  ;;  %vm326_vm14 = vcmp.ge.s32.totalorder %v3151_v53, 0 }
 0x189   : > { %v415_v31 = vsel %vm414_vm13, %v2921_v58, %v2935_v3 }
 0x18a   : > { %v3025_v10 = vpop.permute.xlu0 %622  ;;  %v3027_v11 = vpop.permute.xlu1 %587  ;;  %v1440_v5 = vstv %s3062_s8  ;;  %vm3888_vm12 = vcmp.ge.s32.totalorder %v3146_v47, 0  ;;  %s3447_s8 = sld [smem:[#allocation7 + $0x27]] }
 0x18c   : > { %1318 = vrot.lane.b32.xlu0 %v1309_v14, %s2605_s30  ;;  %1283 = vrot.lane.b32.xlu1 %v1274_v15, %s2604_s16  ;;  %v1512_v14 = vstv %s3058_s5  ;;  %v1408_v15 = vmul.f32 %v1407_v54, %v2805_v2  ;;  %v3154_v54 = vadd.s32 4294967295, %v3066_v33  ;;  %s2613_s5 = smov 48  }
 0x18e   : > { %v3049_v25 = vpop.permute.xlu0 %655  ;;  %v3051_v26 = vpop.permute.xlu1 %620  ;;  %v1510_v19 = vstv %s3071_s20  ;;  %v3139_v39 = vadd.f32 %v1408_v15, %v1406_v63  ;;  %vm3891_vm0 = vcmp.ge.s32.totalorder %v3154_v54, 0  ;;  %v416_v63 = vsel %vm414_vm13, %v2935_v3, %v2919_v57  ;;  %v3223_v57 = vld [vmem:[#allocation2 + $0x1] ss:$2 sm:$0x7]  ;;  %s2614_s20 = smov 47  }
 0x190   : > { %1322 = vrot.lane.b32.xlu0 %v1317_v27, %s2605_s30  ;;  %1287 = vrot.lane.b32.xlu1 %v1282_v28, %s2604_s16  ;;  %s3093_s16 = sld [smem:[#allocation7 + $0x23]]  ;;  %v3213_v27 = vadd.s32 3, %v3042_v22  ;;  %v1422_v58 = vrot.slane %v3139_v39, %v2811_v9 }
 0x192   : > { %v3081_v40 = vpop.permute.xlu0 %688  ;;  %v3083_v41 = vpop.permute.xlu1 %653  ;;  %vm358_vm13 = vcmp.lt.s32.totalorder %v3213_v27, 16 }
 0x194   : > { %1355 = vrot.lane.b32.xlu0 %v1348_v42, %s2606_s19  ;;  %1320 = vrot.lane.b32.xlu1 %v1313_v45, %s2605_s30  ;;  %v1441_v42 = vmul.f32 %v1440_v5, %v2809_v7  ;;  %v3143_v45 = vadd.s32 4294967294, %v3042_v22  ;;  %v1443_v7 = vmul.f32 %v1442_v0, %v2805_v2  ;;  %v3165_v5 = vadd.s32 1, %v3042_v22  ;;  %s2609_s30 = smov 61  }
 0x195   : > { %v1383_v2 = vrot.slane %v3088_v46, %v2817_v16 }
 0x196   : > { %v3109_v55 = vpop.permute.xlu0 %692  ;;  %v3111_v56 = vpop.permute.xlu1 %657  ;;  %v3175_v0 = vadd.f32 %v1443_v7, %v1441_v42  ;;  %vm318_vm11 = vcmp.ge.s32.totalorder %v3143_v45, 0  ;;  %v3191_v42 = vadd.s32 2, %v3042_v22  ;;  %vm342_vm3 = vcmp.lt.s32.totalorder %v3165_v5, 16 }
 0x197   : > { %v3195_v7 = vadd.s32 2, %v3066_v33  ;;  %v1478_v22 = vmul.f32 %v3223_v57, %v1477_v8 }
 0x198   : > { %1388 = vrot.lane.b32.xlu0 %v1379_v59, %s2607_s27  ;;  %1353 = vrot.lane.b32.xlu1 %v1344_v62, %s2606_s19  ;;  %v375_v59 = vrot.slane %v370_v23, %v2807_v6  ;;  %v379_v62 = vrot.slane %v370_v23, %v2817_v16  ;;  %v3180_v23 = vadd.s32 1, %v3066_v33  ;;  %vm350_vm7 = vcmp.lt.s32.totalorder %v3191_v42, 16 }
 0x199   : > { %v420_v33 = vsel %vm3888_vm12, %v416_v63, 0.0  ;;  %vm351_vm8 = vcmp.lt.s32.totalorder %v3195_v7, 16  ;;  %vm624_vm12 = vcmask 916480   ;;  %v3908_v63 = vstv %s3073_s23  ;;  %s3484_s23 = sld [smem:[#allocation7 + $0x28]] }
 0x19a   : > { %v3131_v28 = vpop.permute.xlu0 %725  ;;  %v3133_v32 = vpop.permute.xlu1 %690  ;;  %v382_v46 = vsel %vm310_vm9, %v375_v59, 0.0  ;;  %v1449_v59 = vrot.slane %v3175_v0, %v2807_v6  ;;  %vm343_vm4 = vcmp.lt.s32.totalorder %v3180_v23, 16 }
 0x19c   : > { %1392 = vrot.lane.b32.xlu0 %v1387_v34, %s2607_s27  ;;  %1357 = vrot.lane.b32.xlu1 %v1352_v35, %s2606_s19  ;;  %v1418_v34 = vrot.slane %v3139_v39, %v2817_v16  ;;  %s2608_s19 = smov 62   ;;  %v383_v35 = vsel %vm3889_vm10, %v379_v62, 0.0  ;;  %v1414_v62 = vrot.slane %v3139_v39, %v2807_v6  ;;  %vm659_vm10 = vcmask 908288  }
 0x19d   : > { %v422_v39 = vadd.f32 %v420_v33, %v383_v35  ;;  %v485_v33 = vsel %vm484_vm1, %v2945_v12, %v2969_v30 }
 0x19e   : > { %v3167_v15 = vpop.permute.xlu0 %758  ;;  %v3169_v50 = vpop.permute.xlu1 %723 }
 0x19f   : > { %3906 = vst [vmem:[#allocation12_spill] sm:$0xff] %v3169_v50 }
 0x1a0   : > { %1425 = vrot.lane.b32.xlu0 %v1418_v34, %s2608_s19  ;;  %1390 = vrot.lane.b32.xlu1 %v1383_v2, %s2607_s27  ;;  %v3205_v2 = vld [vmem:[#allocation2] ss:$2 sm:$0x7]  ;;  %s3519_s27 = sld [smem:[#allocation7 + $0x2a]] }
 0x1a1   : > { %v1476_v49 = vmul.f32 %v3205_v2, %v1475_v17  ;;  %v451_v17 = vsel %vm449_vm15, %v2933_v1, %v2955_v21  ;;  %v1511_v3 = vmul.f32 %v3205_v2, %v1510_v19  ;;  %v1457_v21 = vrot.slane %v3175_v0, %v2811_v9 }
 0x1a2   : > { %v3197_v4 = vpop.permute.xlu0 %762  ;;  %v3199_v34 = vpop.permute.xlu1 %727  ;;  %v419_v19 = vsel %vm318_vm11, %v415_v31, 0.0 }
 0x1a3   : > { %v3248_v24 = vadd.f32 %v1478_v22, %v1476_v49  ;;  %v421_v22 = vadd.f32 %v419_v19, %v382_v46  ;;  %v521_v46 = vsel %vm519_vm2, %v2967_v29, %v2989_v44  ;;  %v590_v19 = vsel %vm589_vm6, %v3015_v61, %v3001_v51 }
 0x1a4   : > { %1458 = vrot.lane.b32.xlu0 %v1449_v59, %s2609_s30  ;;  %1423 = vrot.lane.b32.xlu1 %v1414_v62, %s2608_s19  ;;  %v450_v59 = vsel %vm449_vm15, %v2947_v13, %v2933_v1  ;;  %v1513_v1 = vmul.f32 %v3223_v57, %v1512_v14  ;;  %v455_v13 = vsel %vm3891_vm0, %v451_v17, 0.0  ;;  %vm359_vm15 = vcmp.lt.s32.totalorder %v3219_v18, 16 }
 0x1a5   : > { %v454_v49 = vsel %vm326_vm14, %v450_v59, 0.0  ;;  %v1546_v14 = vmul.f32 %v3205_v2, %v3908_v63  ;;  %v520_v17 = vsel %vm519_vm2, %v2981_v37, %v2967_v29  ;;  %v1488_v35 = vrot.slane %v3248_v24, %v2817_v16 }
 0x1a6   : > { %v3242_v8 = vpop.permute.xlu0 %795  ;;  %v3244_v62 = vpop.permute.xlu1 %760  ;;  %v3264_v31 = vadd.f32 %v1513_v1, %v1511_v3  ;;  %v457_v3 = vadd.f32 %v455_v13, %v422_v39  ;;  %v1484_v37 = vrot.slane %v3248_v24, %v2807_v6  ;;  %v456_v59 = vadd.f32 %v454_v49, %v421_v22 }
 0x1a7   : > { %3907 = vst [vmem:[#allocation13_spill] sm:$0xff] %v3242_v8  ;;  %vm694_vm0 = vcmask 900096   ;;  %v524_v12 = vsel %vm342_vm3, %v520_v17, 0.0  ;;  %v556_v29 = vsel %vm554_vm5, %v3003_v52, %v2987_v43  ;;  %v525_v44 = vsel %vm343_vm4, %v521_v46, 0.0 }
 0x1a8   : > { %1462 = vrot.lane.b32.xlu0 %v1457_v21, %s2609_s30  ;;  %1427 = vrot.lane.b32.xlu1 %v1422_v58, %s2608_s19  ;;  %v1453_v58 = vrot.slane %v3175_v0, %v2817_v16  ;;  %v486_v21 = vsel %vm484_vm1, %v2969_v30, %v2953_v20  ;;  %v555_v0 = vsel %vm554_vm5, %v2979_v36, %v3003_v52  ;;  %v3909_v49 = vstv %s3060_s6  ;;  %s3435_s6 = sld [smem:[#allocation7 + $0x57]]  ;;  %s2617_s19 = smov 44  }
 0x1a9   : > { %v1519_v20 = vrot.slane %v3264_v31, %v2807_v6  ;;  %v1492_v30 = vrot.slane %v3248_v24, %v2811_v9  ;;  %v491_v36 = vadd.f32 %v485_v33, %v456_v59  ;;  %v1527_v43 = vrot.slane %v3264_v31, %v2811_v9 }
 0x1aa   : > { %v3272_v8 = vpop.permute.xlu0 %828  ;;  %v3274_v50 = vpop.permute.xlu1 %793  ;;  %v492_v52 = vadd.f32 %v486_v21, %v457_v3  ;;  %v559_v24 = vsel %vm350_vm7, %v555_v0, 0.0  ;;  %v591_v39 = vsel %vm589_vm6, %v3001_v51, %v3027_v11  ;;  %v1548_v63 = vmul.f32 %v3223_v57, %v3909_v49 }
 0x1ab   : > { %v526_v61 = vadd.f32 %v524_v12, %v491_v36  ;;  %v560_v22 = vsel %vm351_vm8, %v556_v29, 0.0  ;;  %v625_v17 = vsel %vm624_vm12, %v3013_v60, %v3051_v26  ;;  %vm729_vm1 = vcmask 891904  }
 0x1ac   : > { %1495 = vrot.lane.b32.xlu0 %v1488_v35, %s2610_s28  ;;  %1460 = vrot.lane.b32.xlu1 %v1453_v58, %s2609_s30  ;;  %v1523_v51 = vrot.slane %v3264_v31, %v2817_v16  ;;  %v527_v11 = vadd.f32 %v525_v44, %v492_v52  ;;  %v594_v35 = vsel %vm358_vm13, %v590_v19, 0.0  ;;  %v626_v58 = vsel %vm624_vm12, %v3051_v26, %v3025_v10  ;;  %s3527_s30 = sld [smem:[#allocation7 + $0x5b]] }
 0x1ad   : > { %v3910_v3 = vstv %s3093_s16  ;;  %v561_v33 = vadd.f32 %v559_v24, %v526_v61  ;;  %v595_v46 = vsel %vm359_vm15, %v591_v39, 0.0  ;;  %v3350_v21 = vadd.f32 %v1548_v63, %v1546_v14  ;;  %s3498_s16 = sld [smem:[#allocation7 + $0x29]] }
 0x1ae   : > { %v3310_v1 = vpop.permute.xlu0 %832  ;;  %v3312_v13 = vpop.permute.xlu1 %797  ;;  %v1581_v60 = vmul.f32 %v3205_v2, %v3910_v3  ;;  %v562_v0 = vadd.f32 %v560_v22, %v527_v11  ;;  %v629_v10 = vsel %vm310_vm9, %v625_v17, 0.0  ;;  %v661_v26 = vsel %vm659_vm10, %v3049_v25, %v3111_v56 }
 0x1af   : > { %v3911_v12 = vstv %s3076_s29  ;;  %vm3912_vm12 = vcmp.ge.s32.totalorder %v3098_v48, 0  ;;  %v695_v14 = vsel %vm694_vm0, %v3081_v40, %v3133_v32  ;;  %vm764_vm2 = vcmask 883712   ;;  %s2615_s29 = smov 46  }
 0x1b0   : > { %1528 = vrot.lane.b32.xlu0 %v1519_v20, %s2611_s3  ;;  %1493 = vrot.lane.b32.xlu1 %v1484_v37, %s2610_s28  ;;  %v660_v37 = vsel %vm659_vm10, %v3083_v41, %v3049_v25  ;;  %v1583_v29 = vmul.f32 %v3223_v57, %v3911_v12  ;;  %v596_v20 = vadd.f32 %v594_v35, %v561_v33  ;;  %v630_v41 = vsel %vm3912_vm12, %v626_v58, 0.0  ;;  %v3919_v12 = vld [vmem:[#allocation12_spill] sm:$0xff] }
 0x1b1   : > { %v597_v25 = vadd.f32 %v595_v46, %v562_v0  ;;  %v664_v56 = vsel %vm318_vm11, %v660_v37, 0.0  ;;  %v696_v36 = vsel %vm694_vm0, %v3133_v32, %v3109_v55  ;;  %vm3913_vm10 = vcmp.ge.s32.totalorder %v3146_v47, 0 }
 0x1b2   : > { %v3346_v31 = vpop.permute.xlu0 %865  ;;  %v3348_v59 = vpop.permute.xlu1 %830  ;;  %v3372_v44 = vadd.f32 %v1583_v29, %v1581_v60  ;;  %v631_v19 = vadd.f32 %v629_v10, %v596_v20  ;;  %v665_v40 = vsel %vm3913_vm10, %v661_v26, 0.0  ;;  %v3914_v24 = vstv %s3103_s0  ;;  %v3920_v20 = vld [vmem:[#allocation13_spill] sm:$0xff]  ;;  %s3418_s0 = sld [smem:[#allocation7 + $0x26]] }
 0x1b3   : > { %v1616_v39 = vmul.f32 %v3205_v2, %v3914_v24  ;;  %v632_v49 = vadd.f32 %v630_v41, %v597_v25  ;;  %v699_v55 = vsel %vm326_vm14, %v695_v14, 0.0  ;;  %v3915_v32 = vstv %s3090_s7  ;;  %s3494_s7 = sld [smem:[#allocation7 + $0x59]] }
 0x1b4   : > { %1532 = vrot.lane.b32.xlu0 %v1527_v43, %s2611_s3  ;;  %1497 = vrot.lane.b32.xlu1 %v1492_v30, %s2610_s28  ;;  %v1558_v30 = vrot.slane %v3350_v21, %v2817_v16  ;;  %v1618_v63 = vmul.f32 %v3223_v57, %v3915_v32  ;;  %v3916_v61 = vstv %s3106_s26  ;;  %v666_v17 = vadd.f32 %v664_v56, %v631_v19  ;;  %s2616_s26 = smov 45   ;;  %s3532_s28 = sld [smem:[#allocation7 + $0x2b]] }
 0x1b5   : > { %v1651_v22 = vmul.f32 %v3205_v2, %v3916_v61  ;;  %vm3917_vm0 = vcmp.ge.s32.totalorder %v3154_v54, 0  ;;  %v1554_v35 = vrot.slane %v3350_v21, %v2807_v6  ;;  %v3918_v58 = vstv %s3095_s17  ;;  %s3503_s17 = sld [smem:[#allocation7 + $0x5a]] }
 0x1b6   : > { %v3376_v52 = vpop.permute.xlu0 %898  ;;  %v864_v43 = vpop.permute.xlu1 %863  ;;  %v700_v11 = vsel %vm3917_vm0, %v696_v36, 0.0  ;;  %v1653_v3 = vmul.f32 %v3223_v57, %v3918_v58  ;;  %v667_v60 = vadd.f32 %v665_v40, %v632_v49  ;;  %v766_v33 = vsel %vm764_vm2, %v3244_v62, %v3197_v4 }
 0x1b7   : > { %vm799_vm5 = vcmask 875520   ;;  %v1589_v46 = vrot.slane %v3372_v44, %v2807_v6  ;;  %v701_v37 = vadd.f32 %v699_v55, %v666_v17  ;;  %v765_v0 = vsel %vm764_vm2, %v3167_v15, %v3244_v62 }
 0x1b8   : > { %1565 = vrot.lane.b32.xlu0 %v1558_v30, %s2612_s4  ;;  %1530 = vrot.lane.b32.xlu1 %v1523_v51, %s2611_s3  ;;  %v731_v51 = vsel %vm729_vm1, %v3131_v28, %v3199_v34  ;;  %vm834_vm6 = vcmask 867328   ;;  %v730_v4 = vsel %vm729_vm1, %v3919_v12, %v3131_v28  ;;  %v702_v29 = vadd.f32 %v700_v11, %v667_v60  ;;  %s3541_s3 = sld [smem:[#allocation7 + $0x5c]] }
 0x1b9   : > { %v801_v41 = vsel %vm799_vm5, %v3920_v20, %v3312_v13  ;;  %v1562_v14 = vrot.slane %v3350_v21, %v2811_v9  ;;  %v770_v34 = vsel %vm343_vm4, %v766_v33, 0.0  ;;  %v800_v15 = vsel %vm799_vm5, %v3274_v50, %v3920_v20 }
 0x1ba   : > { %v903_v10 = vpop.permute.xlu0 %902  ;;  %v868_v26 = vpop.permute.xlu1 %867  ;;  %v1597_v28 = vrot.slane %v3372_v44, %v2811_v9  ;;  %v3428_v62 = vadd.f32 %v1618_v63, %v1616_v39  ;;  %v737_v13 = vadd.f32 %v731_v51, %v702_v29  ;;  %v769_v21 = vsel %vm342_vm3, %v765_v0, 0.0 }
 0x1bb   : > { %v836_v25 = vsel %vm834_vm6, %v3348_v59, %v3310_v1  ;;  %vm869_vm1 = vcmask 785408   ;;  %v736_v50 = vadd.f32 %v730_v4, %v701_v37  ;;  %v805_v56 = vsel %vm351_vm8, %v801_v41, 0.0 }
 0x1bc   : > { %1598 = vrot.lane.b32.xlu0 %v1589_v46, %s2613_s5  ;;  %1563 = vrot.lane.b32.xlu1 %v1554_v35, %s2612_s4  ;;  %v835_v36 = vsel %vm834_vm6, %v3272_v8, %v3348_v59  ;;  %vm904_vm12 = vcmask 777216   ;;  %v772_v30 = vadd.f32 %v770_v34, %v737_v13  ;;  %v804_v24 = vsel %vm350_vm7, %v800_v15, 0.0 }
 0x1bd   : > { %v871_v1 = vsel %vm869_vm1, %v3346_v31, %v868_v26  ;;  %v1593_v39 = vrot.slane %v3372_v44, %v2817_v16  ;;  %v771_v49 = vadd.f32 %v769_v21, %v736_v50  ;;  %v840_v55 = vsel %vm359_vm15, %v836_v25, 0.0 }
 0x1be   : > { %v936_v19 = vpop.permute.xlu0 %935  ;;  %v901_v40 = vpop.permute.xlu1 %900  ;;  %v870_v8 = vsel %vm869_vm1, %v864_v43, %v3346_v31  ;;  %v1628_v59 = vrot.slane %v3428_v62, %v2817_v16  ;;  %v807_v32 = vadd.f32 %v805_v56, %v772_v30  ;;  %v839_v44 = vsel %vm358_vm13, %v835_v36, 0.0 }
 0x1bf   : > { %v906_v63 = vsel %vm904_vm12, %v901_v40, %v903_v10  ;;  %vm939_vm2 = vcmask 769024   ;;  %v806_v61 = vadd.f32 %v804_v24, %v771_v49  ;;  %vm3921_vm10 = vcmp.ge.s32.totalorder %v3098_v48, 0 }
 0x1c0   : > { %1602 = vrot.lane.b32.xlu0 %v1597_v28, %s2613_s5  ;;  %1567 = vrot.lane.b32.xlu1 %v1562_v14, %s2612_s4  ;;  %v875_v31 = vsel %vm3921_vm10, %v871_v1, 0.0  ;;  %v905_v43 = vsel %vm904_vm12, %v3376_v52, %v901_v40  ;;  %v1654_v35 = vadd.f32 %v1653_v3, %v1651_v22  ;;  %v842_v58 = vadd.f32 %v840_v55, %v807_v32  ;;  %s2618_s4 = smov 43  }
 0x1c1   : > { %v874_v60 = vsel %vm310_vm9, %v870_v8, 0.0  ;;  %v1685_v33 = vstv %s3418_s0  ;;  %v841_v46 = vadd.f32 %v839_v44, %v806_v61  ;;  %vm3922_vm0 = vcmp.ge.s32.totalorder %v3146_v47, 0  ;;  %s3557_s0 = sld [smem:[#allocation7 + $0x2c]] }
 0x1c2   : > { %v969_v17 = vpop.permute.xlu0 %968  ;;  %v934_v11 = vpop.permute.xlu1 %933  ;;  %v910_v37 = vsel %vm3922_vm0, %v906_v63, 0.0  ;;  %v877_v52 = vadd.f32 %v875_v31, %v842_v58  ;;  %v909_v22 = vsel %vm318_vm11, %v905_v43, 0.0  ;;  %v1687_v3 = vstv %s3435_s6  ;;  %s3565_s6 = sld [smem:[#allocation7 + $0x5d]] }
 0x1c3   : > { %v940_v51 = vsel %vm939_vm2, %v934_v11, %v936_v19  ;;  %v876_v0 = vadd.f32 %v874_v60, %v841_v46  ;;  %v1659_v12 = vrot.slane %v1654_v35, %v2807_v6  ;;  %v1624_v4 = vrot.slane %v3428_v62, %v2807_v6 }
 0x1c4   : > { %1635 = vrot.lane.b32.xlu0 %v1628_v59, %s2614_s20  ;;  %1600 = vrot.lane.b32.xlu1 %v1593_v39, %s2613_s5  ;;  %v1686_v29 = vmul.f32 %v3205_v2, %v1685_v33  ;;  %v912_v20 = vadd.f32 %v910_v37, %v877_v52  ;;  %v944_v41 = vsel %vm326_vm14, %v940_v51, 0.0  ;;  %v1720_v34 = vstv %s3447_s8  ;;  %s2619_s5 = smov 42   ;;  %s3570_s8 = sld [smem:[#allocation7 + $0x2d]] }
 0x1c5   : > { %v911_v15 = vadd.f32 %v909_v22, %v876_v0  ;;  %vm3923_vm5 = vcmp.ge.s32.totalorder %v3154_v54, 0  ;;  %vm974_vm6 = vcmask 760832   ;;  %v1688_v13 = vmul.f32 %v3223_v57, %v1687_v3 }
 0x1c6   : > { %v973_v10 = vpop.permute.xlu0 %972  ;;  %v938_v26 = vpop.permute.xlu1 %937  ;;  %v1632_v25 = vrot.slane %v3428_v62, %v2811_v9  ;;  %v1722_v50 = vstv %s3459_s24  ;;  %v1667_v40 = vrot.slane %v1654_v35, %v2811_v9  ;;  %v1721_v24 = vmul.f32 %v3205_v2, %v1720_v34  ;;  %s3579_s24 = sld [smem:[#allocation7 + $0x5e]] }
 0x1c7   : > { %v941_v14 = vsel %vm939_vm2, %v936_v19, %v938_v26  ;;  %v946_v56 = vadd.f32 %v944_v41, %v911_v15  ;;  %v1689_v30 = vadd.f32 %v1688_v13, %v1686_v29  ;;  %vm1009_vm1 = vcmask 752640  }
 0x1c8   : > { %v945_v28 = vsel %vm3923_vm5, %v941_v14, 0.0  ;;  %1668 = vrot.lane.b32.xlu0 %v1659_v12, %s2615_s29  ;;  %1633 = vrot.lane.b32.xlu1 %v1624_v4, %s2614_s20  ;;  %v1723_v62 = vmul.f32 %v3223_v57, %v1722_v50  ;;  %v1663_v44 = vrot.slane %v1654_v35, %v2817_v16  ;;  %v1755_v31 = vstv %s3484_s23  ;;  %s3595_s23 = sld [smem:[#allocation7 + $0x2e]] }
 0x1c9   : > { %v947_v21 = vadd.f32 %v945_v28, %v912_v20  ;;  %v1698_v32 = vrot.slane %v1689_v30, %v2817_v16  ;;  %v1757_v11 = vstv %s3494_s7  ;;  %v1694_v33 = vrot.slane %v1689_v30, %v2807_v6  ;;  %s3603_s7 = sld [smem:[#allocation7 + $0x5f]] }
 0x1ca   : > { %v1006_v36 = vpop.permute.xlu0 %1005  ;;  %v971_v19 = vpop.permute.xlu1 %970  ;;  %v1724_v63 = vadd.f32 %v1723_v62, %v1721_v24  ;;  %v1756_v46 = vmul.f32 %v3205_v2, %v1755_v31  ;;  %v1790_v51 = vstv %s3498_s16  ;;  %vm1044_vm12 = vcmask 744448   ;;  %s3608_s16 = sld [smem:[#allocation7 + $0x2f]] }
 0x1cb   : > { %v975_v1 = vsel %vm974_vm6, %v969_v17, %v971_v19  ;;  %v976_v39 = vsel %vm974_vm6, %v971_v19, %v973_v10  ;;  %v1758_v22 = vmul.f32 %v3223_v57, %v1757_v11  ;;  %v1792_v0 = vstv %s3503_s17  ;;  %s3617_s17 = sld [smem:[#allocation7 + $0x60]] }
 0x1cc   : > { %v981_v49 = vadd.f32 %v975_v1, %v946_v56  ;;  %v982_v55 = vadd.f32 %v976_v39, %v947_v21  ;;  %1672 = vrot.lane.b32.xlu0 %v1667_v40, %s2615_s29  ;;  %1637 = vrot.lane.b32.xlu1 %v1632_v25, %s2614_s20  ;;  %v1729_v35 = vrot.slane %v1724_v63, %v2807_v6  ;;  %vm1079_vm2 = vcmask 736256   ;;  %s2620_s20 = smov 32  }
 0x1cd   : > { %v1737_v12 = vrot.slane %v1724_v63, %v2811_v9  ;;  %v1702_v4 = vrot.slane %v1689_v30, %v2811_v9  ;;  %v1759_v29 = vadd.f32 %v1758_v22, %v1756_v46  ;;  %v1791_v20 = vmul.f32 %v3205_v2, %v1790_v51 }
 0x1ce   : > { %v1039_v8 = vpop.permute.xlu0 %1038  ;;  %v1004_v59 = vpop.permute.xlu1 %1003  ;;  %v1793_v28 = vmul.f32 %v3223_v57, %v1792_v0  ;;  %v1825_v30 = vstv %s3519_s27  ;;  %v1827_v39 = vstv %s3527_s30  ;;  %vm1114_vm10 = vcmask 654336   ;;  %s3631_s27 = sld [smem:[#allocation7 + $0x30]]  ;;  %s3637_s30 = sld [smem:[#allocation7 + $0x61]] }
 0x1cf   : > { %v1010_v61 = vsel %vm1009_vm1, %v1004_v59, %v1006_v36  ;;  %v1768_v56 = vrot.slane %v1759_v29, %v2817_v16  ;;  %v1826_v59 = vmul.f32 %v3205_v2, %v1825_v30  ;;  %vm3924_vm0 = vcmp.ge.s32.totalorder %v3098_v48, 0 }
 0x1d0   : > { %v1014_v43 = vsel %vm342_vm3, %v1010_v61, 0.0  ;;  %1705 = vrot.lane.b32.xlu0 %v1698_v32, %s2616_s26  ;;  %1670 = vrot.lane.b32.xlu1 %v1663_v44, %s2615_s29  ;;  %v1794_v19 = vadd.f32 %v1793_v28, %v1791_v20  ;;  %v1860_v44 = vstv %s3532_s28  ;;  %v1828_v61 = vmul.f32 %v3223_v57, %v1827_v39  ;;  %s2621_s29 = smov 31   ;;  %s2624_s28 = smov 28  }
 0x1d1   : > { %v1016_v17 = vadd.f32 %v1014_v43, %v981_v49  ;;  %v1862_v43 = vstv %s3541_s3  ;;  %vm1149_vm5 = vcmask 646144   ;;  %vm3925_vm6 = vcmp.ge.s32.totalorder %v3146_v47, 0  ;;  %s2625_s3 = smov 27  }
 0x1d2   : > { %v1043_v58 = vpop.permute.xlu0 %1042  ;;  %v1008_v60 = vpop.permute.xlu1 %1007  ;;  %v1799_v62 = vrot.slane %v1794_v19, %v2807_v6  ;;  %v1863_v22 = vmul.f32 %v3223_v57, %v1862_v43 }
 0x1d3   : > { %v1011_v37 = vsel %vm1009_vm1, %v1006_v36, %v1008_v60  ;;  %v1733_v36 = vrot.slane %v1724_v63, %v2817_v16  ;;  %v1772_v60 = vrot.slane %v1759_v29, %v2811_v9  ;;  %vm1184_vm1 = vcmask 637952  }
 0x1d4   : > { %v1015_v52 = vsel %vm343_vm4, %v1011_v37, 0.0  ;;  %1738 = vrot.lane.b32.xlu0 %v1729_v35, %s2617_s19  ;;  %1703 = vrot.lane.b32.xlu1 %v1694_v33, %s2616_s26  ;;  %v1829_v35 = vadd.f32 %v1828_v61, %v1826_v59  ;;  %v1861_v33 = vmul.f32 %v3205_v2, %v1860_v44 }
 0x1d5   : > { %v1017_v3 = vadd.f32 %v1015_v52, %v982_v55 }
 0x1d6   : > { %v1076_v10 = vpop.permute.xlu0 %1075  ;;  %v1041_v26 = vpop.permute.xlu1 %1040 }
 0x1d7   : > { %v1045_v41 = vsel %vm1044_vm12, %v1039_v8, %v1041_v26  ;;  %v1046_v14 = vsel %vm1044_vm12, %v1041_v26, %v1043_v58  ;;  %v1764_v8 = vrot.slane %v1759_v29, %v2807_v6  ;;  %v1807_v58 = vrot.slane %v1794_v19, %v2811_v9 }
 0x1d8   : > { %v1049_v34 = vsel %vm350_vm7, %v1045_v41, 0.0  ;;  %v1050_v15 = vsel %vm351_vm8, %v1046_v14, 0.0  ;;  %1742 = vrot.lane.b32.xlu0 %v1737_v12, %s2617_s19  ;;  %1707 = vrot.lane.b32.xlu1 %v1702_v4, %s2616_s26  ;;  %v1838_v12 = vrot.slane %v1829_v35, %v2817_v16  ;;  %v1803_v4 = vrot.slane %v1794_v19, %v2817_v16  ;;  %s2622_s26 = smov 30  }
 0x1d9   : > { %v1051_v13 = vadd.f32 %v1049_v34, %v1016_v17  ;;  %v1052_v21 = vadd.f32 %v1050_v15, %v1017_v3  ;;  %v1864_v29 = vadd.f32 %v1863_v22, %v1861_v33  ;;  %v1895_v41 = vstv %s3557_s0  ;;  %s3799_s0 = sld [smem:[#allocation7 + $0x62]] }
 0x1da   : > { %v1109_v25 = vpop.permute.xlu0 %1108  ;;  %v1074_v50 = vpop.permute.xlu1 %1073  ;;  %v1897_v15 = vstv %s3565_s6  ;;  %vm3926_vm12 = vcmp.ge.s32.totalorder %v3154_v54, 0  ;;  %s3936_s6 = sshll.u32 %s2772_s14, 6 }
 0x1db   : > { %v1080_v40 = vsel %vm1079_vm2, %v1074_v50, %v1076_v10  ;;  %v1896_v50 = vmul.f32 %v3205_v2, %v1895_v41 }
 0x1dc   : > { %v1084_v24 = vsel %vm358_vm13, %v1080_v40, 0.0  ;;  %1775 = vrot.lane.b32.xlu0 %v1768_v56, %s2618_s4  ;;  %1740 = vrot.lane.b32.xlu1 %v1733_v36, %s2617_s19  ;;  %v1930_v36 = vstv %s3570_s8  ;;  %v1898_v40 = vmul.f32 %v3223_v57, %v1897_v15  ;;  %s2623_s19 = smov 29   ;;  %s175_s8 = scalar_lea.vmem [#allocation8], %s3936_s6 }
 0x1dd   : > { %v1086_v1 = vadd.f32 %v1084_v24, %v1051_v13  ;;  %v1932_v24 = vstv %s3579_s24  ;;  %s2122_s24 = sshll.u32 %s175_s8, 4  ;;  %s3833_s24 = int_to_ptr.vmem [resolvable:$true] %s2122_s24 }
 0x1de   : > { %v1113_v49 = vpop.permute.xlu0 %1112  ;;  %v1078_v55 = vpop.permute.xlu1 %1077  ;;  %v1933_v61 = vmul.f32 %v3223_v57, %v1932_v24 }
 0x1df   : > { %v1081_v32 = vsel %vm1079_vm2, %v1076_v10, %v1078_v55  ;;  %v1842_v55 = vrot.slane %v1829_v35, %v2811_v9  ;;  %vm1219_vm2 = vcmask 629760  }
 0x1e0   : > { %v1085_v63 = vsel %vm359_vm15, %v1081_v32, 0.0  ;;  %1808 = vrot.lane.b32.xlu0 %v1799_v62, %s2619_s5  ;;  %1773 = vrot.lane.b32.xlu1 %v1764_v8, %s2618_s4  ;;  %v1899_v62 = vadd.f32 %v1898_v40, %v1896_v50  ;;  %v1931_v8 = vmul.f32 %v3205_v2, %v1930_v36 }
 0x1e1   : > { %v1087_v31 = vadd.f32 %v1085_v63, %v1052_v21  ;;  %v1869_v21 = vrot.slane %v1864_v29, %v2807_v6 }
 0x1e2   : > { %v1146_v17 = vpop.permute.xlu0 %1145  ;;  %v1111_v11 = vpop.permute.xlu1 %1110  ;;  %v1912_v15 = vrot.slane %v1899_v62, %v2811_v9 }
 0x1e3   : > { %v1115_v46 = vsel %vm1114_vm10, %v1109_v25, %v1111_v11  ;;  %v1116_v37 = vsel %vm1114_vm10, %v1111_v11, %v1113_v49  ;;  %v1834_v25 = vrot.slane %v1829_v35, %v2807_v6  ;;  %v1877_v49 = vrot.slane %v1864_v29, %v2811_v9 }
 0x1e4   : > { %v1119_v51 = vsel %vm310_vm9, %v1115_v46, 0.0  ;;  %v1120_v52 = vsel %vm3924_vm0, %v1116_v37, 0.0  ;;  %1812 = vrot.lane.b32.xlu0 %v1807_v58, %s2619_s5  ;;  %1777 = vrot.lane.b32.xlu1 %v1772_v60, %s2618_s4  ;;  %v1908_v58 = vrot.slane %v1899_v62, %v2817_v16  ;;  %v1873_v60 = vrot.slane %v1864_v29, %v2817_v16  ;;  %s2626_s4 = smov 26  }
 0x1e5   : > { %v1121_v3 = vadd.f32 %v1119_v51, %v1086_v1  ;;  %v1122_v0 = vadd.f32 %v1120_v52, %v1087_v31  ;;  %v1934_v35 = vadd.f32 %v1933_v61, %v1931_v8  ;;  %v1965_v46 = vstv %s3595_s23 }
 0x1e6   : > { %v1179_v10 = vpop.permute.xlu0 %1178  ;;  %v1144_v26 = vpop.permute.xlu1 %1143  ;;  %v1967_v51 = vstv %s3603_s7  ;;  %vm1254_vm10 = vcmask 621568   ;;  %vm1289_vm0 = vcmask 613376   ;;  %s2500_s7 = scalar_lea.vmem %s3833_s24, 1024 }
 0x1e7   : > { %v1150_v20 = vsel %vm1149_vm5, %v1144_v26, %v1146_v17  ;;  %v1968_v29 = vmul.f32 %v3223_v57, %v1967_v51  ;;  %p2501_p5 = scmp.ne.s32.totalorder %s3833_s24, %s2500_s7 }
 0x1e8   : > { %v1154_v14 = vsel %vm318_vm11, %v1150_v20, 0.0  ;;  %1845 = vrot.lane.b32.xlu0 %v1838_v12, %s2620_s20  ;;  %1810 = vrot.lane.b32.xlu1 %v1803_v4, %s2619_s5  ;;  %v2000_v12 = vstv %s3608_s16  ;;  %v2002_v20 = vstv %s3617_s17  ;;  %s2324_s5 = sshll.u32 %s2666_s13, 10  ;;  %s2109_s13 = scalar_lea.sflag [#allocation5], %s2772_s14 }
 0x1e9   : > { %v1156_v34 = vadd.f32 %v1154_v14, %v1121_v3  ;;  %v1939_v3 = vrot.slane %v1934_v35, %v2807_v6  ;;  %v2003_v36 = vmul.f32 %v3223_v57, %v2002_v20  ;;  %p2502_p8 = pnand %p2501_p5, %p3937_p12  ;;  %s2627_s16 = smov [#allocation8]  }
 0x1ea   : > { %v1183_v28 = vpop.permute.xlu0 %1182  ;;  %v1148_v13 = vpop.permute.xlu1 %1147  ;;  %s2504_s17 = sshll.u32 %s2627_s16, 4  ;;  %s2505_s17 = int_to_ptr.vmem [resolvable:$false] %s2504_s17 }
 0x1eb   : > { %v1151_v56 = vsel %vm1149_vm5, %v1146_v17, %v1148_v13  ;;  %v2001_v13 = vmul.f32 %v3205_v2, %v2000_v12  ;;  %vm1324_vm5 = vcmask 605184   ;;  %p2503_p9 = pneg %p2502_p8  ;;  %p2507_p10 = scmp.lt.s32.totalorder %s3833_s24, %s2505_s17 }
 0x1ec   : > { %v1155_v19 = vsel %vm3925_vm6, %v1151_v56, 0.0  ;;  %1878 = vrot.lane.b32.xlu0 %v1869_v21, %s2621_s29  ;;  %1843 = vrot.lane.b32.xlu1 %v1834_v25, %s2620_s20  ;;  %vm1359_vm6 = vcmask 523264  }
 0x1ed   : > { %v1157_v30 = vadd.f32 %v1155_v19, %v1122_v0  ;;  %v1904_v0 = vrot.slane %v1899_v62, %v2807_v6  ;;  %v2035_v62 = vstv %s3631_s27 }
 0x1ee   : > { %v1216_v1 = vpop.permute.xlu0 %1215  ;;  %v1181_v39 = vpop.permute.xlu1 %1180 }
 0x1ef   : > { %v1185_v59 = vsel %vm1184_vm1, %v1179_v10, %v1181_v39  ;;  %v1186_v32 = vsel %vm1184_vm1, %v1181_v39, %v1183_v28  ;;  %v1966_v10 = vmul.f32 %v3205_v2, %v1965_v46  ;;  %v1943_v39 = vrot.slane %v1934_v35, %v2817_v16 }
 0x1f0   : > { %v1189_v44 = vsel %vm326_vm14, %v1185_v59, 0.0  ;;  %v1190_v63 = vsel %vm3926_vm12, %v1186_v32, 0.0  ;;  %1882 = vrot.lane.b32.xlu0 %v1877_v49, %s2621_s29  ;;  %1847 = vrot.lane.b32.xlu1 %v1842_v55, %s2620_s20  ;;  %v2004_v49 = vadd.f32 %v2003_v36, %v2001_v13  ;;  %v2037_v32 = vstv %s3637_s30 }
 0x1f1   : > { %v1191_v31 = vadd.f32 %v1189_v44, %v1156_v34  ;;  %v1192_v43 = vadd.f32 %v1190_v63, %v1157_v30  ;;  %v1947_v34 = vrot.slane %v1934_v35, %v2811_v9  ;;  %v1969_v28 = vadd.f32 %v1968_v29, %v1966_v10 }
 0x1f2   : > { %v1249_v17 = vpop.permute.xlu0 %1248  ;;  %v1214_v11 = vpop.permute.xlu1 %1213  ;;  %v2009_v61 = vrot.slane %v2004_v49, %v2807_v6  ;;  %v2017_v46 = vrot.slane %v2004_v49, %v2811_v9  ;;  %vm3927_vm1 = vcmp.ge.s32.totalorder %v3098_v48, 0  ;;  %vm1394_vm12 = vcmask 515072  }
 0x1f3   : > { %v1220_v33 = vsel %vm1219_vm2, %v1214_v11, %v1216_v1 }
 0x1f4   : > { %v1226_v37 = vadd.f32 %v1220_v33, %v1191_v31  ;;  %1915 = vrot.lane.b32.xlu0 %v1908_v58, %s2622_s26  ;;  %1880 = vrot.lane.b32.xlu1 %v1873_v60, %s2621_s29  ;;  %v1974_v31 = vrot.slane %v1969_v28, %v2807_v6  ;;  %v2038_v58 = vmul.f32 %v3223_v57, %v2037_v32  ;;  %s3831_s29 = scalar_lea.hbm %s3883_s2, %s2324_s5 }
 0x1f6   : > { %v1253_v52 = vpop.permute.xlu0 %1252  ;;  %v1218_v22 = vpop.permute.xlu1 %1217 }
 0x1f7   : > { %v1221_v26 = vsel %vm1219_vm2, %v1216_v1, %v1218_v22  ;;  %v1978_v1 = vrot.slane %v1969_v28, %v2817_v16  ;;  %vm3928_vm2 = vcmp.ge.s32.totalorder %v3146_v47, 0 }
 0x1f8   : > { %v1227_v4 = vadd.f32 %v1221_v26, %v1192_v43  ;;  %1948 = vrot.lane.b32.xlu0 %v1939_v3, %s2623_s19  ;;  %1913 = vrot.lane.b32.xlu1 %v1904_v0, %s2622_s26  ;;  %v2036_v43 = vmul.f32 %v3205_v2, %v2035_v62 }
 0x1fa   : > { %v1286_v41 = vpop.permute.xlu0 %1285  ;;  %v1251_v14 = vpop.permute.xlu1 %1250  ;;  %v2039_v51 = vadd.f32 %v2038_v58, %v2036_v43 }
 0x1fb   : > { %v1255_v21 = vsel %vm1254_vm10, %v1249_v17, %v1251_v14  ;;  %v1256_v25 = vsel %vm1254_vm10, %v1251_v14, %v1253_v52  ;;  %vm1429_vm10 = vcmask 506880  }
 0x1fc   : > { %v1259_v50 = vsel %vm342_vm3, %v1255_v21, 0.0  ;;  %v1260_v56 = vsel %vm343_vm4, %v1256_v25, 0.0  ;;  %1952 = vrot.lane.b32.xlu0 %v1947_v34, %s2623_s19  ;;  %1917 = vrot.lane.b32.xlu1 %v1912_v15, %s2622_s26  ;;  %v2048_v12 = vrot.slane %v2039_v51, %v2817_v16  ;;  %v2044_v15 = vrot.slane %v2039_v51, %v2807_v6  ;;  %s2506_s26 = scalar_lea.vmem %s2505_s17, 2048 }
 0x1fd   : > { %v1261_v19 = vadd.f32 %v1259_v50, %v1226_v37  ;;  %v1262_v40 = vadd.f32 %v1260_v56, %v1227_v4  ;;  %v1982_v37 = vrot.slane %v1969_v28, %v2811_v9  ;;  %v2013_v4 = vrot.slane %v2004_v49, %v2817_v16  ;;  %p2508_p1 = scmp.lt.s32.totalorder %s2506_s26, %s2500_s7 }
 0x1fe   : > { %v1319_v30 = vpop.permute.xlu0 %1318  ;;  %v1284_v24 = vpop.permute.xlu1 %1283  ;;  %v2052_v50 = vrot.slane %v2039_v51, %v2811_v9 }
 0x1ff   : > { %v1290_v55 = vsel %vm1289_vm0, %v1284_v24, %v1286_v41  ;;  %p2509_p4 = por %p2508_p1, %p2507_p10 }
 0x200   : > { %v1294_v8 = vsel %vm350_vm7, %v1290_v55, 0.0  ;;  %1985 = vrot.lane.b32.xlu0 %v1978_v1, %s2624_s28  ;;  %1950 = vrot.lane.b32.xlu1 %v1943_v39, %s2623_s19 }
 0x201   : > { %v1296_v59 = vadd.f32 %v1294_v8, %v1261_v19  ;;  %p2510_p11 = pnand %p2509_p4, %p2503_p9 }
 0x202   : > { %v1323_v44 = vpop.permute.xlu0 %1322  ;;  %v1288_v63 = vpop.permute.xlu1 %1287 }
 0x203   : > { %v1291_v17 = vsel %vm1289_vm0, %v1286_v41, %v1288_v63  ;;  %vm3929_vm0 = vcmp.ge.s32.totalorder %v3154_v54, 0 }
 0x204   : > { %v1295_v11 = vsel %vm351_vm8, %v1291_v17, 0.0  ;;  %2018 = vrot.lane.b32.xlu0 %v2009_v61, %s2625_s3  ;;  %1983 = vrot.lane.b32.xlu1 %v1974_v31, %s2624_s28 }
 0x205   : > { %v1297_v60 = vadd.f32 %v1295_v11, %v1262_v40 }
 0x206   : > { %v1356_v35 = vpop.permute.xlu0 %1355  ;;  %v1321_v33 = vpop.permute.xlu1 %1320 }
 0x207   : > { %v1325_v2 = vsel %vm1324_vm5, %v1319_v30, %v1321_v33  ;;  %v1326_v52 = vsel %vm1324_vm5, %v1321_v33, %v1323_v44  ;;  %vm1464_vm5 = vcmask 498688  }
 0x208   : > { %v1329_v22 = vsel %vm358_vm13, %v1325_v2, 0.0  ;;  %v1330_v3 = vsel %vm359_vm15, %v1326_v52, 0.0  ;;  %2022 = vrot.lane.b32.xlu0 %v2017_v46, %s2625_s3  ;;  %1987 = vrot.lane.b32.xlu1 %v1982_v37, %s2624_s28 }
 0x209   : > { %v1331_v57 = vadd.f32 %v1329_v22, %v1296_v59  ;;  %v1332_v0 = vadd.f32 %v1330_v3, %v1297_v60 }
 0x20a   : > { %v1389_v10 = vpop.permute.xlu0 %1388  ;;  %v1354_v26 = vpop.permute.xlu1 %1353 }
 0x20b   : > { %v1360_v29 = vsel %vm1359_vm6, %v1354_v26, %v1356_v35 }
 0x20c   : > { %v1364_v20 = vsel %vm310_vm9, %v1360_v29, 0.0  ;;  %2055 = vrot.lane.b32.xlu0 %v2048_v12, %s2626_s4  ;;  %2020 = vrot.lane.b32.xlu1 %v2013_v4, %s2625_s3 }
 0x20d   : > { %v1366_v41 = vadd.f32 %v1364_v20, %v1331_v57 }
 0x20e   : > { %v1393_v14 = vpop.permute.xlu0 %1392  ;;  %v1358_v34 = vpop.permute.xlu1 %1357 }
 0x20f   : > { %v1361_v28 = vsel %vm1359_vm6, %v1356_v35, %v1358_v34  ;;  %vm1499_vm6 = vcmask 490496  }
 0x210   : > { %v1365_v13 = vsel %vm3927_vm1, %v1361_v28, 0.0  ;;  %2053 = vrot.lane.b32.xlu1 %v2044_v15, %s2626_s4  ;;  %vm1534_vm1 = vcmask 482304  }
 0x211   : > { %v1367_v16 = vadd.f32 %v1365_v13, %v1332_v0 }
 0x212   : > { %v1426_v21 = vpop.permute.xlu0 %1425  ;;  %v1391_v25 = vpop.permute.xlu1 %1390 }
 0x213   : > { %v1395_v56 = vsel %vm1394_vm12, %v1389_v10, %v1391_v25  ;;  %v1396_v36 = vsel %vm1394_vm12, %v1391_v25, %v1393_v14  ;;  %vm1569_vm12 = vcmask 474112  }
 0x214   : > { %v1399_v19 = vsel %vm318_vm11, %v1395_v56, 0.0  ;;  %v1400_v40 = vsel %vm3928_vm2, %v1396_v36, 0.0  ;;  %2057 = vrot.lane.b32.xlu1 %v2052_v50, %s2626_s4  ;;  %vm1604_vm2 = vcmask 392192  }
 0x215   : > { %v1401_v30 = vadd.f32 %v1399_v19, %v1366_v41  ;;  %v1402_v24 = vadd.f32 %v1400_v40, %v1367_v16 }
 0x216   : > { %v1459_v1 = vpop.permute.xlu0 %1458  ;;  %v1424_v39 = vpop.permute.xlu1 %1423 }
 0x217   : > { %v1430_v49 = vsel %vm1429_vm10, %v1424_v39, %v1426_v21 }
 0x218   : > { %v1434_v55 = vsel %vm326_vm14, %v1430_v49, 0.0 }
 0x219   : > { %v1436_v62 = vadd.f32 %v1434_v55, %v1401_v30 }
 0x21a   : > { %v1463_v9 = vpop.permute.xlu0 %1462  ;;  %v1428_v8 = vpop.permute.xlu1 %1427 }
 0x21b   : > { %v1431_v59 = vsel %vm1429_vm10, %v1426_v21, %v1428_v8  ;;  %vm1639_vm10 = vcmask 384000  }
 0x21c   : > { %v1435_v32 = vsel %vm3929_vm0, %v1431_v59, 0.0  ;;  %vm1674_vm0 = vcmask 375808  }
 0x21d   : > { %v1437_v44 = vadd.f32 %v1435_v32, %v1402_v24 }
 0x21e   : > { %v1496_v63 = vpop.permute.xlu0 %1495  ;;  %v1461_v61 = vpop.permute.xlu1 %1460 }
 0x21f   : > { %v1465_v31 = vsel %vm1464_vm5, %v1459_v1, %v1461_v61  ;;  %v1466_v43 = vsel %vm1464_vm5, %v1461_v61, %v1463_v9  ;;  %vm3930_vm5 = vcmp.ge.s32.totalorder %v3098_v48, 0 }
 0x220   : > { %v1471_v17 = vadd.f32 %v1465_v31, %v1436_v62  ;;  %v1472_v11 = vadd.f32 %v1466_v43, %v1437_v44 }
 0x222   : > { %v1529_v58 = vpop.permute.xlu0 %1528  ;;  %v1494_v60 = vpop.permute.xlu1 %1493 }
 0x223   : > { %v1500_v35 = vsel %vm1499_vm6, %v1494_v60, %v1496_v63 }
 0x224   : > { %v1504_v33 = vsel %vm342_vm3, %v1500_v35, 0.0 }
 0x225   : > { %v1506_v46 = vadd.f32 %v1504_v33, %v1471_v17 }
 0x226   : > { %v1533_v37 = vpop.permute.xlu0 %1532  ;;  %v1498_v51 = vpop.permute.xlu1 %1497 }
 0x227   : > { %v1501_v2 = vsel %vm1499_vm6, %v1496_v63, %v1498_v51  ;;  %vm1744_vm6 = vcmask 359424  }
 0x228   : > { %v1505_v52 = vsel %vm343_vm4, %v1501_v2, 0.0 }
 0x229   : > { %v1507_v22 = vadd.f32 %v1505_v52, %v1472_v11 }
 0x22a   : > { %v1566_v3 = vpop.permute.xlu0 %1565  ;;  %v1531_v57 = vpop.permute.xlu1 %1530 }
 0x22b   : > { %v1535_v55 = vsel %vm1534_vm1, %v1529_v58, %v1531_v57  ;;  %v1536_v32 = vsel %vm1534_vm1, %v1531_v57, %v1533_v37  ;;  %vm1709_vm1 = vcmask 367616  }
 0x22c   : > { %v1539_v9 = vsel %vm350_vm7, %v1535_v55, 0.0  ;;  %v1540_v17 = vsel %vm351_vm8, %v1536_v32, 0.0 }
 0x22d   : > { %v1541_v61 = vadd.f32 %v1539_v9, %v1506_v46  ;;  %v1542_v2 = vadd.f32 %v1540_v17, %v1507_v22 }
 0x22e   : > { %v1599_v0 = vpop.permute.xlu0 %1598  ;;  %v1564_v10 = vpop.permute.xlu1 %1563 }
 0x22f   : > { %v1570_v62 = vsel %vm1569_vm12, %v1564_v10, %v1566_v3 }
 0x230   : > { %v1574_v63 = vsel %vm358_vm13, %v1570_v62, 0.0 }
 0x231   : > { %v1576_v35 = vadd.f32 %v1574_v63, %v1541_v61 }
 0x232   : > { %v1603_v26 = vpop.permute.xlu0 %1602  ;;  %v1568_v12 = vpop.permute.xlu1 %1567 }
 0x233   : > { %v1571_v31 = vsel %vm1569_vm12, %v1566_v3, %v1568_v12  ;;  %vm3931_vm12 = vcmp.ge.s32.totalorder %v3146_v47, 0 }
 0x234   : > { %v1575_v46 = vsel %vm359_vm15, %v1571_v31, 0.0 }
 0x235   : > { %v1577_v12 = vadd.f32 %v1575_v46, %v1542_v2 }
 0x236   : > { %v1636_v4 = vpop.permute.xlu0 %1635  ;;  %v1601_v29 = vpop.permute.xlu1 %1600 }
 0x237   : > { %v1605_v44 = vsel %vm1604_vm2, %v1599_v0, %v1601_v29  ;;  %v1606_v33 = vsel %vm1604_vm2, %v1601_v29, %v1603_v26  ;;  %vm1779_vm2 = vcmask 351232  }
 0x238   : > { %v1609_v11 = vsel %vm310_vm9, %v1605_v44, 0.0  ;;  %v1610_v57 = vsel %vm3930_vm5, %v1606_v33, 0.0  ;;  %vm1814_vm5 = vcmask 343040  }
 0x239   : > { %v1611_v52 = vadd.f32 %v1609_v11, %v1576_v35 }
 0x23a   : > { %v1669_v20 = vpop.permute.xlu0 %1668  ;;  %v1634_v41 = vpop.permute.xlu1 %1633 }
 0x23b   : > { %v1640_v43 = vsel %vm1639_vm10, %v1634_v41, %v1636_v4 }
 0x23c   : > { %v1644_v51 = vsel %vm318_vm11, %v1640_v43, 0.0 }
 0x23d   : > { %v1646_v29 = vadd.f32 %v1644_v51, %v1611_v52 }
 0x23e   : > { %v1673_v14 = vpop.permute.xlu0 %1672  ;;  %v1638_v34 = vpop.permute.xlu1 %1637 }
 0x23f   : > { %v1641_v3 = vsel %vm1639_vm10, %v1636_v4, %v1638_v34  ;;  %v1612_v4 = vadd.f32 %v1610_v57, %v1577_v12  ;;  %vm3932_vm10 = vcmp.ge.s32.totalorder %v3154_v54, 0 }
 0x240   : > { %v1645_v22 = vsel %vm3931_vm12, %v1641_v3, 0.0  ;;  %vm3933_vm12 = vcmp.ge.s32.totalorder %v3098_v48, 0 }
 0x241   : > { %v1647_v44 = vadd.f32 %v1645_v22, %v1612_v4 }
 0x242   : > { %v3692_v15 = vpop.permute.xlu0 %1705  ;;  %v1671_v28 = vpop.permute.xlu1 %1670 }
 0x243   : > { %v1675_v37 = vsel %vm1674_vm0, %v1669_v20, %v1671_v28  ;;  %v1676_v20 = vsel %vm1674_vm0, %v1671_v28, %v1673_v14  ;;  %vm1849_vm0 = vcmask 261120  }
 0x244   : > { %v1679_v0 = vsel %vm326_vm14, %v1675_v37, 0.0  ;;  %v1680_v55 = vsel %vm3932_vm10, %v1676_v20, 0.0  ;;  %vm3934_vm10 = vcmp.ge.s32.totalorder %v3146_v47, 0 }
 0x245   : > { %v1681_v41 = vadd.f32 %v1679_v0, %v1646_v29  ;;  %v1682_v61 = vadd.f32 %v1680_v55, %v1647_v44 }
 0x246   : > { %v1739_v13 = vpop.permute.xlu0 %1738  ;;  %v1704_v16 = vpop.permute.xlu1 %1703 }
 0x247   : > { %v1710_v62 = vsel %vm1709_vm1, %v1704_v16, %v3692_v15 }
 0x248   : > { %v1716_v31 = vadd.f32 %v1710_v62, %v1681_v41 }
 0x24a   : > { %v1743_v21 = vpop.permute.xlu0 %1742  ;;  %v1708_v25 = vpop.permute.xlu1 %1707 }
 0x24b   : > { %v1711_v63 = vsel %vm1709_vm1, %v3692_v15, %v1708_v25  ;;  %vm1919_vm1 = vcmask 244736  }
 0x24e   : > { %v3694_v50 = vpop.permute.xlu0 %1775  ;;  %v1741_v56 = vpop.permute.xlu1 %1740 }
 0x24f   : > { %v1745_v34 = vsel %vm1744_vm6, %v1739_v13, %v1741_v56  ;;  %v1746_v14 = vsel %vm1744_vm6, %v1741_v56, %v1743_v21  ;;  %vm1884_vm6 = vcmask 252928  }
 0x250   : > { %v1749_v13 = vsel %vm342_vm3, %v1745_v34, 0.0  ;;  %v1750_v21 = vsel %vm343_vm4, %v1746_v14, 0.0 }
 0x251   : > { %v1751_v17 = vadd.f32 %v1749_v13, %v1716_v31 }
 0x252   : > { %v3696_v36 = vpop.permute.xlu0 %1808  ;;  %v1774_v19 = vpop.permute.xlu1 %1773 }
 0x253   : > { %v1780_v28 = vsel %vm1779_vm2, %v1774_v19, %v3694_v50  ;;  %v1717_v19 = vadd.f32 %v1711_v63, %v1682_v61 }
 0x254   : > { %v1784_v56 = vsel %vm350_vm7, %v1780_v28, 0.0 }
 0x255   : > { %v1752_v35 = vadd.f32 %v1750_v21, %v1717_v19  ;;  %v1786_v33 = vadd.f32 %v1784_v56, %v1751_v17 }
 0x256   : > { %v3698_v40 = vpop.permute.xlu0 %1812  ;;  %v1778_v30 = vpop.permute.xlu1 %1777 }
 0x257   : > { %v1781_v16 = vsel %vm1779_vm2, %v3694_v50, %v1778_v30  ;;  %vm1989_vm2 = vcmask 228352  }
 0x25a   : > { %v3700_v24 = vpop.permute.xlu0 %1845  ;;  %v3702_v1 = vpop.permute.xlu1 %1810 }
 0x25b   : > { %v1815_v43 = vsel %vm1814_vm5, %v3696_v36, %v3702_v1  ;;  %v1816_v11 = vsel %vm1814_vm5, %v3702_v1, %v3698_v40  ;;  %v1785_v36 = vsel %vm351_vm8, %v1781_v16, 0.0  ;;  %vm2024_vm5 = vcmask 220160  }
 0x25c   : > { %v1819_v30 = vsel %vm358_vm13, %v1815_v43, 0.0  ;;  %v1820_v1 = vsel %vm359_vm15, %v1816_v11, 0.0  ;;  %v1787_v2 = vadd.f32 %v1785_v36, %v1752_v35  ;;  %v2069_v16 = vstv %s3799_s0 }
 0x25d   : > { %v1821_v52 = vadd.f32 %v1819_v30, %v1786_v33  ;;  %v2447_v33 = vld [vmem:[%s2778_s25] sm:$0xff] }
 0x25e   : > { %v3704_v39 = vpop.permute.xlu0 %1878  ;;  %v3706_v49 = vpop.permute.xlu1 %1843 }
 0x25f   : > { %v1850_v50 = vsel %vm1849_vm0, %v3706_v49, %v3700_v24 }
 0x260   : > { %v1854_v49 = vsel %vm310_vm9, %v1850_v50, 0.0  ;;  %vm1954_vm9 = vcmask 236544  }
 0x261   : > { %v1856_v38 = vadd.f32 %v1854_v49, %v1821_v52  ;;  %v2449_v49 = vld [vmem:[%s2778_s25 + $0x20] sm:$0xff] }
 0x262   : > { %v3710_v8 = vpop.permute.xlu0 %1882  ;;  %v3712_v59 = vpop.permute.xlu1 %1847 }
 0x263   : > { %v1851_v37 = vsel %vm1849_vm0, %v3700_v24, %v3712_v59  ;;  %v1822_v59 = vadd.f32 %v1820_v1, %v1787_v2 }
 0x264   : > { %v1855_v24 = vsel %vm3933_vm12, %v1851_v37, 0.0 }
 0x266   : > { %v3722_v58 = vpop.permute.xlu0 %1915  ;;  %v1881_v60 = vpop.permute.xlu1 %1880 }
 0x267   : > { %v1885_v40 = vsel %vm1884_vm6, %v3704_v39, %v1881_v60  ;;  %v1886_v3 = vsel %vm1884_vm6, %v1881_v60, %v3710_v8 }
 0x268   : > { %v1889_v39 = vsel %vm318_vm11, %v1885_v40, 0.0  ;;  %v1890_v12 = vsel %vm3934_vm10, %v1886_v3, 0.0  ;;  %vm3935_vm11 = vcmp.ge.s32.totalorder %v3154_v54, 0  ;;  %v2448_v40 = vld [vmem:[%s2778_s25 + $0x10] sm:$0xff] }
 0x269   : > { %v1891_v48 = vadd.f32 %v1889_v39, %v1856_v38  ;;  %v2452_v39 = vld [vmem:[%s2778_s25 + $0x18] sm:$0xff]  ;;  %v2453_v38 = vld [vmem:[%s2778_s25 + $0x28] sm:$0xff] }
 0x26a   : > { %v3735_v10 = vpop.permute.xlu0 %1948  ;;  %v1914_v26 = vpop.permute.xlu1 %1913 }
 0x26b   : > { %v1920_v57 = vsel %vm1919_vm1, %v1914_v26, %v3722_v58  ;;  %v1857_v26 = vadd.f32 %v1855_v24, %v1822_v59 }
 0x26c   : > { %v1924_v8 = vsel %vm326_vm14, %v1920_v57, 0.0  ;;  %vm2059_vm14 = vcmask 211968   ;;  %v2451_v57 = vld [vmem:[%s2778_s25 + $0x8] sm:$0xff] }
 0x26d   : > { %v1892_v47 = vadd.f32 %v1890_v12, %v1857_v26  ;;  %v2454_v12 = vld [vmem:[%s2778_s25 + $0x38] sm:$0xff] }
 0x26e   : > { %v3744_v9 = vpop.permute.xlu0 %1952  ;;  %v1918_v32 = vpop.permute.xlu1 %1917 }
 0x26f   : > { %v1921_v0 = vsel %vm1919_vm1, %v3722_v58, %v1918_v32  ;;  %v1926_v58 = vadd.f32 %v1924_v8, %v1891_v48 }
 0x270   : > { %v1925_v45 = vsel %vm3935_vm11, %v1921_v0, 0.0 }
 0x271   : > { %v1927_v41 = vadd.f32 %v1925_v45, %v1892_v47 }
 0x272   : > { %v1986_v15 = vpop.permute.xlu0 %1985  ;;  %v1951_v25 = vpop.permute.xlu1 %1950 }
 0x273   : > { %v1955_v20 = vsel %vm1954_vm9, %v3735_v10, %v1951_v25  ;;  %v1956_v62 = vsel %vm1954_vm9, %v1951_v25, %v3744_v9 }
 0x274   : > { %v1961_v34 = vadd.f32 %v1955_v20, %v1926_v58  ;;  %v1962_v63 = vadd.f32 %v1956_v62, %v1927_v41 }
 0x276   : > { %v2019_v46 = vpop.permute.xlu0 %2018  ;;  %v1984_v51 = vpop.permute.xlu1 %1983 }
 0x277   : > { %v1990_v29 = vsel %vm1989_vm2, %v1984_v51, %v1986_v15  ;;  %v2450_v51 = vld [vmem:[%s2778_s25 + $0x30] sm:$0xff] }
 0x278   : > { %v1994_v53 = vsel %vm342_vm3, %v1990_v29, 0.0 }
 0x279   : > { %v1996_v32 = vadd.f32 %v1994_v53, %v1961_v34 }
 0x27a   : > { %v1988_v60 = vpop.permute.xlu1 %1987  ;;  %v2023_v22 = vpop.permute.xlu0 %2022 }
 0x27b   : > { %v1991_v55 = vsel %vm1989_vm2, %v1986_v15, %v1988_v60 }
 0x27c   : > { %v1995_v5 = vsel %vm343_vm4, %v1991_v55, 0.0 }
 0x27d   : > { %v1997_v9 = vadd.f32 %v1995_v5, %v1962_v63 }
 0x27e   : > { %v2021_v4 = vpop.permute.xlu1 %2020  ;;  %v2056_v14 = vpop.permute.xlu0 %2055 }
 0x27f   : > { %v2025_v54 = vsel %vm2024_vm5, %v2019_v46, %v2021_v4  ;;  %v2026_v44 = vsel %vm2024_vm5, %v2021_v4, %v2023_v22 }
 0x280   : > { %v2029_v10 = vsel %vm350_vm7, %v2025_v54, 0.0  ;;  %v2030_v31 = vsel %vm351_vm8, %v2026_v44, 0.0 }
 0x281   : > { %v2031_v13 = vadd.f32 %v2029_v10, %v1996_v32  ;;  %v2032_v56 = vadd.f32 %v2030_v31, %v1997_v9 }
 0x282   : > { %v2054_v28 = vpop.permute.xlu1 %2053 }
 0x283   : > { %v2060_v61 = vsel %vm2059_vm14, %v2054_v28, %v2056_v14 }
 0x284   : > { %v2064_v42 = vsel %vm358_vm13, %v2060_v61, 0.0 }
 0x285   : > { %v2066_v43 = vadd.f32 %v2064_v42, %v2031_v13 }
 0x286   : > { %v2058_v21 = vpop.permute.xlu1 %2057 }
 0x287   : > { %v2070_v15 = vadd.f32 %v2069_v16, %v2066_v43  ;;  %v2061_v23 = vsel %vm2059_vm14, %v2056_v14, %v2058_v21 }
 0x288   : > { %v2065_v25 = vsel %vm359_vm15, %v2061_v23, 0.0 }
 0x289   : > { %v2316_v19 = vmul.f32 -1.442695, %v2070_v15  ;;  %v2067_v17 = vadd.f32 %v2065_v25, %v2032_v56 }
 0x28b   : > { %2437 = vpow2.f32 %v2316_v19  ;;  %v2071_v7 = vadd.f32 %v2069_v16, %v2067_v17 }
 0x28d   : > { %v2317_v11 = vmul.f32 -1.442695, %v2071_v7 }
 0x28f   : > { %2439 = vpow2.f32 %v2317_v11 }
 0x295   : > { %v2438_v27 = vpop.eup %2437 }
 0x296   : > { %v2078_v50 = vadd.f32 1.0, %v2438_v27 }
 0x298   : > { %2441 = vrcp.f32 %v2078_v50 }
 0x299   : > { %v2440_v36 = vpop.eup %2439 }
 0x29a   : > { %v2079_v30 = vadd.f32 1.0, %v2440_v36 }
 0x29c   : > { %2443 = vrcp.f32 %v2079_v30 }
 0x2a2   : > { %v2442_v18 = vpop.eup %2441 }
 0x2a3   : > { %v2087_v35 = vrot.slane %v2442_v18, %v2807_v6 }
 0x2a5   : > { %v2092_v37 = vmul.f32 %v2447_v33, %v2087_v35  ;;  %v2094_v1 = vmul.f32 %v2448_v40, %v2087_v35  ;;  %v2096_v46 = vmul.f32 %v2449_v49, %v2087_v35  ;;  %v2098_v2 = vmul.f32 %v2450_v51, %v2087_v35 }
 0x2a6   : > { %v2444_v52 = vpop.eup %2443 }
 0x2a7   : > { %2100 = vst [vmem:[%s175_s8] sm:$0xff] %v2092_v37  ;;  %2102 = vst [vmem:[%s175_s8 + $0x10] sm:$0xff] %v2094_v1  ;;  %v2091_v3 = vrot.slane %v2444_v52, %v2807_v6 }
 0x2a8   : > { %2104 = vst [vmem:[%s175_s8 + $0x20] sm:$0xff] %v2096_v46  ;;  %2106 = vst [vmem:[%s175_s8 + $0x30] sm:$0xff] %v2098_v2 }
 0x2a9   : > { %v2093_v24 = vmul.f32 %v2451_v57, %v2091_v3  ;;  %v2095_v59 = vmul.f32 %v2452_v39, %v2091_v3  ;;  %v2097_v0 = vmul.f32 %v2453_v38, %v2091_v3  ;;  %v2099_v8 = vmul.f32 %v2454_v12, %v2091_v3 }
 0x2ab   : > { %2101 = vst [vmem:[%s175_s8 + $0x8] sm:$0xff] %v2093_v24  ;;  %2103 = vst [vmem:[%s175_s8 + $0x18] sm:$0xff] %v2095_v59 }
 0x2ac   : > { %2105 = vst [vmem:[%s175_s8 + $0x28] sm:$0xff] %v2097_v0  ;;  %2107 = vst [vmem:[%s175_s8 + $0x38] sm:$0xff] %v2099_v8 }
 0x2ad   : > { %2513 = shalt.err (!%p2510_p11)
}
 0x2ae   : > { %s2514_s25 = scalar_lea.hbm %s3831_s29, 1024  ;;  %s2518_s30 = scalar_lea.hbm %s3883_s2, 2048 }
 0x2af   : > { %p2515_p0 = scmp.ne.s32.totalorder %s3831_s29, %s2514_s25  ;;  %p2519_p6 = scmp.lt.u32.totalorder %s3831_s29, %s3883_s2 }
 0x2b0   : > { %p2520_p3 = scmp.lt.u32.totalorder %s2518_s30, %s2514_s25  ;;  %p2522_p5 = scmp.lt.u32.totalorder %s2514_s25, %s3831_s29 }
 0x2b1   : > { %p2516_p2 = pnand %p2515_p0, %p3937_p12 }
 0x2b2   : > { %p2521_p13 = por %p2520_p3, %p2519_p6 }
 0x2b3   : > { %p2517_p7 = pneg %p2516_p2 }
 0x2b4   : > { %p2523_p8 = por %p2522_p5, %p2521_p13 }
 0x2b6   : > { %p2524_p9 = pnand %p2523_p8, %p2517_p7 }
 0x2b8   : > { %2527 = shalt.err (!%p2524_p9)
}
 0x2b9   : > { %s2628_s4 = smov 256   ;;  %s2629_s0 = smov 16  }
 0x2ba   : > { %2331 = dma.vmem_to_hbm [thread:$0]  (%p3937_p12), %s3833_s24, 1024, %s3831_s29, %s2109_s13, %s2628_s4, %s2628_s4, %s2629_s0  }
 0x2bb PF: > { %s2137_s5 = sand.u32 1, %s2558_s9   ;;  %p3938_p10 = scmp.ne.s32.totalorder %s3896_s22, 0 }
 0x2bc   : > { %p3939_p1 = scmp.ge.s32.totalorder %s2570_s12, 2  ;;  %s2138_s6 = scalar_lea.sflag [#allocation5], %s2137_s5 }
 0x2be   : > { %p2342_p4 = pnand %p3939_p1, %p3938_p10 }
 0x2c0   : > { %2553 = dma.done.wait (!%p2342_p4), %s2138_s6, 1024  }
 0x2c1   : > { %2555 = vsyncadd (!%p2342_p4), %s2138_s6, 4294966272  ;;  %p16_p11 = scmp.ge.s32.totalorder %s2670_s15, 4   ;;  %s3940_s9 = smov %s2562_s10 }
 0x2c2   : > { %s3941_s10 = smov %s2566_s11  ;;  %s3942_s11 = smov %s2682_s18 }
 0x2c3   : > { %s3943_s12 = smov %s2670_s15  ;;  %18 = sbr.rel (!%p16_p11) target bundleno = 8 (0x8), region = 79 }
 0x2ca   :  { %2143 = vsyncpa [#allocation4], 1 }
 0x2cb   :  { %2145 = vsyncpa [#allocation4 + $0x1], 1 }
 0x2cc   :  { %2146 = vsyncpa [#allocation5], 1 }
 0x2cd   :  { %2148 = vsyncpa [#allocation5 + $0x1], 1 }
 0x2ce   :  { %2149 = vsyncpa [#allocation6], 1 }
 0x2cf   :  { %2151 = vsyncpa [#allocation6 + $0x1], 1 }

</bundles_post_ra>
